<compile_context>
chip_gen: v6e
topology: v6e:2x2x1
jax: 0.10.0
libtpu: 0.0.40
codegen_flags: <defaults>
</compile_context>

<pallas_src>
import functools

import jax
import jax.numpy as jnp
from jax import lax
from jax.experimental import pallas as pl
from jax.experimental.pallas import tpu as pltpu


def _dwsep_fused_kernel(x_ref, wf_ref, b_ref, o_ref, *, tile_h, W, K):
    """One (batch, H-tile) per grid step.

    x_ref : (1, 1, tile_h+K-1, W+K-1, C_in)  zero-padded input row-tile (+halo)
    wf_ref: (K*K, C_in, Cp)                  fused depthwise*pointwise weight
    b_ref : (1, Cp)                          pointwise bias (zero-padded to Cp)
    o_ref : (1, tile_h*W, Cp)                lane-dense output tile
    """
    xp = x_ref[0, 0]                       # (Th, Wp, C_in)
    wf = wf_ref[...]                       # load all K*K taps once (in-register)
    Cp = o_ref.shape[-1]
    M = tile_h * W

    # im2col matmul with the fused weight, evaluated tap-by-tap on the MXU:
    #   out[m, d] = sum_{ky,kx,c} xp[h+ky, w+kx, c] * Wf[(ky,kx,c), d]
    acc = jnp.zeros((M, Cp), jnp.float32)
    t = 0
    for ky in range(K):                    # K*K static taps, fully unrolled
        for kx in range(K):
            slab = xp[ky:ky + tile_h, kx:kx + W, :]       # (tile_h, W, C_in)
            slab = slab.reshape(M, slab.shape[-1])        # leading-dim collapse
            acc = acc + jnp.dot(slab, wf[t],
                                preferred_element_type=jnp.float32,
                                precision=lax.Precision.HIGHEST)
            t += 1

    acc = acc + b_ref[...]                 # (1, Cp) broadcast over rows
    o_ref[0] = acc.astype(o_ref.dtype)


def _pick_tile_h(H, W, max_tile_h=8):
    """Largest divisor of H <= max_tile_h whose tile keeps (tile_h*W) % 8 == 0."""
    for t in range(min(H, max_tile_h), 0, -1):
        if H % t == 0 and (t * W) % 8 == 0:
            return t
    return H                                # single tile; block == full H*W dim


def depthwise_sep_conv(x_nchw, w_dw, w_pw, b_pw, *, max_tile_h=8):
    """Forward pass matching the PyTorch DepthWiseSepConv module.

    x_nchw : (N, C_in, H, W)
    w_dw   : (C_out, 1, K, K)      depthwise weight (groups = C_in, no bias)
    w_pw   : (C_out, C_out, 1, 1)  pointwise weight
    b_pw   : (C_out,)              pointwise bias
    returns: (N, C_out, H, W)
    """
    N, C_in, H, W = x_nchw.shape
    C_out = w_dw.shape[0]
    K = w_dw.shape[-1]
    assert C_out % C_in == 0, "groups=C_in requires C_out % C_in == 0"
    mult = C_out // C_in

    # PyTorch 'same' padding: left = total//2, right = total - left
    total = K - 1
    p_lo = total // 2
    p_hi = total - p_lo
    Wp = W + total

    tile_h = _pick_tile_h(H, W, max_tile_h)
    n_tiles = H // tile_h
    Th = tile_h + total
    Cp = ((C_out + 127) // 128) * 128      # lane-dense (multiple of 128) out dim
    M = tile_h * W

    # ---- glue: layout / padding / fused-weight construction (plain JAX) ----
    x_nhwc = jnp.transpose(x_nchw, (0, 2, 3, 1))                         # NHWC
    x_pad = jnp.pad(x_nhwc, ((0, 0), (p_lo, p_hi), (p_lo, p_hi), (0, 0)))
    # Overlapping row tiles with their (K-1)-row halo: (N, n_tiles, Th, Wp, C_in)
    x_tiles = jnp.stack(
        [x_pad[:, t * tile_h: t * tile_h + Th] for t in range(n_tiles)], axis=1)

    # Fused weight: Wf[ky,kx,c_in,d] = sum_m dw[c_in*mult+m,ky,kx] * pw[d,c_in*mult+m]
    dw = w_dw[:, 0].reshape(C_in, mult, K, K)            # [c_in, m, ky, kx]
    pw = w_pw[:, :, 0, 0].reshape(C_out, C_in, mult)     # [d, c_in, m]
    wf = jnp.einsum("cmyx,dcm->yxcd", dw, pw).reshape(K * K, C_in, C_out)
    wf = jnp.pad(wf, ((0, 0), (0, 0), (0, Cp - C_out))).astype(x_nchw.dtype)
    bias = jnp.pad(b_pw.astype(jnp.float32), (0, Cp - C_out)).reshape(1, Cp)

    kernel = functools.partial(_dwsep_fused_kernel, tile_h=tile_h, W=W, K=K)
    out_dtype = x_nchw.dtype
    out_isize = jnp.dtype(out_dtype).itemsize

    # Explicit VMEM budget (double-buffered in/out blocks + weights + f32 acc),
    # capped at 32 MiB so it is valid on v5e / v6e / v7x alike.
    in_block = Th * Wp * C_in * x_tiles.dtype.itemsize
    out_block = M * Cp * out_isize
    w_bytes = wf.size * wf.dtype.itemsize + bias.size * bias.dtype.itemsize
    vmem_need = 2 * (in_block + out_block) + 2 * w_bytes + M * Cp * 4
    vmem_limit = int(min(32 * 1024 * 1024, max(4 * 1024 * 1024, 4 * vmem_need)))

    cost = pl.CostEstimate(
        flops=int(2 * N * H * W * K * K * C_in * Cp + N * H * W * Cp),
        transcendentals=0,
        bytes_accessed=int(x_tiles.size * x_tiles.dtype.itemsize
                           + wf.size * wf.dtype.itemsize
                           + bias.size * bias.dtype.itemsize
                           + N * H * W * Cp * out_isize))

    out_flat = pl.pallas_call(
        kernel,
        out_shape=jax.ShapeDtypeStruct((N, H * W, Cp), out_dtype),
        grid_spec=pltpu.PrefetchScalarGridSpec(
            num_scalar_prefetch=0,
            grid=(N, n_tiles),
            in_specs=[
                pl.BlockSpec((1, 1, Th, Wp, C_in), lambda n, t: (n, t, 0, 0, 0)),
                pl.BlockSpec((K * K, C_in, Cp), lambda n, t: (0, 0, 0)),
                pl.BlockSpec((1, Cp), lambda n, t: (0, 0)),
            ],
            out_specs=pl.BlockSpec((1, M, Cp), lambda n, t: (n, t, 0)),
        ),
        compiler_params=pltpu.CompilerParams(
            dimension_semantics=("parallel", "parallel"),
            vmem_limit_bytes=vmem_limit),
        cost_estimate=cost,
    )(x_tiles, wf, bias)

    out = out_flat[:, :, :C_out].reshape(N, H, W, C_out)
    return jnp.transpose(out, (0, 3, 1, 2))                 # back to NCHW


def _reference(x_nchw, w_dw, w_pw, b_pw):
    """Pure-JAX reference (mirrors torch semantics) for verification."""
    C_in = x_nchw.shape[1]
    K = w_dw.shape[-1]
    total = K - 1
    p_lo = total // 2
    p_hi = total - p_lo
    dw_out = lax.conv_general_dilated(
        x_nchw, w_dw, window_strides=(1, 1),
        padding=((p_lo, p_hi), (p_lo, p_hi)),
        feature_group_count=C_in,
        dimension_numbers=("NCHW", "OIHW", "NCHW"),
        precision=lax.Precision.HIGHEST)
    pw_out = lax.conv_general_dilated(
        dw_out, w_pw, window_strides=(1, 1), padding=((0, 0), (0, 0)),
        dimension_numbers=("NCHW", "OIHW", "NCHW"),
        precision=lax.Precision.HIGHEST)
    return pw_out + b_pw[None, :, None, None]


if __name__ == "__main__":
    # small shapes consistent with the module: N=2, C_in=4, C_out=8, 16x16, K=3
    N, C_in, C_out, H, W, K = 2, 4, 8, 16, 16, 3

    key = jax.random.PRNGKey(0)
    k_x, k_dw, k_pw, k_b = jax.random.split(key, 4)
    x = jax.random.normal(k_x, (N, C_in, H, W), dtype=jnp.float32)
    w_dw = jax.random.normal(k_dw, (C_out, 1, K, K), dtype=jnp.float32) * 0.1
    w_pw = jax.random.normal(k_pw, (C_out, C_out, 1, 1), dtype=jnp.float32) * 0.1
    b_pw = jax.random.normal(k_b, (C_out,), dtype=jnp.float32) * 0.1

    out = jax.block_until_ready(depthwise_sep_conv(x, w_dw, w_pw, b_pw))
    ref = jax.block_until_ready(_reference(x, w_dw, w_pw, b_pw))

    assert out.shape == (N, C_out, H, W)
    err = float(jnp.max(jnp.abs(out - ref)))
    assert err < 2e-3, f"mismatch vs reference: {err}"
    print("KERNEL_OK")
</pallas_src>

<mosaic_0001>
module attributes {stable_mosaic.version = 11 : i64} {
  func.func @_dwsep_fused_kernel(%arg0: i32, %arg1: i32, %arg2: memref<1x1x10x18x4xf32, #tpu.memory_space<vmem>>, %arg3: memref<9x4x128xf32, #tpu.memory_space<vmem>>, %arg4: memref<1x128xf32, #tpu.memory_space<vmem>>, %arg5: memref<1x128x128xf32, #tpu.memory_space<vmem>>) attributes {dimension_semantics = [#tpu.dimension_semantics<parallel>, #tpu.dimension_semantics<parallel>], iteration_bounds = array<i64: 2, 2>, scalar_prefetch = 0 : i64, scratch_operands = 0 : i64, tpu.core_type = #tpu.core_type<tc>, window_params = [{transform_indices = @transform_0, window_bounds = array<i64: 1, 1, 10, 18, 4>}, {pipeline_mode = #tpu.pipeline_mode<synchronous>, transform_indices = @transform_1, window_bounds = array<i64: 9, 4, 128>}, {pipeline_mode = #tpu.pipeline_mode<synchronous>, transform_indices = @transform_2, window_bounds = array<i64: 1, 128>}, {transform_indices = @transform_3, window_bounds = array<i64: 1, 128, 128>}]} {
    %c0 = arith.constant 0 : index
    %c0_0 = arith.constant 0 : index
    %c0_1 = arith.constant 0 : index
    %c0_2 = arith.constant 0 : index
    %c0_3 = arith.constant 0 : index
    %0 = vector.load %arg2[%c0, %c0_0, %c0_1, %c0_2, %c0_3] : memref<1x1x10x18x4xf32, #tpu.memory_space<vmem>>, vector<1x1x10x18x4xf32>
    %1 = vector.shape_cast %0 : vector<1x1x10x18x4xf32> to vector<10x18x4xf32>
    %c0_4 = arith.constant 0 : index
    %c0_5 = arith.constant 0 : index
    %c0_6 = arith.constant 0 : index
    %2 = vector.load %arg3[%c0_4, %c0_5, %c0_6] : memref<9x4x128xf32, #tpu.memory_space<vmem>>, vector<9x4x128xf32>
    %cst = arith.constant 0.000000e+00 : f32
    %3 = vector.broadcast %cst : f32 to vector<128x128xf32>
    %4 = vector.extract_strided_slice %1 {offsets = [0, 0, 0], sizes = [8, 16, 4], strides = [1, 1, 1]} : vector<10x18x4xf32> to vector<8x16x4xf32>
    %5 = vector.shape_cast %4 : vector<8x16x4xf32> to vector<128x4xf32>
    %6 = vector.extract_strided_slice %2 {offsets = [0, 0, 0], sizes = [1, 4, 128], strides = [1, 1, 1]} : vector<9x4x128xf32> to vector<1x4x128xf32>
    %7 = vector.shape_cast %6 : vector<1x4x128xf32> to vector<4x128xf32>
    %cst_7 = arith.constant dense<0.000000e+00> : vector<128x128xf32>
    %8 = tpu.matmul %5, %7, %cst_7 {dimension_numbers = #tpu.dot_dimension_numbers<[1], [0], [0], [1], [0, 0, 1, 1], [], []>, precision = #tpu.contract_precision<fp32>} : vector<128x4xf32>, vector<4x128xf32>, vector<128x128xf32> -> vector<128x128xf32>
    %9 = arith.addf %3, %8 : vector<128x128xf32>
    %10 = vector.extract_strided_slice %1 {offsets = [0, 1, 0], sizes = [8, 16, 4], strides = [1, 1, 1]} : vector<10x18x4xf32> to vector<8x16x4xf32>
    %11 = vector.shape_cast %10 : vector<8x16x4xf32> to vector<128x4xf32>
    %12 = vector.extract_strided_slice %2 {offsets = [1, 0, 0], sizes = [1, 4, 128], strides = [1, 1, 1]} : vector<9x4x128xf32> to vector<1x4x128xf32>
    %13 = vector.shape_cast %12 : vector<1x4x128xf32> to vector<4x128xf32>
    %cst_8 = arith.constant dense<0.000000e+00> : vector<128x128xf32>
    %14 = tpu.matmul %11, %13, %cst_8 {dimension_numbers = #tpu.dot_dimension_numbers<[1], [0], [0], [1], [0, 0, 1, 1], [], []>, precision = #tpu.contract_precision<fp32>} : vector<128x4xf32>, vector<4x128xf32>, vector<128x128xf32> -> vector<128x128xf32>
    %15 = arith.addf %9, %14 : vector<128x128xf32>
    %16 = vector.extract_strided_slice %1 {offsets = [0, 2, 0], sizes = [8, 16, 4], strides = [1, 1, 1]} : vector<10x18x4xf32> to vector<8x16x4xf32>
    %17 = vector.shape_cast %16 : vector<8x16x4xf32> to vector<128x4xf32>
    %18 = vector.extract_strided_slice %2 {offsets = [2, 0, 0], sizes = [1, 4, 128], strides = [1, 1, 1]} : vector<9x4x128xf32> to vector<1x4x128xf32>
    %19 = vector.shape_cast %18 : vector<1x4x128xf32> to vector<4x128xf32>
    %cst_9 = arith.constant dense<0.000000e+00> : vector<128x128xf32>
    %20 = tpu.matmul %17, %19, %cst_9 {dimension_numbers = #tpu.dot_dimension_numbers<[1], [0], [0], [1], [0, 0, 1, 1], [], []>, precision = #tpu.contract_precision<fp32>} : vector<128x4xf32>, vector<4x128xf32>, vector<128x128xf32> -> vector<128x128xf32>
    %21 = arith.addf %15, %20 : vector<128x128xf32>
    %22 = vector.extract_strided_slice %1 {offsets = [1, 0, 0], sizes = [8, 16, 4], strides = [1, 1, 1]} : vector<10x18x4xf32> to vector<8x16x4xf32>
    %23 = vector.shape_cast %22 : vector<8x16x4xf32> to vector<128x4xf32>
    %24 = vector.extract_strided_slice %2 {offsets = [3, 0, 0], sizes = [1, 4, 128], strides = [1, 1, 1]} : vector<9x4x128xf32> to vector<1x4x128xf32>
    %25 = vector.shape_cast %24 : vector<1x4x128xf32> to vector<4x128xf32>
    %cst_10 = arith.constant dense<0.000000e+00> : vector<128x128xf32>
    %26 = tpu.matmul %23, %25, %cst_10 {dimension_numbers = #tpu.dot_dimension_numbers<[1], [0], [0], [1], [0, 0, 1, 1], [], []>, precision = #tpu.contract_precision<fp32>} : vector<128x4xf32>, vector<4x128xf32>, vector<128x128xf32> -> vector<128x128xf32>
    %27 = arith.addf %21, %26 : vector<128x128xf32>
    %28 = vector.extract_strided_slice %1 {offsets = [1, 1, 0], sizes = [8, 16, 4], strides = [1, 1, 1]} : vector<10x18x4xf32> to vector<8x16x4xf32>
    %29 = vector.shape_cast %28 : vector<8x16x4xf32> to vector<128x4xf32>
    %30 = vector.extract_strided_slice %2 {offsets = [4, 0, 0], sizes = [1, 4, 128], strides = [1, 1, 1]} : vector<9x4x128xf32> to vector<1x4x128xf32>
    %31 = vector.shape_cast %30 : vector<1x4x128xf32> to vector<4x128xf32>
    %cst_11 = arith.constant dense<0.000000e+00> : vector<128x128xf32>
    %32 = tpu.matmul %29, %31, %cst_11 {dimension_numbers = #tpu.dot_dimension_numbers<[1], [0], [0], [1], [0, 0, 1, 1], [], []>, precision = #tpu.contract_precision<fp32>} : vector<128x4xf32>, vector<4x128xf32>, vector<128x128xf32> -> vector<128x128xf32>
    %33 = arith.addf %27, %32 : vector<128x128xf32>
    %34 = vector.extract_strided_slice %1 {offsets = [1, 2, 0], sizes = [8, 16, 4], strides = [1, 1, 1]} : vector<10x18x4xf32> to vector<8x16x4xf32>
    %35 = vector.shape_cast %34 : vector<8x16x4xf32> to vector<128x4xf32>
    %36 = vector.extract_strided_slice %2 {offsets = [5, 0, 0], sizes = [1, 4, 128], strides = [1, 1, 1]} : vector<9x4x128xf32> to vector<1x4x128xf32>
    %37 = vector.shape_cast %36 : vector<1x4x128xf32> to vector<4x128xf32>
    %cst_12 = arith.constant dense<0.000000e+00> : vector<128x128xf32>
    %38 = tpu.matmul %35, %37, %cst_12 {dimension_numbers = #tpu.dot_dimension_numbers<[1], [0], [0], [1], [0, 0, 1, 1], [], []>, precision = #tpu.contract_precision<fp32>} : vector<128x4xf32>, vector<4x128xf32>, vector<128x128xf32> -> vector<128x128xf32>
    %39 = arith.addf %33, %38 : vector<128x128xf32>
    %40 = vector.extract_strided_slice %1 {offsets = [2, 0, 0], sizes = [8, 16, 4], strides = [1, 1, 1]} : vector<10x18x4xf32> to vector<8x16x4xf32>
    %41 = vector.shape_cast %40 : vector<8x16x4xf32> to vector<128x4xf32>
    %42 = vector.extract_strided_slice %2 {offsets = [6, 0, 0], sizes = [1, 4, 128], strides = [1, 1, 1]} : vector<9x4x128xf32> to vector<1x4x128xf32>
    %43 = vector.shape_cast %42 : vector<1x4x128xf32> to vector<4x128xf32>
    %cst_13 = arith.constant dense<0.000000e+00> : vector<128x128xf32>
    %44 = tpu.matmul %41, %43, %cst_13 {dimension_numbers = #tpu.dot_dimension_numbers<[1], [0], [0], [1], [0, 0, 1, 1], [], []>, precision = #tpu.contract_precision<fp32>} : vector<128x4xf32>, vector<4x128xf32>, vector<128x128xf32> -> vector<128x128xf32>
    %45 = arith.addf %39, %44 : vector<128x128xf32>
    %46 = vector.extract_strided_slice %1 {offsets = [2, 1, 0], sizes = [8, 16, 4], strides = [1, 1, 1]} : vector<10x18x4xf32> to vector<8x16x4xf32>
    %47 = vector.shape_cast %46 : vector<8x16x4xf32> to vector<128x4xf32>
    %48 = vector.extract_strided_slice %2 {offsets = [7, 0, 0], sizes = [1, 4, 128], strides = [1, 1, 1]} : vector<9x4x128xf32> to vector<1x4x128xf32>
    %49 = vector.shape_cast %48 : vector<1x4x128xf32> to vector<4x128xf32>
    %cst_14 = arith.constant dense<0.000000e+00> : vector<128x128xf32>
    %50 = tpu.matmul %47, %49, %cst_14 {dimension_numbers = #tpu.dot_dimension_numbers<[1], [0], [0], [1], [0, 0, 1, 1], [], []>, precision = #tpu.contract_precision<fp32>} : vector<128x4xf32>, vector<4x128xf32>, vector<128x128xf32> -> vector<128x128xf32>
    %51 = arith.addf %45, %50 : vector<128x128xf32>
    %52 = vector.extract_strided_slice %1 {offsets = [2, 2, 0], sizes = [8, 16, 4], strides = [1, 1, 1]} : vector<10x18x4xf32> to vector<8x16x4xf32>
    %53 = vector.shape_cast %52 : vector<8x16x4xf32> to vector<128x4xf32>
    %54 = vector.extract_strided_slice %2 {offsets = [8, 0, 0], sizes = [1, 4, 128], strides = [1, 1, 1]} : vector<9x4x128xf32> to vector<1x4x128xf32>
    %55 = vector.shape_cast %54 : vector<1x4x128xf32> to vector<4x128xf32>
    %cst_15 = arith.constant dense<0.000000e+00> : vector<128x128xf32>
    %56 = tpu.matmul %53, %55, %cst_15 {dimension_numbers = #tpu.dot_dimension_numbers<[1], [0], [0], [1], [0, 0, 1, 1], [], []>, precision = #tpu.contract_precision<fp32>} : vector<128x4xf32>, vector<4x128xf32>, vector<128x128xf32> -> vector<128x128xf32>
    %57 = arith.addf %51, %56 : vector<128x128xf32>
    %c0_16 = arith.constant 0 : index
    %c0_17 = arith.constant 0 : index
    %58 = vector.load %arg4[%c0_16, %c0_17] : memref<1x128xf32, #tpu.memory_space<vmem>>, vector<1x128xf32>
    %59 = vector.broadcast %58 : vector<1x128xf32> to vector<128x128xf32>
    %60 = arith.addf %57, %59 : vector<128x128xf32>
    %c0_18 = arith.constant 0 : index
    %c0_19 = arith.constant 0 : index
    %c0_20 = arith.constant 0 : index
    %61 = vector.load %arg5[%c0_18, %c0_19, %c0_20] : memref<1x128x128xf32, #tpu.memory_space<vmem>>, vector<1x128x128xf32>
    %62 = vector.shape_cast %61 : vector<1x128x128xf32> to vector<128x128xf32>
    %63 = vector.shape_cast %60 : vector<128x128xf32> to vector<1x128x128xf32>
    tpu.vector_store %arg5[%c0_18, %c0_19, %c0_20], %63 {strides = array<i32>} : memref<1x128x128xf32, #tpu.memory_space<vmem>>, vector<1x128x128xf32>,
    return
  }
  func.func @transform_0(%arg0: i32, %arg1: i32) -> (i32, i32, i32, i32, i32) {
    %c0_i32 = arith.constant 0 : i32
    %c0_i32_0 = arith.constant 0 : i32
    %c0_i32_1 = arith.constant 0 : i32
    %c0_i32_2 = arith.constant 0 : i32
    return %arg0, %arg1, %c0_i32, %c0_i32_0, %c0_i32_1 : i32, i32, i32, i32, i32
  }
  func.func @transform_1(%arg0: i32, %arg1: i32) -> (i32, i32, i32) {
    %c0_i32 = arith.constant 0 : i32
    %c0_i32_0 = arith.constant 0 : i32
    %c0_i32_1 = arith.constant 0 : i32
    %c0_i32_2 = arith.constant 0 : i32
    return %c0_i32, %c0_i32_0, %c0_i32_1 : i32, i32, i32
  }
  func.func @transform_2(%arg0: i32, %arg1: i32) -> (i32, i32) {
    %c0_i32 = arith.constant 0 : i32
    %c0_i32_0 = arith.constant 0 : i32
    %c0_i32_1 = arith.constant 0 : i32
    return %c0_i32, %c0_i32_0 : i32, i32
  }
  func.func @transform_3(%arg0: i32, %arg1: i32) -> (i32, i32, i32) {
    %c0_i32 = arith.constant 0 : i32
    %c0_i32_0 = arith.constant 0 : i32
    return %arg0, %arg1, %c0_i32 : i32, i32, i32
  }
}

</mosaic_0001>

<bundles_post_ra>
// kernel: tpu_custom_call.1
= control target key start
LH: loop header
LB: loop body
LE: loop exit
PB: predicated region body
PF: predicated region fallthrough
CT: control target
= control target key end

     0   :  { %8 = vsyncpa [#allocation3], 0  ;;  %s16615_s0 = inlined_call_operand.vmem [shape: f32[2,2,10,18,4], index: 0, kind: input, shape index: {}]   ;;  %s16616_s1 = inlined_call_operand.vmem [shape: f32[9,4,128], index: 1, kind: input, shape index: {}]   ;;  %s16617_s2 = inlined_call_operand.vmem [shape: f32[1,128], index: 2, kind: input, shape index: {}]   ;;  %s16618_s3 = inlined_call_operand.hbm [shape: f32[2,256,128], index: 3, kind: output, shape index: {}]  }
   0x1   :  { %10 = vsyncpa [#allocation3 + $0x1], 0  ;;  %s13121_s12 = smov 0   ;;  %s13123_s13 = smov 0  }
   0x2   :  { %s13125_s14 = smov 0   ;;  %s13127_s15 = smov 0  }
   0x3   :  { %s13129_s16 = smov 0   ;;  %s13131_s17 = smov 0  }
   0x4   :  { %s13133_s18 = smov 0   ;;  %s13135_s19 = smov 0  }
   0x5 LB: > { %s10589_s20 = sadd.s32 4294967295, %s13096_s19   ;;  %s10590_s21 = sadd.s32 4294967294, %s13096_s19   ;;  %s13096_s19 = sphi %s13135_s19, %s16_s19   ;;  %s13092_s18 = sphi %s13133_s18, %s17881_s18   ;;  %s13088_s17 = sphi %s13131_s17, %s17880_s17   ;;  %s13084_s16 = sphi %s13129_s16, %s17879_s16   ;;  %s13080_s15 = sphi %s13127_s15, %s17878_s15   ;;  %s13076_s14 = sphi %s13125_s14, %s17877_s14   ;;  %s13072_s13 = sphi %s13123_s13, %s17876_s13   ;;  %s13068_s12 = sphi %s13121_s12, %s17875_s12  }
   0x6   : > { %s25_s22 = sadd.s32 1, %s13088_s17  ;;  %s28_s23 = sadd.s32 1, %s13092_s18 }
   0x7   : > { %p26_p0 = scmp.ge.s32.totalorder %s25_s22, 2  ;;  %p117_p1 = scmp.ne.s32.totalorder %s13076_s14, %s13072_s13 }
   0x8   : > { %p118_p2 = scmp.eq.s32.totalorder %s10589_s20, 3  ;;  %p123_p5 = scmp.ne.s32.totalorder %s13072_s13, %s13068_s12 }
   0x9   : > { %s17883_s22 = smov (%p26_p0, %s25_s22), 0  ;;  %s17885_s23 = smov (!%p26_p0, %s28_s23), %s13092_s18 }
   0xa   : > { %s103_s24 = ssub.s32 %s13088_s17, %s17883_s22  ;;  %p13172_p3 = por %p118_p2, %p117_p1 }
   0xb   : > { %p30_p4 = scmp.ge.s32.totalorder %s17885_s23, 2  ;;  %p124_p6 = scmp.eq.s32.totalorder %s10590_s21, 3 }
   0xc   : > { %p10593_p7 = scmp.ge.s32.totalorder %s13096_s19, 1  ;;  %p160_p9 = scmp.lt.s32.totalorder %s13096_s19, 5 }
   0xd   : > { %s17887_s23 = smov (%p30_p4, %s17885_s23), 0  ;;  %p13181_p8 = por %p124_p6, %p123_p5 }
   0xe   : > { %s102_s27 = ssub.s32 %s13092_s18, %s17887_s23  ;;  %s107_s28 = sadd.s32 1, %s13076_s14 }
   0xf   : > { %s104_s29 = sor.u32 %s103_s24, %s102_s27  ;;  %p161_p10 = pnand %p10593_p7, %p160_p9 }
  0x10   : > { %p105_p11 = scmp.eq.s32.totalorder %s104_s29, 0 }
  0x11   : > { %164 = sbr.rel (%p161_p10) target bundleno = 1125 (0x465), region = 32 }
  0x12   : > { %s13190_s30 = scalar_select %p105_p11, %s13076_s14, %s107_s28  }
  0x16   : > { %v229_v0 = vld [vmem:[%s16616_s1 + $0x4] sm:$0xf]  ;;  %vm335_vm0 = vcmask 1043456   ;;  %p188_p12 = scmp.lt.s32.totalorder %s13084_s16, 1  ;;  %p190_p13 = scmp.lt.s32.totalorder %s13080_s15, 1  ;;  %vm261_vm1 = vcmask 1046528  }
  0x17   : > { %v337_v1 = vsel %vm335_vm0, %v229_v0, 0  ;;  %v228_v3 = vld [vmem:[%s16616_s1] sm:$0xf]  ;;  %vm302_vm2 = vcmask 31744   ;;  %vm2556_vm3 = vcmask 1045504   ;;  %s10598_s8 = sshll.u32 %s13080_s15, 4 }
  0x18   : > { %v13198_v2 = vand.u32 4294901760, %v337_v1  ;;  %s189_s6 = scalar_select %p188_p12, %s13084_s16, 1  ;;  %v1463_v6 = vsel %vm335_vm0, %v228_v3, 0 }
  0x19   : > { %s191_s7 = scalar_select %p190_p13, %s13080_s15, 1  ;;  %v13222_v8 = vand.u32 4294901760, %v1463_v6 }
  0x1a   : > { %11521 = vmatprep.subr.mxu0 %v13198_v2  ;;  %v13207_v4 = vsub.f32 %v337_v1, %v13198_v2  ;;  %s12926_s10 = smul.u32 60, %s189_s6  ;;  %s10599_s9 = sshll.u32 %s13084_s16, 5 }
  0x1b   : > { %11522 = vmatpush3.msra.mxu0 %v13198_v2  ;;  %s12925_s11 = smul.u32 30, %s191_s7  ;;  %v13260_v27 = vsub.f32 %v1463_v6, %v13222_v8  ;;  %s13098_s29 = smov [#allocation2]  }
  0x1c   : > { %v13211_v5 = vand.u32 4294901760, %v13207_v4  ;;  %11573 = vmatprep.subr.mxu0 %v13207_v4 }
  0x1d   : > { %s194_s20 = sadd.s32 %s12926_s10, %s12925_s11  ;;  %s10501_s10 = sadd.s32 %s10599_s9, %s10598_s8 }
  0x1e   : > { %v599_v7 = vsub.f32 %v13207_v4, %v13211_v5  ;;  %s10595_s21 = sshll.u32 %s194_s20, 3  ;;  %s10600_s15 = sshll.u32 %s10501_s10, 7 }
  0x1f   : > { %s13220_s28 = scalar_lea.vmem %s16615_s0, %s10595_s21  ;;  %s16555_s21 = scalar_lea.hbm %s16618_s3, %s10600_s15 }
  0x20   : > { %v600_v9 = vand.u32 4294901760, %v599_v7  ;;  %v13225_v10 = vld [vmem:[%s13220_s28] sm:$0xff]  ;;  %v13228_v11 = vld [vmem:[%s13220_s28 + $0x8] sm:$0xff]  ;;  %v13231_v12 = vld [vmem:[%s13220_s28 + $0x10] sm:$0x3] }
  0x21   : > { %v262_v13 = vrot.slane %v13225_v10, 1  ;;  %v263_v14 = vrot.slane %v13228_v11, 1  ;;  %v265_v15 = vrot.slane %v13231_v12, 1  ;;  %v13237_v16 = vld [vmem:[%s13220_s28 + $0x18] sm:$0xff]  ;;  %v13240_v17 = vld [vmem:[%s13220_s28 + $0x20] sm:$0xff]  ;;  %v13251_v24 = vld [vmem:[%s13220_s28 + $0x30] sm:$0xff] }
  0x22   : > { %11547 = vmatprep.subr.mxu1 %v600_v9  ;;  %v267_v18 = vrot.slane %v13237_v16, 1  ;;  %v268_v19 = vrot.slane %v13240_v17, 1  ;;  %v13245_v20 = vld [vmem:[%s13220_s28 + $0x28] sm:$0x3]  ;;  %v13254_v25 = vld [vmem:[%s13220_s28 + $0x38] sm:$0xff]  ;;  %v272_v31 = vrot.slane %v13251_v24, 1 }
  0x23   : > { %17093 = vst [vmem:[#allocation5_spill] sm:$0xff] %v13245_v20  ;;  %v264_v21 = vsel %vm261_vm1, %v262_v13, %v263_v14  ;;  %11548 = vmatpush3.msra.mxu1 %v600_v9  ;;  %v266_v22 = vsel %vm261_vm1, %v263_v14, %v265_v15  ;;  %v270_v23 = vrot.slane %v13245_v20, 1  ;;  %17094 = vst [vmem:[#allocation6_spill] sm:$0xff] %v13254_v25  ;;  %v13257_v26 = vld [vmem:[%s13220_s28 + $0x40] sm:$0x3]  ;;  %v13268_v32 = vld [vmem:[%s13220_s28 + $0x48] sm:$0xff] }
  0x24   : > { %17095 = vst [vmem:[#allocation7_spill] sm:$0xff] %v13257_v26  ;;  %v303_v28 = vsel %vm302_vm2, %v264_v21, 0  ;;  %v305_v29 = vsel %vm302_vm2, %v266_v22, 0  ;;  %11599 = vmatprep.subr.mxu1 %v13198_v2  ;;  %v269_v30 = vsel %vm261_vm1, %v267_v18, %v268_v19  ;;  %17096 = vst [vmem:[#allocation8_spill] sm:$0xff] %v13268_v32  ;;  %v13277_v37 = vld [vmem:[%s13220_s28 + $0x50] sm:$0xff]  ;;  %v273_v40 = vrot.slane %v13254_v25, 1 }
  0x25   : > { %v13270_v33 = vand.u32 4294901760, %v303_v28  ;;  %v13272_v34 = vand.u32 4294901760, %v305_v29  ;;  %v307_v35 = vsel %vm302_vm2, %v269_v30, 0  ;;  %v271_v36 = vsel %vm261_vm1, %v268_v19, %v270_v23  ;;  %17097 = vst [vmem:[#allocation9_spill] sm:$0xff] %v13277_v37  ;;  %v13310_v54 = vld [vmem:[%s13220_s28 + $0x58] sm:$0x3] }
  0x26   : > { %v13279_v38 = vand.u32 4294901760, %v307_v35  ;;  %v309_v39 = vsel %vm302_vm2, %v271_v36, 0  ;;  %v275_v41 = vrot.slane %v13257_v26, 1  ;;  %v277_v45 = vrot.slane %v13268_v32, 1  ;;  %17102 = vst [vmem:[#allocation14_spill] sm:$0xff] %v13310_v54  ;;  %v13340_v6 = vld [vmem:[%s13220_s28 + $0x60] sm:$0xff] }
  0x27   : > { %v13285_v42 = vsub.f32 %v303_v28, %v13270_v33  ;;  %11549 = vmatprep.mubr.f32.mxu1 %v13270_v33  ;;  %v13289_v43 = vsub.f32 %v305_v29, %v13272_v34  ;;  %v13291_v44 = vand.u32 4294901760, %v309_v39  ;;  %v274_v47 = vsel %vm261_vm1, %v272_v31, %v273_v40  ;;  %17108 = vst [vmem:[#allocation20_spill] sm:$0xff] %v13340_v6  ;;  %v13349_v15 = vld [vmem:[%s13220_s28 + $0x68] sm:$0xff]  ;;  %v13352_v18 = vld [vmem:[%s13220_s28 + $0x70] sm:$0x3]  ;;  %v13363_v28 = vld [vmem:[%s13220_s28 + $0x78] sm:$0xff] }
  0x28   : > { %17098 = vst [vmem:[#allocation10_spill] sm:$0xff] %v13279_v38  ;;  %11550 = vmatmul.mubr.f32.vlgmr.msra.gmra.mxu1 %v13272_v34  ;;  %v13296_v46 = vsub.f32 %v307_v35, %v13279_v38  ;;  %v276_v48 = vsel %vm261_vm1, %v273_v40, %v275_v41  ;;  %v278_v49 = vrot.slane %v13277_v37, 1  ;;  %v311_v53 = vsel %vm302_vm2, %v274_v47, 0  ;;  %17110 = vst [vmem:[#allocation22_spill] sm:$0xff] %v13349_v15  ;;  %v13366_v29 = vld [vmem:[%s13220_s28 + $0x80] sm:$0xff] }
  0x29   : > { %17099 = vst [vmem:[#allocation11_spill] sm:$0xff] %v13291_v44  ;;  %v16620_v50 = vand.u32 4294901760, %v13285_v42  ;;  %v16619_v51 = vand.u32 4294901760, %v13289_v43  ;;  %11600 = vmatpush3.msra.mxu1 %v13198_v2  ;;  %11552 = vmatprep.mubr.f32.mxu1 %v13279_v38  ;;  %v13306_v52 = vsub.f32 %v309_v39, %v13291_v44  ;;  %v13315_v56 = vand.u32 4294901760, %v311_v53  ;;  %17111 = vst [vmem:[#allocation23_spill] sm:$0xff] %v13352_v18 }
  0x2a   : > { %17100 = vst [vmem:[#allocation12_spill] sm:$0xff] %v13296_v46  ;;  %v13313_v55 = vand.u32 4294901760, %v13296_v46  ;;  %v313_v57 = vsel %vm302_vm2, %v276_v48, 0  ;;  %v279_v58 = vsel %vm261_vm1, %v277_v45, %v278_v49  ;;  %11651 = vmatprep.subr.mxu1 %v13198_v2  ;;  %v280_v3 = vrot.slane %v13310_v54, 1  ;;  %17115 = vst [vmem:[#allocation27_spill] sm:$0xff] %v13363_v28 }
  0x2b   : > { %17101 = vst [vmem:[#allocation13_spill] sm:$0xff] %v13306_v52  ;;  %17104 = vst [vmem:[#allocation16_spill] sm:$0xff] %v13315_v56  ;;  %v408_v59 = vsub.f32 %v13285_v42, %v16620_v50  ;;  %v418_v60 = vsub.f32 %v13289_v43, %v16619_v51  ;;  %v13327_v61 = vand.u32 4294901760, %v13306_v52  ;;  %v13329_v62 = vand.u32 4294901760, %v313_v57 }
  0x2c   : > { %17103 = vst [vmem:[#allocation15_spill] sm:$0xff] %v13313_v55  ;;  %v428_v63 = vsub.f32 %v13296_v46, %v13313_v55  ;;  %11553 = vmatmul.mubr.f32.gmra.mxu1 %v13291_v44  ;;  %v13335_v0 = vsub.f32 %v311_v53, %v13315_v56  ;;  %v315_v1 = vsel %vm302_vm2, %v279_v58, 0  ;;  %v281_v23 = vsel %vm261_vm1, %v278_v49, %v280_v3 }
  0x2d   : > { %17105 = vst [vmem:[#allocation17_spill] sm:$0xff] %v13327_v61  ;;  %17106 = vst [vmem:[#allocation18_spill] sm:$0xff] %v13329_v62  ;;  %v409_v7 = vand.u32 4294901760, %v408_v59  ;;  %v419_v9 = vand.u32 4294901760, %v418_v60  ;;  %v438_v13 = vsub.f32 %v13306_v52, %v13327_v61  ;;  %11555 = vmatprep.mubr.f32.mxu1 %v13315_v56  ;;  %v13346_v14 = vsub.f32 %v313_v57, %v13329_v62  ;;  %v13402_v60 = vld [vmem:[%s13220_s28 + $0x88] sm:$0x3] }
  0x2e   : > { %17107 = vst [vmem:[#allocation19_spill] sm:$0xff] %v13335_v0  ;;  %v13354_v19 = vand.u32 4294901760, %v428_v63  ;;  %v13357_v21 = vand.u32 4294901760, %v13335_v0  ;;  %v13359_v22 = vand.u32 4294901760, %v315_v1  ;;  %17116 = vst [vmem:[#allocation28_spill] sm:$0xff] %v13366_v29  ;;  %v317_v35 = vsel %vm302_vm2, %v281_v23, 0 }
  0x2f   : > { %17109 = vst [vmem:[#allocation21_spill] sm:$0xff] %v13346_v14  ;;  %11523 = vmatprep.mubr.f32.mxu0 %v409_v7  ;;  %v13368_v30 = vand.u32 4294901760, %v438_v13  ;;  %v13371_v31 = vand.u32 4294901760, %v13346_v14  ;;  %v282_v36 = vrot.slane %v13340_v6, 1  ;;  %v13381_v41 = vand.u32 4294901760, %v317_v35  ;;  %17124 = vst [vmem:[#allocation36_spill] sm:$0xff] %v13402_v60 }
  0x30   : > { %17112 = vst [vmem:[#allocation24_spill] sm:$0xff] %v13354_v19  ;;  %17113 = vst [vmem:[#allocation25_spill] sm:$0xff] %v13357_v21  ;;  %11524 = vmatmul.mubr.f32.vlgmr.msra.gmra.mxu0 %v419_v9  ;;  %v448_v39 = vsub.f32 %v13335_v0, %v13357_v21  ;;  %11556 = vmatmul.mubr.f32.gmra.mxu1 %v13329_v62  ;;  %v13379_v40 = vsub.f32 %v315_v1, %v13359_v22  ;;  %v283_v45 = vrot.slane %v13349_v15, 1  ;;  %v13405_v63 = vld [vmem:[%s13220_s28 + $0x90] sm:$0xff] }
  0x31   : > { %17114 = vst [vmem:[#allocation26_spill] sm:$0xff] %v13359_v22  ;;  %17117 = vst [vmem:[#allocation29_spill] sm:$0xff] %v13368_v30  ;;  %11574 = vmatpush3.msra.mxu0 %v13207_v4  ;;  %11526 = vmatprep.mubr.f32.mxu0 %v13354_v19  ;;  %v458_v47 = vsub.f32 %v13346_v14, %v13371_v31  ;;  %v285_v48 = vrot.slane %v13352_v18, 1  ;;  %v287_v49 = vrot.slane %v13363_v28, 1  ;;  %v288_v53 = vrot.slane %v13366_v29, 1 }
  0x32   : > { %17118 = vst [vmem:[#allocation30_spill] sm:$0xff] %v13371_v31  ;;  %17119 = vst [vmem:[#allocation31_spill] sm:$0xff] %v13379_v40  ;;  %v13391_v57 = vand.u32 4294901760, %v448_v39  ;;  %v13394_v58 = vand.u32 4294901760, %v13379_v40  ;;  %11558 = vmatprep.mubr.f32.mxu1 %v13359_v22  ;;  %v13398_v4 = vsub.f32 %v317_v35, %v13381_v41  ;;  %v284_v59 = vsel %vm261_vm1, %v282_v36, %v283_v45  ;;  %v13424_v39 = vld [vmem:[%s13220_s28 + $0x98] sm:$0xff] }
  0x33   : > { %17120 = vst [vmem:[#allocation32_spill] sm:$0xff] %v13381_v41  ;;  %17125 = vst [vmem:[#allocation37_spill] sm:$0xff] %v13405_v63  ;;  %11625 = vmatprep.subr.mxu0 %v13211_v5  ;;  %v13408_v1 = vand.u32 4294901760, %v458_v47  ;;  %v319_v3 = vsel %vm302_vm2, %v284_v59, 0  ;;  %v286_v7 = vsel %vm261_vm1, %v283_v45, %v285_v48  ;;  %v289_v9 = vsel %vm261_vm1, %v287_v49, %v288_v53  ;;  %v13427_v47 = vld [vmem:[%s13220_s28 + $0xa0] sm:$0x3] }
  0x34   : > { %17121 = vst [vmem:[#allocation33_spill] sm:$0xff] %v13391_v57  ;;  %17122 = vst [vmem:[#allocation34_spill] sm:$0xff] %v13394_v58  ;;  %11527 = vmatmul.mubr.f32.gmra.mxu0 %v13368_v30  ;;  %v468_v13 = vsub.f32 %v13379_v40, %v13394_v58  ;;  %v13417_v23 = vand.u32 4294901760, %v13398_v4  ;;  %11559 = vmatmul.mubr.f32.gmra.mxu1 %v13381_v41  ;;  %v13420_v35 = vand.u32 4294901760, %v319_v3  ;;  %v321_v36 = vsel %vm302_vm2, %v286_v7, 0 }
  0x35   : > { %17123 = vst [vmem:[#allocation35_spill] sm:$0xff] %v13398_v4  ;;  %17126 = vst [vmem:[#allocation38_spill] sm:$0xff] %v13408_v1  ;;  %11529 = vmatprep.mubr.f32.mxu0 %v13391_v57  ;;  %v13430_v45 = vand.u32 4294901760, %v321_v36  ;;  %v323_v48 = vsel %vm302_vm2, %v289_v9, 0  ;;  %v290_v49 = vrot.slane %v13402_v60, 1  ;;  %v292_v59 = vrot.slane %v13405_v63, 1 }
  0x36   : > { %17127 = vst [vmem:[#allocation39_spill] sm:$0xff] %v13417_v23  ;;  %17128 = vst [vmem:[#allocation40_spill] sm:$0xff] %v13420_v35  ;;  %v13435_v51 = vand.u32 4294901760, %v468_v13  ;;  %v478_v50 = vsub.f32 %v13398_v4, %v13417_v23  ;;  %v13440_v7 = vsub.f32 %v319_v3, %v13420_v35  ;;  %11561 = vmatprep.mubr.f32.mxu1 %v13420_v35  ;;  %v13443_v30 = vand.u32 4294901760, %v323_v48 }
  0x37   : > { %17129 = vst [vmem:[#allocation41_spill] sm:$0xff] %v13424_v39  ;;  %17130 = vst [vmem:[#allocation42_spill] sm:$0xff] %v13427_v47  ;;  %v13446_v57 = vsub.f32 %v321_v36, %v13430_v45  ;;  %v291_v9 = vsel %vm261_vm1, %v288_v53, %v290_v49  ;;  %v293_v13 = vrot.slane %v13424_v39, 1  ;;  %v295_v19 = vrot.slane %v13427_v47, 1  ;;  %v13472_v47 = vld [vmem:[%s13220_s28 + $0xa8] sm:$0xff] }
  0x38   : > { %17131 = vst [vmem:[#allocation43_spill] sm:$0xff] %v13430_v45  ;;  %17132 = vst [vmem:[#allocation44_spill] sm:$0xff] %v13435_v51  ;;  %11530 = vmatmul.mubr.f32.gmra.mxu0 %v13408_v1  ;;  %v13452_v60 = vand.u32 4294901760, %v478_v50  ;;  %v13455_v3 = vand.u32 4294901760, %v13440_v7  ;;  %11562 = vmatmul.mubr.f32.gmra.mxu1 %v13430_v45  ;;  %v13459_v36 = vsub.f32 %v323_v48, %v13443_v30  ;;  %v325_v18 = vsel %vm302_vm2, %v291_v9, 0  ;;  %v13475_v48 = vld [vmem:[%s13220_s28 + $0xb0] sm:$0xff] }
  0x39   : > { %17133 = vst [vmem:[#allocation45_spill] sm:$0xff] %v13440_v7  ;;  %17134 = vst [vmem:[#allocation46_spill] sm:$0xff] %v13443_v30  ;;  %11532 = vmatprep.mubr.f32.mxu0 %v13435_v51  ;;  %v13464_v53 = vand.u32 4294901760, %v13446_v57  ;;  %11564 = vmatprep.mubr.f32.mxu1 %v13443_v30  ;;  %v13467_v50 = vand.u32 4294901760, %v325_v18  ;;  %v294_v49 = vsel %vm261_vm1, %v292_v59, %v293_v13  ;;  %v13494_v39 = vld [vmem:[%s13220_s28 + $0xb8] sm:$0x3] }
  0x3a   : > { %17135 = vst [vmem:[#allocation47_spill] sm:$0xff] %v13446_v57  ;;  %17136 = vst [vmem:[#allocation48_spill] sm:$0xff] %v13452_v60  ;;  %v296_v1 = vsel %vm261_vm1, %v293_v13, %v295_v19  ;;  %v488_v9 = vsub.f32 %v13440_v7, %v13455_v3  ;;  %v13480_v51 = vand.u32 4294901760, %v13459_v36  ;;  %v327_v54 = vsel %vm302_vm2, %v294_v49, 0 }
  0x3b   : > { %17137 = vst [vmem:[#allocation49_spill] sm:$0xff] %v13455_v3  ;;  %17138 = vst [vmem:[#allocation50_spill] sm:$0xff] %v13459_v36  ;;  %v329_v26 = vsel %vm302_vm2, %v296_v1, 0  ;;  %v498_v20 = vsub.f32 %v13446_v57, %v13464_v53  ;;  %v13487_v59 = vsub.f32 %v325_v18, %v13467_v50  ;;  %v13489_v19 = vand.u32 4294901760, %v327_v54 }
  0x3c   : > { %17139 = vst [vmem:[#allocation51_spill] sm:$0xff] %v13464_v53  ;;  %17140 = vst [vmem:[#allocation52_spill] sm:$0xff] %v13467_v50  ;;  %v13491_v13 = vand.u32 4294901760, %v329_v26  ;;  %11533 = vmatmul.mubr.f32.gmra.mxu0 %v13452_v60  ;;  %v13497_v63 = vand.u32 4294901760, %v488_v9  ;;  %v508_v49 = vsub.f32 %v13459_v36, %v13480_v51  ;;  %11565 = vmatmul.mubr.f32.gmra.mxu1 %v13467_v50  ;;  %v297_v1 = vrot.slane %v13472_v47, 1 }
  0x3d   : > { %17141 = vst [vmem:[#allocation53_spill] sm:$0xff] %v13472_v47  ;;  %17142 = vst [vmem:[#allocation54_spill] sm:$0xff] %v13475_v48  ;;  %v298_v18 = vrot.slane %v13475_v48, 1  ;;  %v13504_v29 = vand.u32 4294901760, %v498_v20  ;;  %v13507_v28 = vand.u32 4294901760, %v13487_v59  ;;  %v13510_v15 = vsub.f32 %v327_v54, %v13489_v19  ;;  %11567 = vmatprep.mubr.f32.mxu1 %v13489_v19 }
  0x3e   : > { %17143 = vst [vmem:[#allocation55_spill] sm:$0xff] %v13480_v51  ;;  %17144 = vst [vmem:[#allocation56_spill] sm:$0xff] %v13487_v59  ;;  %v13514_v9 = vsub.f32 %v329_v26, %v13491_v13  ;;  %11535 = vmatprep.mubr.f32.mxu0 %v13497_v63  ;;  %v13517_v60 = vand.u32 4294901760, %v508_v49  ;;  %v300_v20 = vrot.slane %v13494_v39, 1  ;;  %v13522_v48 = vand.u32 4294901760, %v13260_v27 }
  0x3f   : > { %17145 = vst [vmem:[#allocation57_spill] sm:$0xff] %v13489_v19  ;;  %17146 = vst [vmem:[#allocation58_spill] sm:$0xff] %v13491_v13  ;;  %v299_v47 = vsel %vm261_vm1, %v297_v1, %v298_v18  ;;  %v518_v54 = vsub.f32 %v13487_v59, %v13507_v28  ;;  %v13527_v6 = vand.u32 4294901760, %v13510_v15 }
  0x40   : > { %17147 = vst [vmem:[#allocation59_spill] sm:$0xff] %v13494_v39  ;;  %17148 = vst [vmem:[#allocation60_spill] sm:$0xff] %v13497_v63  ;;  %v13530_v26 = vand.u32 4294901760, %v13514_v9  ;;  %v331_v63 = vsel %vm302_vm2, %v299_v47, 0  ;;  %11536 = vmatmul.mubr.f32.gmra.mxu0 %v13504_v29  ;;  %11568 = vmatmul.mubr.f32.gmra.mxu1 %v13491_v13  ;;  %v301_v1 = vsel %vm261_vm1, %v298_v18, %v300_v20 }
  0x41   : > { %17149 = vst [vmem:[#allocation61_spill] sm:$0xff] %v13504_v29  ;;  %17150 = vst [vmem:[#allocation62_spill] sm:$0xff] %v13507_v28  ;;  %v13535_v49 = vand.u32 4294901760, %v331_v63  ;;  %11538 = vmatprep.mubr.f32.mxu0 %v13517_v60  ;;  %v13539_v39 = vand.u32 4294901760, %v518_v54  ;;  %v528_v37 = vsub.f32 %v13510_v15, %v13527_v6  ;;  %v333_v47 = vsel %vm302_vm2, %v301_v1, 0 }
  0x42   : > { %17151 = vst [vmem:[#allocation63_spill] sm:$0xff] %v13510_v15  ;;  %17152 = vst [vmem:[#allocation64_spill] sm:$0xff] %v13514_v9  ;;  %v538_v32 = vsub.f32 %v13514_v9, %v13530_v26  ;;  %v13550_v25 = vand.u32 4294901760, %v333_v47  ;;  %v1725_v18 = vsub.f32 %v13260_v27, %v13522_v48 }
  0x43   : > { %17153 = vst [vmem:[#allocation65_spill] sm:$0xff] %v13517_v60  ;;  %17154 = vst [vmem:[#allocation66_spill] sm:$0xff] %v13522_v48  ;;  %v13547_v29 = vsub.f32 %v331_v63, %v13535_v49  ;;  %11570 = vmatprep.mubr.f32.mxu1 %v13535_v49  ;;  %v13554_v20 = vand.u32 4294901760, %v528_v37  ;;  %v17165_v63 = vand.u32 4294901760, %v13285_v42 }
  0x44   : > { %17155 = vst [vmem:[#allocation67_spill] sm:$0xff] %v13527_v6  ;;  %17156 = vst [vmem:[#allocation68_spill] sm:$0xff] %v13530_v26  ;;  %11539 = vmatmul.mubr.f32.gmra.mxu0 %v13539_v39  ;;  %v13557_v54 = vand.u32 4294901760, %v538_v32  ;;  %v13563_v1 = vsub.f32 %v333_v47, %v13550_v25  ;;  %11571 = vmatmul.mubr.f32.gmra.mxu1 %v13550_v25  ;;  %v1726_v32 = vand.u32 4294901760, %v1725_v18  ;;  %v1434_v18 = vsel %vm302_vm2, %v13237_v16, 0 }
  0x45   : > { %17157 = vst [vmem:[#allocation69_spill] sm:$0xff] %v13535_v49  ;;  %17158 = vst [vmem:[#allocation70_spill] sm:$0xff] %v13539_v39  ;;  %v13560_v60 = vand.u32 4294901760, %v13547_v29  ;;  %11541 = vmatprep.mubr.f32.mxu0 %v13554_v20  ;;  %11601 = vmatprep.mubr.f32.mxu1 %v17165_v63 }
  0x46   : > { %17159 = vst [vmem:[#allocation71_spill] sm:$0xff] %v13547_v29  ;;  %17160 = vst [vmem:[#allocation72_spill] sm:$0xff] %v13550_v25  ;;  %v13572_v39 = vand.u32 4294901760, %v13563_v1  ;;  %v17168_v25 = vand.u32 4294901760, %v13289_v43 }
  0x47   : > { %17161 = vst [vmem:[#allocation73_spill] sm:$0xff] %v13554_v20  ;;  %17162 = vst [vmem:[#allocation74_spill] sm:$0xff] %v13557_v54  ;;  %v548_v37 = vsub.f32 %v13547_v29, %v13560_v60  ;;  %v17202_v20 = vld [vmem:[#allocation37_spill] sm:$0xff] }
  0x48   : > { %17163 = vst [vmem:[#allocation75_spill] sm:$0xff] %v13560_v60  ;;  %17164 = vst [vmem:[#allocation76_spill] sm:$0xff] %v13563_v1  ;;  %11542 = vmatmul.mubr.f32.gmra.mxu0 %v13557_v54  ;;  %v558_v47 = vsub.f32 %v13563_v1, %v13572_v39  ;;  %11602 = vmatmul.mubr.f32.vlgmr.msra.gmra.mxu1 %v17168_v25  ;;  %v2558_v25 = vrot.slane %v13228_v11, 2 }
  0x49   : > { %17166 = vst [vmem:[#allocation77_spill] sm:$0xff] %v13572_v39  ;;  %v13575_v48 = vand.u32 4294901760, %v548_v37  ;;  %11652 = vmatpush3.msra.mxu1 %v13198_v2  ;;  %11604 = vmatprep.mubr.f32.mxu1 %v13313_v55  ;;  %v2560_v2 = vrot.slane %v13231_v12, 2 }
  0x4a   : > { %v13584_v63 = vand.u32 4294901760, %v558_v47  ;;  %11703 = vmatprep.subr.mxu1 %v1726_v32  ;;  %v1438_v47 = vsel %vm302_vm2, %v13251_v24, 0 }
  0x4b   : > { %17167 = vst [vmem:[#allocation78_spill] sm:$0xff] %v13575_v48  ;;  %11544 = vmatprep.mubr.f32.mxu0 %v13575_v48  ;;  %v13621_v12 = vsel %vm2556_vm3, %v2558_v25, %v2560_v2 }
  0x4c   : > { %17169 = vst [vmem:[#allocation79_spill] sm:$0xff] %v13584_v63  ;;  %11545 = vmatmul.mubr.f32.gmra.mxu0 %v13584_v63  ;;  %11605 = vmatmul.mubr.f32.gmra.mxu1 %v13327_v61 }
  0x4d   : > { %11575 = vmatprep.mubr.f32.mxu0 %v13285_v42  ;;  %11607 = vmatprep.mubr.f32.mxu1 %v13357_v21 }
  0x50   : > { %11576 = vmatmul.mubr.f32.vlgmr.msra.gmra.mxu0 %v13289_v43  ;;  %11608 = vmatmul.mubr.f32.gmra.mxu1 %v13371_v31 }
  0x51   : > { %11626 = vmatpush3.msra.mxu0 %v13211_v5  ;;  %11578 = vmatprep.mubr.f32.mxu0 %v13296_v46  ;;  %v2557_v5 = vrot.slane %v13225_v10, 2 }
  0x52   : > { %11610 = vmatprep.mubr.f32.mxu1 %v13394_v58  ;;  %11677 = vmatprep.subr.mxu0 %v13222_v8 }
  0x53   : > { %v13616_v42 = vsel %vm2556_vm3, %v2557_v5, %v2558_v25  ;;  %v17172_v25 = vld [vmem:[#allocation6_spill] sm:$0xff] }
  0x54   : > { %11579 = vmatmul.mubr.f32.gmra.mxu0 %v13306_v52  ;;  %11611 = vmatmul.mubr.f32.gmra.mxu1 %v13417_v23  ;;  %v17193_v23 = vld [vmem:[#allocation27_spill] sm:$0xff] }
  0x55   : > { %11581 = vmatprep.mubr.f32.mxu0 %v13335_v0  ;;  %11613 = vmatprep.mubr.f32.mxu1 %v13455_v3  ;;  %v17192_v0 = vld [vmem:[#allocation22_spill] sm:$0xff]  ;;  %v1450_v52 = vsel %vm302_vm2, %v17193_v23, 0 }
  0x56   : > { %v13769_v48 = vand.u32 4294901760, %v1450_v52 }
  0x58   : > { %11582 = vmatmul.mubr.f32.gmra.mxu0 %v13346_v14  ;;  %11614 = vmatmul.mubr.f32.gmra.mxu1 %v13464_v53  ;;  %17200 = vst [vmem:[#allocation98_spill] sm:$0xff] %v13769_v48 }
  0x59   : > { %11584 = vmatprep.mubr.f32.mxu0 %v13379_v40  ;;  %11616 = vmatprep.mubr.f32.mxu1 %v13480_v51 }
  0x5c   : > { %11585 = vmatmul.mubr.f32.gmra.mxu0 %v13398_v4  ;;  %11617 = vmatmul.mubr.f32.gmra.mxu1 %v13507_v28 }
  0x5d   : > { %11587 = vmatprep.mubr.f32.mxu0 %v13440_v7  ;;  %11619 = vmatprep.mubr.f32.mxu1 %v13527_v6 }
  0x60   : > { %11588 = vmatmul.mubr.f32.gmra.mxu0 %v13446_v57  ;;  %11620 = vmatmul.mubr.f32.gmra.mxu1 %v13530_v26  ;;  %v17180_v57 = vld [vmem:[#allocation9_spill] sm:$0xff] }
  0x61   : > { %11590 = vmatprep.mubr.f32.mxu0 %v13459_v36  ;;  %11622 = vmatprep.mubr.f32.mxu1 %v13560_v60  ;;  %v17178_v60 = vld [vmem:[#allocation72_spill] sm:$0xff] }
  0x62   : > { %v17184_v36 = vld [vmem:[#allocation20_spill] sm:$0xff] }
  0x64   : > { %11591 = vmatmul.mubr.f32.gmra.mxu0 %v13487_v59  ;;  %11623 = vmatmul.mubr.f32.gmra.mxu1 %v13572_v39  ;;  %v13688_v39 = vand.u32 4294901760, %v1438_v47 }
  0x65   : > { %11593 = vmatprep.mubr.f32.mxu0 %v13510_v15  ;;  %11653 = vmatprep.mubr.f32.mxu1 %v13270_v33 }
  0x66   : > { %v13711_v28 = vsub.f32 %v1438_v47, %v13688_v39 }
  0x68   : > { %11594 = vmatmul.mubr.f32.gmra.mxu0 %v13514_v9  ;;  %11654 = vmatmul.mubr.f32.vlgmr.msra.gmra.mxu1 %v13272_v34  ;;  %v1444_v9 = vsel %vm302_vm2, %v17180_v57, 0  ;;  %17183 = vst [vmem:[#allocation85_spill] sm:$0xff] %v13711_v28  ;;  %v13738_v3 = vand.u32 4294901760, %v13711_v28 }
  0x69   : > { %11596 = vmatprep.mubr.f32.mxu0 %v13547_v29  ;;  %11704 = vmatpush3.msra.mxu1 %v1726_v32  ;;  %v1436_v32 = vsel %vm302_vm2, %v13240_v17, 0  ;;  %v13721_v40 = vand.u32 4294901760, %v1444_v9 }
  0x6a   : > { %11656 = vmatprep.mubr.f32.mxu1 %v13279_v38  ;;  %11755 = vmatprep.subr.mxu1 %v13222_v8  ;;  %v13676_v5 = vand.u32 4294901760, %v1436_v32  ;;  %17191 = vst [vmem:[#allocation91_spill] sm:$0xff] %v13738_v3 }
  0x6b   : > { %17187 = vst [vmem:[#allocation88_spill] sm:$0xff] %v13721_v40  ;;  %v13753_v46 = vsub.f32 %v1444_v9, %v13721_v40  ;;  %v1574_v9 = vsub.f32 %v13711_v28, %v13738_v3 }
  0x6c   : > { %11597 = vmatmul.mubr.f32.gmra.mxu0 %v13563_v1  ;;  %11657 = vmatmul.mubr.f32.gmra.mxu1 %v13291_v44  ;;  %17171 = vst [vmem:[#allocation81_spill] sm:$0xff] %v13676_v5  ;;  %v17173_v1 = vld [vmem:[#allocation8_spill] sm:$0xff]  ;;  %v13698_v26 = vsub.f32 %v1436_v32, %v13676_v5  ;;  %v1446_v32 = vsel %vm302_vm2, %v17184_v36, 0 }
  0x6d   : > { %11627 = vmatprep.mubr.f32.mxu0 %v13270_v33  ;;  %11659 = vmatprep.mubr.f32.mxu1 %v13315_v56  ;;  %v1430_v33 = vsel %vm302_vm2, %v13225_v10, 0  ;;  %v1442_v29 = vsel %vm302_vm2, %v17173_v1, 0  ;;  %17175 = vst [vmem:[#allocation8_spill] sm:$0xff] %v13688_v39  ;;  %v13731_v14 = vand.u32 4294901760, %v1446_v32  ;;  %17196 = vst [vmem:[#allocation94_spill] sm:$0xff] %v13753_v46 }
  0x6e   : > { %v13652_v43 = vand.u32 4294901760, %v1430_v33  ;;  %v13692_v59 = vand.u32 4294901760, %v1442_v29  ;;  %17179 = vst [vmem:[#allocation84_spill] sm:$0xff] %v13698_v26  ;;  %v13729_v47 = vand.u32 4294901760, %v13698_v26 }
  0x6f   : > { %17190 = vst [vmem:[#allocation90_spill] sm:$0xff] %v13731_v14  ;;  %v13760_v61 = vsub.f32 %v1446_v32, %v13731_v14 }
  0x70   : > { %11628 = vmatmul.mubr.f32.vlgmr.msra.gmra.mxu0 %v13272_v34  ;;  %11660 = vmatmul.mubr.f32.gmra.mxu1 %v13329_v62  ;;  %v1432_v34 = vsel %vm302_vm2, %v13228_v11, 0  ;;  %v13663_v10 = vsub.f32 %v1430_v33, %v13652_v43  ;;  %v13665_v11 = vand.u32 4294901760, %v1434_v18  ;;  %v1440_v33 = vsel %vm302_vm2, %v17172_v25, 0  ;;  %17177 = vst [vmem:[#allocation83_spill] sm:$0xff] %v13692_v59  ;;  %17189 = vst [vmem:[#allocation89_spill] sm:$0xff] %v13729_v47 }
  0x71   : > { %11678 = vmatpush3.msra.mxu0 %v13222_v8  ;;  %11630 = vmatprep.mubr.f32.mxu0 %v13279_v38  ;;  %v13656_v37 = vand.u32 4294901760, %v1432_v34  ;;  %v13719_v51 = vsub.f32 %v1442_v29, %v13692_v59  ;;  %v1564_v21 = vsub.f32 %v13698_v26, %v13729_v47  ;;  %17197 = vst [vmem:[#allocation95_spill] sm:$0xff] %v13760_v61 }
  0x72   : > { %11662 = vmatprep.mubr.f32.mxu1 %v13359_v22  ;;  %11729 = vmatprep.subr.mxu0 %v13260_v27  ;;  %17170 = vst [vmem:[#allocation80_spill] sm:$0xff] %v13665_v11  ;;  %v13686_v15 = vsub.f32 %v1434_v18, %v13665_v11  ;;  %v17181_v18 = vand.u32 4294901760, %v13663_v10 }
  0x73   : > { %v13674_v2 = vsub.f32 %v1432_v34, %v13656_v37  ;;  %v13690_v34 = vand.u32 4294901760, %v1440_v33  ;;  %17186 = vst [vmem:[#allocation87_spill] sm:$0xff] %v13719_v51  ;;  %v13750_v58 = vand.u32 4294901760, %v13719_v51 }
  0x74   : > { %11631 = vmatmul.mubr.f32.gmra.mxu0 %v13291_v44  ;;  %11663 = vmatmul.mubr.f32.gmra.mxu1 %v13381_v41  ;;  %17174 = vst [vmem:[#allocation6_spill] sm:$0xff] %v13686_v15  ;;  %v1534_v6 = vsub.f32 %v13663_v10, %v17181_v18  ;;  %v13708_v7 = vand.u32 4294901760, %v13686_v15 }
  0x75   : > { %11633 = vmatprep.mubr.f32.mxu0 %v13315_v56  ;;  %11665 = vmatprep.mubr.f32.mxu1 %v13420_v35  ;;  %17176 = vst [vmem:[#allocation82_spill] sm:$0xff] %v13690_v34  ;;  %v13716_v4 = vsub.f32 %v1440_v33, %v13690_v34  ;;  %v17188_v18 = vand.u32 4294901760, %v13674_v2  ;;  %17195 = vst [vmem:[#allocation93_spill] sm:$0xff] %v13750_v58 }
  0x76   : > { %17182 = vst [vmem:[#allocation9_spill] sm:$0xff] %v13708_v7  ;;  %v1535_v33 = vand.u32 4294901760, %v1534_v6  ;;  %v1554_v29 = vsub.f32 %v13686_v15, %v13708_v7 }
  0x77   : > { %17185 = vst [vmem:[#allocation86_spill] sm:$0xff] %v13716_v4  ;;  %v1544_v53 = vsub.f32 %v13674_v2, %v17188_v18  ;;  %v1448_v18 = vsel %vm302_vm2, %v17192_v0, 0  ;;  %v13747_v6 = vand.u32 4294901760, %v13716_v4 }
  0x78   : > { %11634 = vmatmul.mubr.f32.gmra.mxu0 %v13329_v62  ;;  %11666 = vmatmul.mubr.f32.gmra.mxu1 %v13430_v45  ;;  %v13762_v63 = vand.u32 4294901760, %v1448_v18  ;;  %v13764_v55 = vand.u32 4294901760, %v1554_v29  ;;  %v13780_v29 = vand.u32 4294901760, %v13753_v46  ;;  %v17213_v62 = vld [vmem:[#allocation66_spill] sm:$0xff] }
  0x79   : > { %11636 = vmatprep.mubr.f32.mxu0 %v13359_v22  ;;  %11668 = vmatprep.mubr.f32.mxu1 %v13443_v30  ;;  %17194 = vst [vmem:[#allocation92_spill] sm:$0xff] %v13747_v6  ;;  %v1545_v31 = vand.u32 4294901760, %v1544_v53  ;;  %v17201_v53 = vld [vmem:[#allocation28_spill] sm:$0xff]  ;;  %v1584_v32 = vsub.f32 %v13716_v4, %v13747_v6 }
  0x7a   : > { %17198 = vst [vmem:[#allocation96_spill] sm:$0xff] %v13762_v63  ;;  %17199 = vst [vmem:[#allocation97_spill] sm:$0xff] %v13764_v55  ;;  %v1452_v54 = vsel %vm302_vm2, %v17201_v53, 0 }
  0x7b   : > { %17203 = vst [vmem:[#allocation99_spill] sm:$0xff] %v13780_v29 }
  0x7c   : > { %11637 = vmatmul.mubr.f32.gmra.mxu0 %v13381_v41  ;;  %11669 = vmatmul.mubr.f32.gmra.mxu1 %v13467_v50  ;;  %v17212_v41 = vld [vmem:[#allocation53_spill] sm:$0xff] }
  0x7d   : > { %11639 = vmatprep.mubr.f32.mxu0 %v13420_v35  ;;  %11671 = vmatprep.mubr.f32.mxu1 %v13489_v19  ;;  %v17211_v35 = vld [vmem:[#allocation41_spill] sm:$0xff]  ;;  %v1458_v22 = vsel %vm302_vm2, %v17212_v41, 0  ;;  %v17222_v41 = vld [vmem:[#allocation54_spill] sm:$0xff] }
  0x80   : > { %11640 = vmatmul.mubr.f32.gmra.mxu0 %v13430_v45  ;;  %11672 = vmatmul.mubr.f32.gmra.mxu1 %v13491_v13 }
  0x81   : > { %11642 = vmatprep.mubr.f32.mxu0 %v13443_v30  ;;  %11674 = vmatprep.mubr.f32.mxu1 %v13535_v49  ;;  %v230_v30 = vld [vmem:[%s16616_s1 + $0x8] sm:$0xf] }
  0x84   : > { %11643 = vmatmul.mubr.f32.gmra.mxu0 %v13467_v50  ;;  %11675 = vmatmul.mubr.f32.gmra.mxu1 %v17178_v60  ;;  %v13791_v50 = vand.u32 4294901760, %v1452_v54 }
  0x85   : > { %11645 = vmatprep.mubr.f32.mxu0 %v13489_v19  ;;  %11705 = vmatprep.mubr.f32.mxu1 %v13652_v43  ;;  %v13789_v19 = vsub.f32 %v1448_v18, %v13762_v63  ;;  %v1456_v18 = vsel %vm302_vm2, %v17211_v35, 0  ;;  %v1460_v35 = vsel %vm302_vm2, %v17222_v41, 0 }
  0x86   : > { %17207 = vst [vmem:[#allocation103_spill] sm:$0xff] %v13791_v50  ;;  %v13856_v23 = vand.u32 4294901760, %v1460_v35 }
  0x87   : > { %17206 = vst [vmem:[#allocation102_spill] sm:$0xff] %v13789_v19  ;;  %v13823_v38 = vand.u32 4294901760, %v13789_v19 }
  0x88   : > { %11646 = vmatmul.mubr.f32.gmra.mxu0 %v13491_v13  ;;  %11706 = vmatmul.mubr.f32.vlgmr.msra.gmra.mxu1 %v13656_v37  ;;  %v13786_v13 = vand.u32 4294901760, %v13760_v61  ;;  %17226 = vst [vmem:[#allocation117_spill] sm:$0xff] %v13856_v23 }
  0x89   : > { %11648 = vmatprep.mubr.f32.mxu0 %v13535_v49  ;;  %11756 = vmatpush3.msra.mxu1 %v13222_v8  ;;  %v13782_v49 = vand.u32 4294901760, %v1564_v21  ;;  %v13798_v21 = vand.u32 4294901760, %v1574_v9  ;;  %v2630_v9 = vsel %vm335_vm0, %v230_v30, 0  ;;  %17216 = vst [vmem:[#allocation108_spill] sm:$0xff] %v13823_v38 }
  0x8a   : > { %11708 = vmatprep.mubr.f32.mxu1 %v13665_v11  ;;  %11807 = vmatprep.subr.mxu1 %v13222_v8  ;;  %17205 = vst [vmem:[#allocation101_spill] sm:$0xff] %v13786_v13  ;;  %v1614_v44 = vsub.f32 %v13760_v61, %v13786_v13 }
  0x8b   : > { %17204 = vst [vmem:[#allocation100_spill] sm:$0xff] %v13782_v49  ;;  %17208 = vst [vmem:[#allocation104_spill] sm:$0xff] %v13798_v21 }
  0x8c   : > { %11649 = vmatmul.mubr.f32.gmra.mxu0 %v17178_v60  ;;  %11709 = vmatmul.mubr.f32.gmra.mxu1 %v13676_v5  ;;  %v1454_v60 = vsel %vm302_vm2, %v17202_v20, 0  ;;  %v13842_v20 = vand.u32 4294901760, %v2630_v9  ;;  %v13859_v41 = vand.u32 4294901760, %v1614_v44 }
  0x8d   : > { %11679 = vmatprep.mubr.f32.mxu0 %v1535_v33  ;;  %11711 = vmatprep.mubr.f32.mxu1 %v13688_v39  ;;  %v1594_v33 = vsub.f32 %v13719_v51, %v13750_v58  ;;  %v13803_v45 = vand.u32 4294901760, %v1454_v60 }
  0x8e   : > { %17227 = vst [vmem:[#allocation118_spill] sm:$0xff] %v13859_v41 }
  0x8f   : > { %17210 = vst [vmem:[#allocation106_spill] sm:$0xff] %v13803_v45  ;;  %v13813_v56 = vand.u32 4294901760, %v1594_v33  ;;  %v13828_v33 = vand.u32 4294901760, %v1456_v18 }
  0x90   : > { %11680 = vmatmul.mubr.f32.vlgmr.msra.gmra.mxu0 %v1545_v31  ;;  %11712 = vmatmul.mubr.f32.gmra.mxu1 %v13690_v34  ;;  %v13801_v31 = vsub.f32 %v1450_v52, %v13769_v48  ;;  %v1604_v52 = vsub.f32 %v13753_v46, %v13780_v29 }
  0x91   : > { %11730 = vmatpush3.msra.mxu0 %v13260_v27  ;;  %11682 = vmatprep.mubr.f32.mxu0 %v13764_v55  ;;  %v13811_v27 = vand.u32 4294901760, %v1584_v32  ;;  %17215 = vst [vmem:[#allocation107_spill] sm:$0xff] %v13813_v56  ;;  %v13826_v32 = vsub.f32 %v1452_v54, %v13791_v50  ;;  %17218 = vst [vmem:[#allocation110_spill] sm:$0xff] %v13828_v33  ;;  %v13838_v55 = vand.u32 4294901760, %v1458_v22 }
  0x92   : > { %17209 = vst [vmem:[#allocation105_spill] sm:$0xff] %v13801_v31  ;;  %11714 = vmatprep.mubr.f32.mxu1 %v13692_v59  ;;  %11781 = vmatprep.subr.mxu0 %v17213_v62  ;;  %v13833_v30 = vand.u32 4294901760, %v13801_v31  ;;  %v13844_v54 = vand.u32 4294901760, %v1604_v52 }
  0x93   : > { %17214 = vst [vmem:[#allocation66_spill] sm:$0xff] %v13811_v27  ;;  %17217 = vst [vmem:[#allocation109_spill] sm:$0xff] %v13826_v32  ;;  %v13851_v53 = vand.u32 4294901760, %v13826_v32  ;;  %v13868_v0 = vsub.f32 %v1458_v22, %v13838_v55 }
  0x94   : > { %11683 = vmatmul.mubr.f32.gmra.mxu0 %v13782_v49  ;;  %11715 = vmatmul.mubr.f32.gmra.mxu1 %v13721_v40  ;;  %17219 = vst [vmem:[#allocation111_spill] sm:$0xff] %v13833_v30  ;;  %v13836_v49 = vsub.f32 %v1454_v60, %v13803_v45  ;;  %17221 = vst [vmem:[#allocation113_spill] sm:$0xff] %v13838_v55  ;;  %v13854_v60 = vsub.f32 %v1456_v18, %v13828_v33 }
  0x95   : > { %11685 = vmatprep.mubr.f32.mxu0 %v13798_v21  ;;  %11717 = vmatprep.mubr.f32.mxu1 %v13731_v14  ;;  %17223 = vst [vmem:[#allocation114_spill] sm:$0xff] %v13844_v54  ;;  %v1624_v21 = vsub.f32 %v13789_v19, %v13823_v38  ;;  %17224 = vst [vmem:[#allocation115_spill] sm:$0xff] %v13851_v53  ;;  %v1634_v52 = vsub.f32 %v13801_v31, %v13833_v30 }
  0x96   : > { %17220 = vst [vmem:[#allocation112_spill] sm:$0xff] %v13836_v49  ;;  %17225 = vst [vmem:[#allocation116_spill] sm:$0xff] %v13854_v60  ;;  %v13871_v18 = vsub.f32 %v2630_v9, %v13842_v20  ;;  %v1644_v44 = vsub.f32 %v13826_v32, %v13851_v53 }
  0x97   : > { %17229 = vst [vmem:[#allocation120_spill] sm:$0xff] %v13868_v0  ;;  %v13874_v36 = vand.u32 4294901760, %v1624_v21  ;;  %v13886_v22 = vand.u32 4294901760, %v1634_v52  ;;  %v13892_v21 = vand.u32 4294901760, %v13868_v0 }
  0x98   : > { %11686 = vmatmul.mubr.f32.gmra.mxu0 %v13811_v27  ;;  %11718 = vmatmul.mubr.f32.gmra.mxu1 %v13762_v63  ;;  %v13865_v27 = vand.u32 4294901760, %v13836_v49 }
  0x99   : > { %11688 = vmatprep.mubr.f32.mxu0 %v13813_v56  ;;  %11720 = vmatprep.mubr.f32.mxu1 %v13769_v48  ;;  %17230 = vst [vmem:[#allocation121_spill] sm:$0xff] %v13874_v36  ;;  %v13880_v56 = vand.u32 4294901760, %v13854_v60  ;;  %v13883_v48 = vsub.f32 %v1460_v35, %v13856_v23  ;;  %17233 = vst [vmem:[#allocation124_spill] sm:$0xff] %v13886_v22 }
  0x9a   : > { %17228 = vst [vmem:[#allocation119_spill] sm:$0xff] %v13865_v27  ;;  %v1654_v9 = vsub.f32 %v13836_v49, %v13865_v27  ;;  %17234 = vst [vmem:[#allocation125_spill] sm:$0xff] %v13892_v21 }
  0x9b   : > { %17231 = vst [vmem:[#allocation122_spill] sm:$0xff] %v13880_v56  ;;  %17232 = vst [vmem:[#allocation123_spill] sm:$0xff] %v13883_v48  ;;  %v1664_v35 = vsub.f32 %v13854_v60, %v13880_v56  ;;  %v13904_v52 = vand.u32 4294901760, %v13883_v48 }
  0x9c   : > { %11689 = vmatmul.mubr.f32.gmra.mxu0 %v13844_v54  ;;  %11721 = vmatmul.mubr.f32.gmra.mxu1 %v13791_v50  ;;  %v13895_v54 = vand.u32 4294901760, %v13871_v18  ;;  %v13898_v50 = vand.u32 4294901760, %v1644_v44 }
  0x9d   : > { %11691 = vmatprep.mubr.f32.mxu0 %v13859_v41  ;;  %11723 = vmatprep.mubr.f32.mxu1 %v13803_v45  ;;  %17237 = vst [vmem:[#allocation128_spill] sm:$0xff] %v13904_v52  ;;  %v13907_v41 = vand.u32 4294901760, %v1654_v9  ;;  %v1674_v45 = vsub.f32 %v13868_v0, %v13892_v21 }
  0x9e   : > { %17235 = vst [vmem:[#allocation126_spill] sm:$0xff] %v13895_v54  ;;  %17236 = vst [vmem:[#allocation127_spill] sm:$0xff] %v13898_v50  ;;  %v2892_v44 = vsub.f32 %v13871_v18, %v13895_v54 }
  0x9f   : > { %17238 = vst [vmem:[#allocation129_spill] sm:$0xff] %v13907_v41  ;;  %v13921_v9 = vand.u32 4294901760, %v1674_v45 }
  0xa0   : > { %11692 = vmatmul.mubr.f32.gmra.mxu0 %v13874_v36  ;;  %11724 = vmatmul.mubr.f32.gmra.mxu1 %v13828_v33  ;;  %v13915_v36 = vand.u32 4294901760, %v1664_v35  ;;  %v1684_v33 = vsub.f32 %v13883_v48, %v13904_v52  ;;  %v17243_v35 = vand.u32 4294901760, %v13674_v2 }
  0xa1   : > { %11694 = vmatprep.mubr.f32.mxu0 %v13886_v22  ;;  %11726 = vmatprep.mubr.f32.mxu1 %v13838_v55  ;;  %17240 = vst [vmem:[#allocation131_spill] sm:$0xff] %v13921_v9  ;;  %v17241_v22 = vand.u32 4294901760, %v13663_v10  ;;  %v2893_v55 = vand.u32 4294901760, %v2892_v44  ;;  %v2573_v44 = vrot.slane %v17180_v57, 2 }
  0xa2   : > { %17239 = vst [vmem:[#allocation130_spill] sm:$0xff] %v13915_v36  ;;  %v13926_v54 = vand.u32 4294901760, %v1684_v33 }
  0xa4   : > { %11695 = vmatmul.mubr.f32.gmra.mxu0 %v13898_v50  ;;  %11727 = vmatmul.mubr.f32.gmra.mxu1 %v13856_v23  ;;  %17242 = vst [vmem:[#allocation132_spill] sm:$0xff] %v13926_v54 }
  0xa5   : > { %11697 = vmatprep.mubr.f32.mxu0 %v13907_v41  ;;  %11757 = vmatprep.mubr.f32.mxu1 %v17241_v22  ;;  %v2599_v22 = vsel %vm302_vm2, %v13621_v12, 0  ;;  %v17248_v12 = vld [vmem:[#allocation103_spill] sm:$0xff] }
  0xa8   : > { %11698 = vmatmul.mubr.f32.gmra.mxu0 %v13915_v36  ;;  %11758 = vmatmul.mubr.f32.vlgmr.msra.gmra.mxu1 %v17243_v35 }
  0xa9   : > { %11700 = vmatprep.mubr.f32.mxu0 %v13921_v9  ;;  %11808 = vmatpush3.msra.mxu1 %v13222_v8  ;;  %v2562_v8 = vrot.slane %v13237_v16, 2  ;;  %v2568_v16 = vrot.slane %v17172_v25, 2 }
  0xaa   : > { %11760 = vmatprep.mubr.f32.mxu1 %v13708_v7  ;;  %11859 = vmatprep.subr.mxu1 %v2893_v55 }
  0xac   : > { %11701 = vmatmul.mubr.f32.gmra.mxu0 %v13926_v54  ;;  %11761 = vmatmul.mubr.f32.gmra.mxu1 %v13729_v47  ;;  %v17284_v54 = vld [vmem:[#allocation54_spill] sm:$0xff] }
  0xad   : > { %11731 = vmatprep.mubr.f32.mxu0 %v13663_v10  ;;  %11763 = vmatprep.mubr.f32.mxu1 %v13738_v3  ;;  %v2567_v10 = vrot.slane %v13251_v24, 2  ;;  %v17246_v24 = vld [vmem:[#allocation98_spill] sm:$0xff]  ;;  %v2593_v7 = vrot.slane %v17284_v54, 2 }
  0xb0   : > { %11732 = vmatmul.mubr.f32.vlgmr.msra.gmra.mxu0 %v13674_v2  ;;  %11764 = vmatmul.mubr.f32.gmra.mxu1 %v13747_v6 }
  0xb1   : > { %11782 = vmatpush3.msra.mxu0 %v17213_v62  ;;  %11734 = vmatprep.mubr.f32.mxu0 %v13686_v15  ;;  %v2597_v62 = vsel %vm302_vm2, %v13616_v42, 0  ;;  %v2572_v42 = vrot.slane %v17173_v1, 2 }
  0xb2   : > { %11766 = vmatprep.mubr.f32.mxu1 %v13750_v58  ;;  %11833 = vmatprep.subr.mxu0 %v13842_v20  ;;  %v13993_v33 = vand.u32 4294901760, %v2597_v62  ;;  %v17281_v58 = vld [vmem:[#allocation42_spill] sm:$0xff] }
  0xb3   : > { %v2590_v15 = vrot.slane %v17281_v58, 2 }
  0xb4   : > { %11735 = vmatmul.mubr.f32.gmra.mxu0 %v13698_v26  ;;  %11767 = vmatmul.mubr.f32.gmra.mxu1 %v13780_v29  ;;  %v14010_v57 = vsub.f32 %v2597_v62, %v13993_v33  ;;  %v17253_v62 = vld [vmem:[#allocation22_spill] sm:$0xff] }
  0xb5   : > { %11737 = vmatprep.mubr.f32.mxu0 %v13711_v28  ;;  %11769 = vmatprep.mubr.f32.mxu1 %v13786_v13  ;;  %v17274_v13 = vld [vmem:[#allocation41_spill] sm:$0xff] }
  0xb6   : > { %v2588_v28 = vrot.slane %v17274_v13, 2 }
  0xb8   : > { %11738 = vmatmul.mubr.f32.gmra.mxu0 %v13716_v4  ;;  %11770 = vmatmul.mubr.f32.gmra.mxu1 %v13823_v38  ;;  %v17273_v4 = vld [vmem:[#allocation37_spill] sm:$0xff] }
  0xb9   : > { %11740 = vmatprep.mubr.f32.mxu0 %v13719_v51  ;;  %11772 = vmatprep.mubr.f32.mxu1 %v13833_v30  ;;  %v17271_v30 = vld [vmem:[#allocation36_spill] sm:$0xff] }
  0xba   : > { %v2585_v51 = vrot.slane %v17271_v30, 2 }
  0xbc   : > { %11741 = vmatmul.mubr.f32.gmra.mxu0 %v13753_v46  ;;  %11773 = vmatmul.mubr.f32.gmra.mxu1 %v13851_v53 }
  0xbd   : > { %11743 = vmatprep.mubr.f32.mxu0 %v13760_v61  ;;  %11775 = vmatprep.mubr.f32.mxu1 %v13865_v27  ;;  %v17264_v61 = vand.u32 4294901760, %v14010_v57 }
  0xc0   : > { %11744 = vmatmul.mubr.f32.gmra.mxu0 %v13789_v19  ;;  %11776 = vmatmul.mubr.f32.gmra.mxu1 %v13880_v56  ;;  %v17263_v19 = vld [vmem:[#allocation28_spill] sm:$0xff] }
  0xc1   : > { %11746 = vmatprep.mubr.f32.mxu0 %v13801_v31  ;;  %11778 = vmatprep.mubr.f32.mxu1 %v13892_v21  ;;  %v2583_v27 = vrot.slane %v17263_v19, 2 }
  0xc3   : > { %v2586_v26 = vsel %vm2556_vm3, %v2583_v27, %v2585_v51 }
  0xc4   : > { %11747 = vmatmul.mubr.f32.gmra.mxu0 %v13826_v32  ;;  %11779 = vmatmul.mubr.f32.gmra.mxu1 %v13904_v52 }
  0xc5   : > { %11749 = vmatprep.mubr.f32.mxu0 %v13836_v49  ;;  %11809 = vmatprep.mubr.f32.mxu1 %v13652_v43  ;;  %v2578_v49 = vrot.slane %v17253_v62, 2  ;;  %v17260_v62 = vld [vmem:[#allocation23_spill] sm:$0xff] }
  0xc6   : > { %v2580_v21 = vrot.slane %v17260_v62, 2  ;;  %v2701_v62 = vsub.f32 %v14010_v57, %v17264_v61 }
  0xc8   : > { %11750 = vmatmul.mubr.f32.gmra.mxu0 %v13854_v60  ;;  %11810 = vmatmul.mubr.f32.vlgmr.msra.gmra.mxu1 %v13656_v37  ;;  %v2581_v61 = vsel %vm2556_vm3, %v2578_v49, %v2580_v21 }
  0xc9   : > { %11752 = vmatprep.mubr.f32.mxu0 %v13868_v0  ;;  %11860 = vmatpush3.msra.mxu1 %v2893_v55  ;;  %v2563_v55 = vrot.slane %v13240_v17, 2  ;;  %v17245_v17 = vld [vmem:[#allocation7_spill] sm:$0xff]  ;;  %v2615_v30 = vsel %vm302_vm2, %v2581_v61, 0 }
  0xca   : > { %11812 = vmatprep.mubr.f32.mxu1 %v13665_v11  ;;  %11911 = vmatprep.subr.mxu1 %v13842_v20  ;;  %v2570_v2 = vrot.slane %v17245_v17, 2  ;;  %v14112_v6 = vand.u32 4294901760, %v2615_v30 }
  0xcb   : > { %v2564_v45 = vsel %vm2556_vm3, %v2562_v8, %v2563_v55  ;;  %v14003_v8 = vand.u32 4294901760, %v2599_v22 }
  0xcc   : > { %11753 = vmatmul.mubr.f32.gmra.mxu0 %v13883_v48  ;;  %11813 = vmatmul.mubr.f32.gmra.mxu1 %v13676_v5  ;;  %v2601_v25 = vsel %vm302_vm2, %v2564_v45, 0  ;;  %v2571_v17 = vsel %vm2556_vm3, %v2568_v16, %v2570_v2  ;;  %v2574_v48 = vsel %vm2556_vm3, %v2572_v42, %v2573_v44  ;;  %v17250_v45 = vld [vmem:[#allocation14_spill] sm:$0xff]  ;;  %v17252_v2 = vld [vmem:[#allocation20_spill] sm:$0xff]  ;;  %17282 = vst [vmem:[#allocation42_spill] sm:$0xff] %v14112_v6 }
  0xcd   : > { %11783 = vmatprep.mubr.f32.mxu0 %v13652_v43  ;;  %11815 = vmatprep.mubr.f32.mxu1 %v13688_v39  ;;  %v17244_v43 = vld [vmem:[#allocation5_spill] sm:$0xff]  ;;  %v14012_v1 = vand.u32 4294901760, %v2601_v25  ;;  %v2575_v0 = vrot.slane %v17250_v45, 2  ;;  %v2577_v60 = vrot.slane %v17252_v2, 2  ;;  %v14024_v52 = vsub.f32 %v2599_v22, %v14003_v8  ;;  %v17254_v45 = vld [vmem:[#allocation110_spill] sm:$0xff] }
  0xce   : > { %17247 = vst [vmem:[#allocation5_spill] sm:$0xff] %v14003_v8  ;;  %v2609_v42 = vsel %vm302_vm2, %v2574_v48, 0  ;;  %v17257_v2 = vld [vmem:[#allocation113_spill] sm:$0xff] }
  0xcf   : > { %17249 = vst [vmem:[#allocation7_spill] sm:$0xff] %v14012_v1  ;;  %v14043_v31 = vand.u32 4294901760, %v2609_v42  ;;  %v2579_v32 = vsel %vm2556_vm3, %v2577_v60, %v2578_v49  ;;  %v17272_v38 = vand.u32 4294901760, %v14024_v52  ;;  %v2702_v49 = vand.u32 4294901760, %v2701_v62 }
  0xd0   : > { %11784 = vmatmul.mubr.f32.vlgmr.msra.gmra.mxu0 %v13656_v37  ;;  %11816 = vmatmul.mubr.f32.gmra.mxu1 %v13690_v34  ;;  %v2565_v37 = vrot.slane %v17244_v43, 2  ;;  %v2569_v43 = vsel %vm2556_vm3, %v2567_v10, %v2568_v16  ;;  %v2607_v16 = vsel %vm302_vm2, %v2571_v17, 0  ;;  %v2576_v17 = vsel %vm2556_vm3, %v2573_v44, %v2575_v0 }
  0xd1   : > { %11834 = vmatpush3.msra.mxu0 %v13842_v20  ;;  %11786 = vmatprep.mubr.f32.mxu0 %v13665_v11  ;;  %v2605_v10 = vsel %vm302_vm2, %v2569_v43, 0  ;;  %v14040_v48 = vand.u32 4294901760, %v2607_v16  ;;  %17261 = vst [vmem:[#allocation23_spill] sm:$0xff] %v14043_v31  ;;  %v2611_v44 = vsel %vm302_vm2, %v2576_v17, 0  ;;  %v14072_v0 = vsub.f32 %v2609_v42, %v14043_v31 }
  0xd2   : > { %11818 = vmatprep.mubr.f32.mxu1 %v13692_v59  ;;  %11885 = vmatprep.subr.mxu0 %v13871_v18  ;;  %v2566_v35 = vsel %vm2556_vm3, %v2563_v55, %v2565_v37  ;;  %v17251_v55 = vld [vmem:[#allocation106_spill] sm:$0xff]  ;;  %v14038_v22 = vand.u32 4294901760, %v2605_v10  ;;  %v14074_v46 = vand.u32 4294901760, %v2611_v44 }
  0xd3   : > { %v2603_v37 = vsel %vm302_vm2, %v2566_v35, 0  ;;  %v14031_v35 = vsub.f32 %v2601_v25, %v14012_v1  ;;  %17259 = vst [vmem:[#allocation133_spill] sm:$0xff] %v14040_v48  ;;  %v17262_v25 = vld [vmem:[#allocation27_spill] sm:$0xff]  ;;  %v14067_v17 = vsub.f32 %v2607_v16, %v14040_v48  ;;  %17269 = vst [vmem:[#allocation136_spill] sm:$0xff] %v14072_v0  ;;  %v2587_v16 = vrot.slane %v17273_v4, 2 }
  0xd4   : > { %11787 = vmatmul.mubr.f32.gmra.mxu0 %v13676_v5  ;;  %11819 = vmatmul.mubr.f32.gmra.mxu1 %v13721_v40  ;;  %v14033_v43 = vand.u32 4294901760, %v2603_v37  ;;  %17258 = vst [vmem:[#allocation22_spill] sm:$0xff] %v14038_v22  ;;  %v2582_v56 = vrot.slane %v17262_v25, 2  ;;  %v14064_v19 = vsub.f32 %v2605_v10, %v14038_v22  ;;  %v2613_v25 = vsel %vm302_vm2, %v2579_v32, 0  ;;  %17270 = vst [vmem:[#allocation137_spill] sm:$0xff] %v14074_v46 }
  0xd5   : > { %11789 = vmatprep.mubr.f32.mxu0 %v13688_v39  ;;  %11821 = vmatprep.mubr.f32.mxu1 %v13731_v14  ;;  %17255 = vst [vmem:[#allocation14_spill] sm:$0xff] %v14031_v35  ;;  %v14056_v53 = vand.u32 4294901760, %v14031_v35  ;;  %17268 = vst [vmem:[#allocation135_spill] sm:$0xff] %v14067_v17  ;;  %v2711_v10 = vsub.f32 %v14024_v52, %v17272_v38  ;;  %v14099_v13 = vand.u32 4294901760, %v14067_v17  ;;  %v14104_v61 = vand.u32 4294901760, %v14072_v0 }
  0xd6   : > { %17256 = vst [vmem:[#allocation20_spill] sm:$0xff] %v14033_v43  ;;  %v14059_v60 = vsub.f32 %v2603_v37, %v14033_v43  ;;  %17267 = vst [vmem:[#allocation134_spill] sm:$0xff] %v14064_v19  ;;  %v2584_v37 = vsel %vm2556_vm3, %v2582_v56, %v2583_v27  ;;  %v14088_v56 = vand.u32 4294901760, %v2613_v25  ;;  %v14096_v4 = vand.u32 4294901760, %v14064_v19 }
  0xd7   : > { %17265 = vst [vmem:[#allocation27_spill] sm:$0xff] %v14056_v53  ;;  %v2721_v38 = vsub.f32 %v14031_v35, %v14056_v53  ;;  %17278 = vst [vmem:[#allocation138_spill] sm:$0xff] %v14099_v13  ;;  %v2617_v42 = vsel %vm302_vm2, %v2584_v37, 0  ;;  %v14107_v29 = vsub.f32 %v2611_v44, %v14074_v46  ;;  %v2589_v3 = vsel %vm2556_vm3, %v2587_v16, %v2588_v28  ;;  %v17283_v37 = vld [vmem:[#allocation53_spill] sm:$0xff] }
  0xd8   : > { %11790 = vmatmul.mubr.f32.gmra.mxu0 %v13690_v34  ;;  %11822 = vmatmul.mubr.f32.gmra.mxu1 %v13762_v63  ;;  %17266 = vst [vmem:[#allocation28_spill] sm:$0xff] %v14059_v60  ;;  %v14086_v21 = vand.u32 4294901760, %v14059_v60  ;;  %17276 = vst [vmem:[#allocation37_spill] sm:$0xff] %v14088_v56  ;;  %v2592_v47 = vrot.slane %v17283_v37, 2  ;;  %v2712_v9 = vand.u32 4294901760, %v2711_v10  ;;  %v14122_v51 = vsub.f32 %v2613_v25, %v14088_v56 }
  0xd9   : > { %11792 = vmatprep.mubr.f32.mxu0 %v13692_v59  ;;  %11824 = vmatprep.mubr.f32.mxu1 %v17246_v24  ;;  %17277 = vst [vmem:[#allocation41_spill] sm:$0xff] %v14096_v4  ;;  %17279 = vst [vmem:[#allocation139_spill] sm:$0xff] %v14104_v61  ;;  %v14124_v58 = vand.u32 4294901760, %v2617_v42  ;;  %v14126_v27 = vand.u32 4294901760, %v2721_v38  ;;  %v2741_v54 = vsub.f32 %v14064_v19, %v14096_v4  ;;  %v2619_v16 = vsel %vm302_vm2, %v2586_v26, 0  ;;  %v17289_v38 = vld [vmem:[#allocation59_spill] sm:$0xff] }
  0xda   : > { %17275 = vst [vmem:[#allocation36_spill] sm:$0xff] %v14086_v21  ;;  %17280 = vst [vmem:[#allocation140_spill] sm:$0xff] %v14107_v29  ;;  %v2731_v44 = vsub.f32 %v14059_v60, %v14086_v21  ;;  %v2751_v10 = vsub.f32 %v14067_v17, %v14099_v13  ;;  %v14135_v41 = vand.u32 4294901760, %v14107_v29  ;;  %v2621_v25 = vsel %vm302_vm2, %v2589_v3, 0 }
  0xdb   : > { %17285 = vst [vmem:[#allocation53_spill] sm:$0xff] %v14122_v51  ;;  %17286 = vst [vmem:[#allocation54_spill] sm:$0xff] %v14124_v58  ;;  %v2761_v50 = vsub.f32 %v14072_v0, %v14104_v61  ;;  %v14150_v3 = vand.u32 4294901760, %v14122_v51 }
  0xdc   : > { %11793 = vmatmul.mubr.f32.gmra.mxu0 %v13721_v40  ;;  %11825 = vmatmul.mubr.f32.gmra.mxu1 %v17248_v12  ;;  %17287 = vst [vmem:[#allocation141_spill] sm:$0xff] %v14126_v27  ;;  %17288 = vst [vmem:[#allocation142_spill] sm:$0xff] %v14135_v41  ;;  %v14146_v26 = vand.u32 4294901760, %v2731_v44  ;;  %v14166_v44 = vand.u32 4294901760, %v2621_v25 }
  0xdd   : > { %11795 = vmatprep.mubr.f32.mxu0 %v13731_v14  ;;  %11827 = vmatprep.mubr.f32.mxu1 %v17251_v55  ;;  %17292 = vst [vmem:[#allocation144_spill] sm:$0xff] %v14150_v3  ;;  %v14179_v14 = vand.u32 4294901760, %v2761_v50 }
  0xde   : > { %17291 = vst [vmem:[#allocation143_spill] sm:$0xff] %v14146_v26  ;;  %17296 = vst [vmem:[#allocation148_spill] sm:$0xff] %v14166_v44 }
  0xe0   : > { %11796 = vmatmul.mubr.f32.gmra.mxu0 %v13762_v63  ;;  %11828 = vmatmul.mubr.f32.gmra.mxu1 %v17254_v45 }
  0xe1   : > { %11798 = vmatprep.mubr.f32.mxu0 %v17246_v24  ;;  %11830 = vmatprep.mubr.f32.mxu1 %v17257_v2  ;;  %v14169_v24 = vand.u32 4294901760, %v2751_v10 }
  0xe3   : > { %17297 = vst [vmem:[#allocation149_spill] sm:$0xff] %v14169_v24 }
  0xe4   : > { %11799 = vmatmul.mubr.f32.gmra.mxu0 %v17248_v12  ;;  %11831 = vmatmul.mubr.f32.gmra.mxu1 %v13856_v23 }
  0xe5   : > { %11801 = vmatprep.mubr.f32.mxu0 %v17251_v55  ;;  %11861 = vmatprep.mubr.f32.mxu1 %v13993_v33 }
  0xe8   : > { %11802 = vmatmul.mubr.f32.gmra.mxu0 %v17254_v45  ;;  %v11551_v32 = vpop.f32.mrf.mxu1  ;;  %11862 = vmatmul.mubr.f32.vlgmr.msra.gmra.mxu1 %v14003_v8  ;;  %v2594_v45 = vsel %vm2556_vm3, %v2592_v47, %v2593_v7 }
  0xe9   : > { %11804 = vmatprep.mubr.f32.mxu0 %v17257_v2  ;;  %11912 = vmatpush3.msra.mxu1 %v13842_v20  ;;  %v14143_v2 = vsub.f32 %v2615_v30, %v14112_v6  ;;  %v231_v30 = vld [vmem:[%s16616_s1 + $0xc] sm:$0xf] }
  0xea   : > { %v637_v62 = vpop.f32.mrf.mxu1  ;;  %11864 = vmatprep.mubr.f32.mxu1 %v14012_v1  ;;  %11963 = vmatprep.subr.mxu1 %v13842_v20  ;;  %v3746_v10 = vsel %vm335_vm0, %v231_v30, 0  ;;  %v14202_v30 = vsub.f32 %v2621_v25, %v14166_v44 }
  0xeb   : > { %17290 = vst [vmem:[#allocation59_spill] sm:$0xff] %v14143_v2  ;;  %v14207_v5 = vand.u32 4294901760, %v3746_v10 }
  0xec   : > { %11805 = vmatmul.mubr.f32.gmra.mxu0 %v13856_v23  ;;  %v11554_v36 = vpop.f32.mrf.mxu1  ;;  %11865 = vmatmul.mubr.f32.gmra.mxu1 %v14033_v43  ;;  %v2595_v23 = vrot.slane %v17289_v38, 2  ;;  %17304 = vst [vmem:[#allocation154_spill] sm:$0xff] %v14202_v30 }
  0xed   : > { %11835 = vmatprep.mubr.f32.mxu0 %v2702_v49  ;;  %11867 = vmatprep.mubr.f32.mxu1 %v14038_v22  ;;  %v2591_v49 = vsel %vm2556_vm3, %v2588_v28, %v2590_v15  ;;  %v14153_v15 = vsub.f32 %v2617_v42, %v14124_v58  ;;  %v14155_v28 = vand.u32 4294901760, %v2619_v16 }
  0xee   : > { %v649_v37 = vpop.f32.mrf.mxu1  ;;  %v2623_v38 = vsel %vm302_vm2, %v2591_v49, 0  ;;  %v14182_v49 = vand.u32 4294901760, %v14143_v2 }
  0xef   : > { %17293 = vst [vmem:[#allocation145_spill] sm:$0xff] %v14153_v15  ;;  %17294 = vst [vmem:[#allocation146_spill] sm:$0xff] %v14155_v28  ;;  %v14193_v50 = vsub.f32 %v2619_v16, %v14155_v28 }
  0xf0   : > { %v11525_v55 = vpop.f32.mrf.mxu0  ;;  %11836 = vmatmul.mubr.f32.vlgmr.msra.gmra.mxu0 %v2712_v9  ;;  %v11557_v12 = vpop.f32.mrf.mxu1  ;;  %11868 = vmatmul.mubr.f32.gmra.mxu1 %v14040_v48  ;;  %v14164_v9 = vand.u32 4294901760, %v2741_v54  ;;  %17300 = vst [vmem:[#allocation150_spill] sm:$0xff] %v14182_v49 }
  0xf1   : > { %v14160_v47 = vadd.f32 %v11551_v32, %v11525_v55  ;;  %11886 = vmatpush3.msra.mxu0 %v13871_v18  ;;  %11838 = vmatprep.mubr.f32.mxu0 %v14126_v27  ;;  %v2771_v55 = vsub.f32 %v14107_v29, %v14135_v41  ;;  %v2625_v32 = vsel %vm302_vm2, %v2594_v45, 0  ;;  %v2596_v18 = vsel %vm2556_vm3, %v2593_v7, %v2595_v23  ;;  %v17298_v27 = vld [vmem:[#allocation126_spill] sm:$0xff] }
  0xf2   : > { %17295 = vst [vmem:[#allocation147_spill] sm:$0xff] %v14164_v9  ;;  %v411_v42 = vpop.f32.mrf.mxu0  ;;  %v661_v63 = vpop.f32.mrf.mxu1  ;;  %11870 = vmatprep.mubr.f32.mxu1 %v14043_v31  ;;  %11937 = vmatprep.subr.mxu0 %v17298_v27  ;;  %17299 = vst [vmem:[#allocation126_spill] sm:$0xff] %v14179_v14  ;;  %v2781_v23 = vsub.f32 %v14122_v51, %v14150_v3  ;;  %v14190_v7 = vand.u32 4294901760, %v14153_v15  ;;  %v14195_v45 = vand.u32 4294901760, %v2623_v38 }
  0xf3   : > { %v14177_v54 = vadd.f32 %v637_v62, %v411_v42  ;;  %17302 = vst [vmem:[#allocation152_spill] sm:$0xff] %v14193_v50  ;;  %v14204_v42 = vand.u32 4294901760, %v2625_v32  ;;  %v14211_v11 = vand.u32 4294901760, %v2771_v55 }
  0xf4   : > { %v11528_v40 = vpop.f32.mrf.mxu0  ;;  %11839 = vmatmul.mubr.f32.gmra.mxu0 %v14146_v26  ;;  %v11560_v59 = vpop.f32.mrf.mxu1  ;;  %11871 = vmatmul.mubr.f32.gmra.mxu1 %v14074_v46  ;;  %17301 = vst [vmem:[#allocation151_spill] sm:$0xff] %v14190_v7  ;;  %17303 = vst [vmem:[#allocation153_spill] sm:$0xff] %v14195_v45  ;;  %v2627_v26 = vsel %vm302_vm2, %v2596_v18, 0  ;;  %v14216_v25 = vand.u32 4294901760, %v2781_v23  ;;  %v14220_v18 = vand.u32 4294901760, %v14193_v50  ;;  %v2801_v55 = vsub.f32 %v14153_v15, %v14190_v7 }
  0xf5   : > { %v14197_v62 = vadd.f32 %v11554_v36, %v11528_v40  ;;  %11841 = vmatprep.mubr.f32.mxu0 %v14164_v9  ;;  %11873 = vmatprep.mubr.f32.mxu1 %v14088_v56  ;;  %17305 = vst [vmem:[#allocation155_spill] sm:$0xff] %v14204_v42  ;;  %17306 = vst [vmem:[#allocation156_spill] sm:$0xff] %v14211_v11  ;;  %v2791_v40 = vsub.f32 %v14143_v2, %v14182_v49  ;;  %v14234_v23 = vand.u32 4294901760, %v14202_v30 }
  0xf6   : > { %v431_v34 = vpop.f32.mrf.mxu0  ;;  %v673_v39 = vpop.f32.mrf.mxu1  ;;  %17307 = vst [vmem:[#allocation157_spill] sm:$0xff] %v14216_v25  ;;  %17308 = vst [vmem:[#allocation158_spill] sm:$0xff] %v14220_v18  ;;  %v14223_v56 = vsub.f32 %v2623_v38, %v14195_v45  ;;  %v14240_v46 = vsub.f32 %v3746_v10, %v14207_v5 }
  0xf7   : > { %v14209_v16 = vadd.f32 %v649_v37, %v431_v34  ;;  %v14225_v34 = vand.u32 4294901760, %v2627_v26  ;;  %17311 = vst [vmem:[#allocation161_spill] sm:$0xff] %v14234_v23 }
  0xf8   : > { %v11531_v36 = vpop.f32.mrf.mxu0  ;;  %11842 = vmatmul.mubr.f32.gmra.mxu0 %v14169_v24  ;;  %v11563_v9 = vpop.f32.mrf.mxu1  ;;  %11874 = vmatmul.mubr.f32.gmra.mxu1 %v14112_v6  ;;  %17309 = vst [vmem:[#allocation159_spill] sm:$0xff] %v14223_v56  ;;  %v14237_v24 = vsub.f32 %v2625_v32, %v14204_v42  ;;  %17313 = vst [vmem:[#allocation163_spill] sm:$0xff] %v14240_v46  ;;  %v14251_v32 = vand.u32 4294901760, %v14223_v56  ;;  %v14268_v22 = vand.u32 4294901760, %v14240_v46 }
  0xf9   : > { %17310 = vst [vmem:[#allocation160_spill] sm:$0xff] %v14225_v34  ;;  %v14227_v37 = vadd.f32 %v11557_v12, %v11531_v36  ;;  %11844 = vmatprep.mubr.f32.mxu0 %v14179_v14  ;;  %11876 = vmatprep.mubr.f32.mxu1 %v14124_v58  ;;  %v14245_v14 = vand.u32 4294901760, %v2791_v40  ;;  %v2811_v58 = vsub.f32 %v14193_v50, %v14220_v18 }
  0xfa   : > { %17312 = vst [vmem:[#allocation162_spill] sm:$0xff] %v14237_v24  ;;  %v451_v6 = vpop.f32.mrf.mxu0  ;;  %v685_v38 = vpop.f32.mrf.mxu1  ;;  %17315 = vst [vmem:[#allocation165_spill] sm:$0xff] %v14251_v32  ;;  %v14254_v48 = vsub.f32 %v2627_v26, %v14225_v34  ;;  %v14265_v40 = vand.u32 4294901760, %v14237_v24  ;;  %v4008_v1 = vsub.f32 %v14240_v46, %v14268_v22 }
  0xfb   : > { %v14242_v12 = vadd.f32 %v661_v63, %v451_v6  ;;  %17314 = vst [vmem:[#allocation164_spill] sm:$0xff] %v14245_v14  ;;  %v14259_v63 = vand.u32 4294901760, %v2801_v55  ;;  %v2821_v6 = vsub.f32 %v14202_v30, %v14234_v23  ;;  %17319 = vst [vmem:[#allocation169_spill] sm:$0xff] %v14268_v22  ;;  %v14273_v55 = vand.u32 4294901760, %v2811_v58 }
  0xfc   : > { %v11534_v36 = vpop.f32.mrf.mxu0  ;;  %11845 = vmatmul.mubr.f32.gmra.mxu0 %v14211_v11  ;;  %v11566_v31 = vpop.f32.mrf.mxu1  ;;  %11877 = vmatmul.mubr.f32.gmra.mxu1 %v14155_v28  ;;  %17316 = vst [vmem:[#allocation166_spill] sm:$0xff] %v14254_v48  ;;  %17318 = vst [vmem:[#allocation168_spill] sm:$0xff] %v14265_v40 }
  0xfd   : > { %v14256_v10 = vadd.f32 %v11560_v59, %v11534_v36  ;;  %11847 = vmatprep.mubr.f32.mxu0 %v14216_v25  ;;  %17317 = vst [vmem:[#allocation167_spill] sm:$0xff] %v14259_v63  ;;  %11879 = vmatprep.mubr.f32.mxu1 %v14166_v44  ;;  %17320 = vst [vmem:[#allocation170_spill] sm:$0xff] %v14273_v55  ;;  %v2831_v25 = vsub.f32 %v14223_v56, %v14251_v32  ;;  %v14279_v44 = vand.u32 4294901760, %v14254_v48 }
  0xfe   : > { %v471_v11 = vpop.f32.mrf.mxu0  ;;  %v697_v28 = vpop.f32.mrf.mxu1 }
  0xff   : > { %v14270_v26 = vadd.f32 %v673_v39, %v471_v11  ;;  %17321 = vst [vmem:[#allocation171_spill] sm:$0xff] %v14279_v44  ;;  %v14284_v39 = vand.u32 4294901760, %v2821_v6  ;;  %v2841_v11 = vsub.f32 %v14237_v24, %v14265_v40  ;;  %v2851_v6 = vsub.f32 %v14254_v48, %v14279_v44 }
 0x100   : > { %v11537_v59 = vpop.f32.mrf.mxu0  ;;  %11848 = vmatmul.mubr.f32.gmra.mxu0 %v14245_v14  ;;  %v11569_v36 = vpop.f32.mrf.mxu1  ;;  %11880 = vmatmul.mubr.f32.gmra.mxu1 %v14195_v45 }
 0x101   : > { %v14281_v43 = vadd.f32 %v11563_v9, %v11537_v59  ;;  %11850 = vmatprep.mubr.f32.mxu0 %v14259_v63  ;;  %17322 = vst [vmem:[#allocation172_spill] sm:$0xff] %v14284_v39  ;;  %11882 = vmatprep.mubr.f32.mxu1 %v14204_v42  ;;  %v14294_v9 = vand.u32 4294901760, %v2831_v25  ;;  %v14302_v42 = vand.u32 4294901760, %v2841_v11  ;;  %v14311_v48 = vand.u32 4294901760, %v2851_v6 }
 0x102   : > { %v491_v58 = vpop.f32.mrf.mxu0  ;;  %v709_v14 = vpop.f32.mrf.mxu1 }
 0x103   : > { %v14291_v45 = vadd.f32 %v685_v38, %v491_v58  ;;  %17323 = vst [vmem:[#allocation173_spill] sm:$0xff] %v14294_v9  ;;  %17324 = vst [vmem:[#allocation174_spill] sm:$0xff] %v14302_v42  ;;  %v17325_v38 = vand.u32 4294901760, %v14010_v57 }
 0x104   : > { %v11540_v8 = vpop.f32.mrf.mxu0  ;;  %11851 = vmatmul.mubr.f32.gmra.mxu0 %v14273_v55  ;;  %v11572_v59 = vpop.f32.mrf.mxu1  ;;  %11883 = vmatmul.mubr.f32.gmra.mxu1 %v14225_v34  ;;  %v14306_v55 = vand.u32 4294901760, %v4008_v1  ;;  %17326 = vst [vmem:[#allocation175_spill] sm:$0xff] %v14311_v48 }
 0x105   : > { %v14299_v63 = vadd.f32 %v11566_v31, %v11540_v8  ;;  %11853 = vmatprep.mubr.f32.mxu0 %v14284_v39  ;;  %11913 = vmatprep.mubr.f32.mxu1 %v17325_v38  ;;  %v17327_v8 = vand.u32 4294901760, %v14024_v52 }
 0x106   : > { %v511_v58 = vpop.f32.mrf.mxu0  ;;  %v721_v22 = vpop.f32.mrf.mxu1 }
 0x107   : > { %v14308_v25 = vadd.f32 %v697_v28, %v511_v58 }
 0x108   : > { %v11543_v46 = vpop.f32.mrf.mxu0  ;;  %11854 = vmatmul.mubr.f32.gmra.mxu0 %v14294_v9  ;;  %v11603_v31 = vpop.f32.mrf.mxu1  ;;  %11914 = vmatmul.mubr.f32.vlgmr.msra.gmra.mxu1 %v17327_v8 }
 0x109   : > { %v14315_v11 = vadd.f32 %v11569_v36, %v11543_v46  ;;  %11856 = vmatprep.mubr.f32.mxu0 %v14302_v42  ;;  %11964 = vmatpush3.msra.mxu1 %v13842_v20  ;;  %v17360_v42 = vld [vmem:[#allocation114_spill] sm:$0xff] }
 0x10a   : > { %v531_v38 = vpop.f32.mrf.mxu0  ;;  %v980_v1 = vpop.f32.mrf.mxu1  ;;  %11916 = vmatprep.mubr.f32.mxu1 %v14056_v53  ;;  %12015 = vmatprep.subr.mxu1 %v14306_v55 }
 0x10b   : > { %v14321_v28 = vadd.f32 %v709_v14, %v531_v38 }
 0x10c   : > { %v11546_v6 = vpop.f32.mrf.mxu0  ;;  %11857 = vmatmul.mubr.f32.gmra.mxu0 %v14311_v48  ;;  %v11606_v58 = vpop.f32.mrf.mxu1  ;;  %11917 = vmatmul.mubr.f32.gmra.mxu1 %v14086_v21  ;;  %v17357_v21 = vld [vmem:[#allocation107_spill] sm:$0xff]  ;;  %v17358_v48 = vld [vmem:[#allocation98_spill] sm:$0xff] }
 0x10d   : > { %v14325_v46 = vadd.f32 %v11572_v59, %v11546_v6  ;;  %11887 = vmatprep.mubr.f32.mxu0 %v14010_v57  ;;  %11919 = vmatprep.mubr.f32.mxu1 %v14096_v4 }
 0x10e   : > { %v551_v20 = vpop.f32.mrf.mxu0  ;;  %v996_v36 = vpop.f32.mrf.mxu1 }
 0x10f   : > { %v14329_v8 = vadd.f32 %v721_v22, %v551_v20 }
 0x110   : > { %v11577_v53 = vpop.f32.mrf.mxu0  ;;  %11888 = vmatmul.mubr.f32.vlgmr.msra.gmra.mxu0 %v14024_v52  ;;  %v11609_v14 = vpop.f32.mrf.mxu1  ;;  %11920 = vmatmul.mubr.f32.gmra.mxu1 %v14099_v13 }
 0x111   : > { %v809_v38 = vadd.f32 %v11577_v53, %v14160_v47  ;;  %11938 = vmatpush3.msra.mxu0 %v17298_v27  ;;  %11890 = vmatprep.mubr.f32.mxu0 %v14031_v35 }
 0x112   : > { %v801_v59 = vpop.f32.mrf.mxu0  ;;  %v1012_v57 = vpop.f32.mrf.mxu1  ;;  %11922 = vmatprep.mubr.f32.mxu1 %v14104_v61  ;;  %11989 = vmatprep.subr.mxu0 %v14207_v5 }
 0x113   : > { %v14338_v22 = vadd.f32 %v11603_v31, %v809_v38  ;;  %v802_v6 = vadd.f32 %v801_v59, %v14177_v54 }
 0x114   : > { %v11580_v52 = vpop.f32.mrf.mxu0  ;;  %11891 = vmatmul.mubr.f32.gmra.mxu0 %v14059_v60  ;;  %v11612_v20 = vpop.f32.mrf.mxu1  ;;  %11923 = vmatmul.mubr.f32.gmra.mxu1 %v14135_v41  ;;  %v14514_v41 = vld [vmem:[%s13220_s28 + $0xc8] sm:$0xff]  ;;  %v17354_v60 = vld [vmem:[#allocation169_spill] sm:$0xff] }
 0x115   : > { %v14343_v53 = vadd.f32 %v980_v1, %v802_v6  ;;  %v823_v27 = vadd.f32 %v11580_v52, %v14197_v62  ;;  %11893 = vmatprep.mubr.f32.mxu0 %v14064_v19  ;;  %11925 = vmatprep.mubr.f32.mxu1 %v14150_v3  ;;  %v17350_v19 = vld [vmem:[#allocation100_spill] sm:$0xff] }
 0x116   : > { %v815_v47 = vpop.f32.mrf.mxu0  ;;  %v1028_v61 = vpop.f32.mrf.mxu1 }
 0x117   : > { %v14348_v31 = vadd.f32 %v11606_v58, %v823_v27  ;;  %v816_v54 = vadd.f32 %v815_v47, %v14209_v16 }
 0x118   : > { %v11583_v38 = vpop.f32.mrf.mxu0  ;;  %11894 = vmatmul.mubr.f32.gmra.mxu0 %v14067_v17  ;;  %v11615_v59 = vpop.f32.mrf.mxu1  ;;  %11926 = vmatmul.mubr.f32.gmra.mxu1 %v14182_v49  ;;  %v17349_v49 = vld [vmem:[#allocation83_spill] sm:$0xff] }
 0x119   : > { %v14353_v1 = vadd.f32 %v996_v36, %v816_v54  ;;  %v837_v62 = vadd.f32 %v11583_v38, %v14227_v37  ;;  %11896 = vmatprep.mubr.f32.mxu0 %v14072_v0  ;;  %11928 = vmatprep.mubr.f32.mxu1 %v14190_v7  ;;  %v17345_v7 = vld [vmem:[#allocation81_spill] sm:$0xff] }
 0x11a   : > { %v829_v6 = vpop.f32.mrf.mxu0  ;;  %v1044_v52 = vpop.f32.mrf.mxu1  ;;  %v17348_v0 = vld [vmem:[#allocation97_spill] sm:$0xff] }
 0x11b   : > { %v14358_v58 = vadd.f32 %v11609_v14, %v837_v62  ;;  %v830_v16 = vadd.f32 %v829_v6, %v14242_v12 }
 0x11c   : > { %v11586_v27 = vpop.f32.mrf.mxu0  ;;  %11897 = vmatmul.mubr.f32.gmra.mxu0 %v14107_v29  ;;  %v11618_v47 = vpop.f32.mrf.mxu1  ;;  %11929 = vmatmul.mubr.f32.gmra.mxu1 %v14220_v18 }
 0x11d   : > { %v14363_v36 = vadd.f32 %v1012_v57, %v830_v16  ;;  %v851_v37 = vadd.f32 %v11586_v27, %v14256_v10  ;;  %11899 = vmatprep.mubr.f32.mxu0 %v14122_v51  ;;  %11931 = vmatprep.mubr.f32.mxu1 %v14234_v23  ;;  %v17342_v51 = vld [vmem:[#allocation153_spill] sm:$0xff] }
 0x11e   : > { %v843_v54 = vpop.f32.mrf.mxu0  ;;  %v1060_v38 = vpop.f32.mrf.mxu1 }
 0x11f   : > { %v14368_v14 = vadd.f32 %v11612_v20, %v851_v37  ;;  %v844_v12 = vadd.f32 %v843_v54, %v14270_v26 }
 0x120   : > { %v11589_v62 = vpop.f32.mrf.mxu0  ;;  %11900 = vmatmul.mubr.f32.gmra.mxu0 %v14143_v2  ;;  %v11621_v6 = vpop.f32.mrf.mxu1  ;;  %11932 = vmatmul.mubr.f32.gmra.mxu1 %v14251_v32  ;;  %v17340_v2 = vld [vmem:[#allocation146_spill] sm:$0xff] }
 0x121   : > { %v14373_v57 = vadd.f32 %v1028_v61, %v844_v12  ;;  %v865_v10 = vadd.f32 %v11589_v62, %v14281_v43  ;;  %11902 = vmatprep.mubr.f32.mxu0 %v14153_v15  ;;  %11934 = vmatprep.mubr.f32.mxu1 %v14265_v40  ;;  %v17338_v15 = vld [vmem:[#allocation42_spill] sm:$0xff] }
 0x122   : > { %v857_v16 = vpop.f32.mrf.mxu0  ;;  %v1076_v27 = vpop.f32.mrf.mxu1 }
 0x123   : > { %v14378_v20 = vadd.f32 %v11615_v59, %v865_v10  ;;  %v858_v26 = vadd.f32 %v857_v16, %v14291_v45 }
 0x124   : > { %v11592_v37 = vpop.f32.mrf.mxu0  ;;  %11903 = vmatmul.mubr.f32.gmra.mxu0 %v14193_v50  ;;  %v11624_v54 = vpop.f32.mrf.mxu1  ;;  %11935 = vmatmul.mubr.f32.gmra.mxu1 %v14279_v44  ;;  %v17328_v50 = vld [vmem:[#allocation5_spill] sm:$0xff] }
 0x125   : > { %v14383_v61 = vadd.f32 %v1044_v52, %v858_v26  ;;  %v879_v43 = vadd.f32 %v11592_v37, %v14299_v63  ;;  %11905 = vmatprep.mubr.f32.mxu0 %v14202_v30  ;;  %11965 = vmatprep.mubr.f32.mxu1 %v13993_v33 }
 0x126   : > { %v871_v12 = vpop.f32.mrf.mxu0  ;;  %v1092_v62 = vpop.f32.mrf.mxu1 }
 0x127   : > { %v14388_v59 = vadd.f32 %v11618_v47, %v879_v43  ;;  %v872_v45 = vadd.f32 %v871_v12, %v14308_v25  ;;  %v17329_v47 = vld [vmem:[#allocation7_spill] sm:$0xff] }
 0x128   : > { %v11595_v10 = vpop.f32.mrf.mxu0  ;;  %11906 = vmatmul.mubr.f32.gmra.mxu0 %v14223_v56  ;;  %v11655_v16 = vpop.f32.mrf.mxu1  ;;  %11966 = vmatmul.mubr.f32.vlgmr.msra.gmra.mxu1 %v17328_v50  ;;  %v17330_v56 = vld [vmem:[#allocation166_spill] sm:$0xff] }
 0x129   : > { %v14393_v52 = vadd.f32 %v1060_v38, %v872_v45  ;;  %v893_v63 = vadd.f32 %v11595_v10, %v14315_v11  ;;  %11908 = vmatprep.mubr.f32.mxu0 %v14237_v24  ;;  %12016 = vmatpush3.msra.mxu1 %v14306_v55  ;;  %v17331_v45 = vld [vmem:[#allocation20_spill] sm:$0xff]  ;;  %v17332_v10 = vld [vmem:[#allocation22_spill] sm:$0xff] }
 0x12a   : > { %v885_v26 = vpop.f32.mrf.mxu0  ;;  %v1336_v37 = vpop.f32.mrf.mxu1  ;;  %11968 = vmatprep.mubr.f32.mxu1 %v17329_v47  ;;  %12067 = vmatprep.subr.mxu1 %v14207_v5 }
 0x12b   : > { %v14400_v25 = vadd.f32 %v11621_v6, %v893_v63  ;;  %v886_v43 = vadd.f32 %v885_v26, %v14321_v28 }
 0x12c   : > { %v11598_v12 = vpop.f32.mrf.mxu0  ;;  %11909 = vmatmul.mubr.f32.gmra.mxu0 %v17330_v56  ;;  %v11658_v38 = vpop.f32.mrf.mxu1  ;;  %11969 = vmatmul.mubr.f32.gmra.mxu1 %v17331_v45  ;;  %v17333_v56 = vld [vmem:[#allocation133_spill] sm:$0xff] }
 0x12d   : > { %v14405_v11 = vadd.f32 %v1076_v27, %v886_v43  ;;  %v907_v55 = vadd.f32 %v11598_v12, %v14325_v46  ;;  %11939 = vmatprep.mubr.f32.mxu0 %v13993_v33  ;;  %11971 = vmatprep.mubr.f32.mxu1 %v17332_v10  ;;  %v17335_v12 = vld [vmem:[#allocation163_spill] sm:$0xff] }
 0x12e   : > { %v899_v24 = vpop.f32.mrf.mxu0  ;;  %v1348_v30 = vpop.f32.mrf.mxu1 }
 0x12f   : > { %v14410_v6 = vadd.f32 %v11624_v54, %v907_v55  ;;  %v900_v28 = vadd.f32 %v899_v24, %v14329_v8  ;;  %v17334_v54 = vld [vmem:[#allocation23_spill] sm:$0xff]  ;;  %v17336_v55 = vld [vmem:[#allocation137_spill] sm:$0xff] }
 0x130   : > { %v11629_v63 = vpop.f32.mrf.mxu0  ;;  %11940 = vmatmul.mubr.f32.vlgmr.msra.gmra.mxu0 %v17328_v50  ;;  %v11661_v26 = vpop.f32.mrf.mxu1  ;;  %11972 = vmatmul.mubr.f32.gmra.mxu1 %v17333_v56 }
 0x131   : > { %v14415_v27 = vadd.f32 %v1092_v62, %v900_v28  ;;  %v1181_v46 = vadd.f32 %v11629_v63, %v14338_v22  ;;  %11990 = vmatpush3.msra.mxu0 %v14207_v5  ;;  %11942 = vmatprep.mubr.f32.mxu0 %v17329_v47  ;;  %v17337_v63 = vld [vmem:[#allocation37_spill] sm:$0xff] }
 0x132   : > { %v1174_v33 = vpop.f32.mrf.mxu0  ;;  %v1360_v43 = vpop.f32.mrf.mxu1  ;;  %11974 = vmatprep.mubr.f32.mxu1 %v17334_v54  ;;  %12041 = vmatprep.subr.mxu0 %v17335_v12 }
 0x133   : > { %v14422_v24 = vadd.f32 %v11655_v16, %v1181_v46  ;;  %v1175_v50 = vadd.f32 %v1174_v33, %v14343_v53 }
 0x134   : > { %v11632_v8 = vpop.f32.mrf.mxu0  ;;  %11943 = vmatmul.mubr.f32.gmra.mxu0 %v17331_v45  ;;  %v11664_v62 = vpop.f32.mrf.mxu1  ;;  %11975 = vmatmul.mubr.f32.gmra.mxu1 %v17336_v55 }
 0x135   : > { %v14427_v22 = vadd.f32 %v1336_v37, %v1175_v50  ;;  %v1193_v28 = vadd.f32 %v11632_v8, %v14348_v31  ;;  %11945 = vmatprep.mubr.f32.mxu0 %v17332_v10  ;;  %11977 = vmatprep.mubr.f32.mxu1 %v17337_v63  ;;  %v17339_v50 = vld [vmem:[#allocation54_spill] sm:$0xff] }
 0x136   : > { %v1186_v44 = vpop.f32.mrf.mxu0  ;;  %v1372_v40 = vpop.f32.mrf.mxu1 }
 0x137   : > { %v14432_v16 = vadd.f32 %v11658_v38, %v1193_v28  ;;  %v1187_v53 = vadd.f32 %v1186_v44, %v14353_v1 }
 0x138   : > { %v11635_v46 = vpop.f32.mrf.mxu0  ;;  %11946 = vmatmul.mubr.f32.gmra.mxu0 %v17333_v56  ;;  %v11667_v33 = vpop.f32.mrf.mxu1  ;;  %11978 = vmatmul.mubr.f32.gmra.mxu1 %v17338_v15  ;;  %v17378_v56 = vld [vmem:[#allocation131_spill] sm:$0xff] }
 0x139   : > { %v14437_v37 = vadd.f32 %v1348_v30, %v1187_v53  ;;  %v1205_v31 = vadd.f32 %v11635_v46, %v14358_v58  ;;  %11948 = vmatprep.mubr.f32.mxu0 %v17334_v54  ;;  %11980 = vmatprep.mubr.f32.mxu1 %v17339_v50  ;;  %v17341_v53 = vld [vmem:[#allocation148_spill] sm:$0xff] }
 0x13a   : > { %v1198_v8 = vpop.f32.mrf.mxu0  ;;  %v1384_v32 = vpop.f32.mrf.mxu1 }
 0x13b   : > { %v14442_v38 = vadd.f32 %v11661_v26, %v1205_v31  ;;  %v1199_v44 = vadd.f32 %v1198_v8, %v14363_v36 }
 0x13c   : > { %v11638_v1 = vpop.f32.mrf.mxu0  ;;  %11949 = vmatmul.mubr.f32.gmra.mxu0 %v17336_v55  ;;  %v11670_v28 = vpop.f32.mrf.mxu1  ;;  %11981 = vmatmul.mubr.f32.gmra.mxu1 %v17340_v2 }
 0x13d   : > { %v14447_v30 = vadd.f32 %v1360_v43, %v1199_v44  ;;  %v1217_v58 = vadd.f32 %v11638_v1, %v14368_v14  ;;  %11951 = vmatprep.mubr.f32.mxu0 %v17337_v63  ;;  %11983 = vmatprep.mubr.f32.mxu1 %v17341_v53  ;;  %v17343_v44 = vld [vmem:[#allocation155_spill] sm:$0xff]  ;;  %v17376_v63 = vld [vmem:[#allocation129_spill] sm:$0xff] }
 0x13e   : > { %v1210_v46 = vpop.f32.mrf.mxu0  ;;  %v1396_v23 = vpop.f32.mrf.mxu1 }
 0x13f   : > { %v14452_v26 = vadd.f32 %v11664_v62, %v1217_v58  ;;  %v1211_v36 = vadd.f32 %v1210_v46, %v14373_v57 }
 0x140   : > { %v11641_v31 = vpop.f32.mrf.mxu0  ;;  %11952 = vmatmul.mubr.f32.gmra.mxu0 %v17338_v15  ;;  %v11673_v8 = vpop.f32.mrf.mxu1  ;;  %11984 = vmatmul.mubr.f32.gmra.mxu1 %v17342_v51 }
 0x141   : > { %v14457_v43 = vadd.f32 %v1372_v40, %v1211_v36  ;;  %v1229_v14 = vadd.f32 %v11641_v31, %v14378_v20  ;;  %11954 = vmatprep.mubr.f32.mxu0 %v17339_v50  ;;  %11986 = vmatprep.mubr.f32.mxu1 %v17343_v44  ;;  %v17344_v36 = vld [vmem:[#allocation80_spill] sm:$0xff] }
 0x142   : > { %v1222_v1 = vpop.f32.mrf.mxu0  ;;  %v1408_v18 = vpop.f32.mrf.mxu1 }
 0x143   : > { %v14462_v62 = vadd.f32 %v11667_v33, %v1229_v14  ;;  %v1223_v57 = vadd.f32 %v1222_v1, %v14383_v61 }
 0x144   : > { %v11644_v58 = vpop.f32.mrf.mxu0  ;;  %11955 = vmatmul.mubr.f32.gmra.mxu0 %v17340_v2  ;;  %v11676_v46 = vpop.f32.mrf.mxu1  ;;  %11987 = vmatmul.mubr.f32.gmra.mxu1 %v14225_v34  ;;  %v17369_v2 = vld [vmem:[#allocation124_spill] sm:$0xff] }
 0x145   : > { %v14467_v40 = vadd.f32 %v1384_v32, %v1223_v57  ;;  %v1241_v20 = vadd.f32 %v11644_v58, %v14388_v59  ;;  %11957 = vmatprep.mubr.f32.mxu0 %v17341_v53  ;;  %12017 = vmatprep.mubr.f32.mxu1 %v17344_v36 }
 0x146   : > { %v1234_v31 = vpop.f32.mrf.mxu0  ;;  %v1420_v29 = vpop.f32.mrf.mxu1 }
 0x147   : > { %v14472_v33 = vadd.f32 %v11670_v28, %v1241_v20  ;;  %v1235_v61 = vadd.f32 %v1234_v31, %v14393_v52  ;;  %v17346_v28 = vld [vmem:[#allocation8_spill] sm:$0xff] }
 0x148   : > { %v11647_v14 = vpop.f32.mrf.mxu0  ;;  %11958 = vmatmul.mubr.f32.gmra.mxu0 %v17342_v51  ;;  %v11707_v1 = vpop.f32.mrf.mxu1  ;;  %12018 = vmatmul.mubr.f32.vlgmr.msra.gmra.mxu1 %v17345_v7 }
 0x149   : > { %v14477_v32 = vadd.f32 %v1396_v23, %v1235_v61  ;;  %v1253_v59 = vadd.f32 %v11647_v14, %v14400_v25  ;;  %11960 = vmatprep.mubr.f32.mxu0 %v17343_v44  ;;  %12068 = vmatpush3.msra.mxu1 %v14207_v5  ;;  %v17347_v25 = vld [vmem:[#allocation82_spill] sm:$0xff] }
 0x14a   : > { %v1246_v57 = vpop.f32.mrf.mxu0  ;;  %v1763_v58 = vpop.f32.mrf.mxu1  ;;  %12020 = vmatprep.mubr.f32.mxu1 %v17346_v28  ;;  %12119 = vmatprep.subr.mxu1 %v14207_v5  ;;  %v17364_v44 = vld [vmem:[#allocation106_spill] sm:$0xff] }
 0x14b   : > { %v14484_v52 = vadd.f32 %v11673_v8, %v1253_v59  ;;  %v1247_v20 = vadd.f32 %v1246_v57, %v14405_v11  ;;  %v14498_v59 = vld [vmem:[%s13220_s28 + $0xc0] sm:$0xff] }
 0x14c   : > { %v11650_v31 = vpop.f32.mrf.mxu0  ;;  %11961 = vmatmul.mubr.f32.gmra.mxu0 %v14225_v34  ;;  %v11710_v23 = vpop.f32.mrf.mxu1  ;;  %12021 = vmatmul.mubr.f32.gmra.mxu1 %v17347_v25  ;;  %v17363_v34 = vld [vmem:[#allocation118_spill] sm:$0xff] }
 0x14d   : > { %v14489_v61 = vadd.f32 %v1408_v18, %v1247_v20  ;;  %v1265_v14 = vadd.f32 %v11650_v31, %v14410_v6  ;;  %11991 = vmatprep.mubr.f32.mxu0 %v17348_v0  ;;  %12023 = vmatprep.mubr.f32.mxu1 %v17349_v49  ;;  %v17351_v20 = vld [vmem:[#allocation88_spill] sm:$0xff]  ;;  %v232_v0 = vld [vmem:[%s16616_s1 + $0x10] sm:$0xf] }
 0x14e   : > { %v1258_v17 = vpop.f32.mrf.mxu0  ;;  %v1775_v3 = vpop.f32.mrf.mxu1  ;;  %v17352_v31 = vld [vmem:[#allocation104_spill] sm:$0xff] }
 0x14f   : > { %v14494_v8 = vadd.f32 %v11676_v46, %v1265_v14  ;;  %v1259_v11 = vadd.f32 %v1258_v17, %v14415_v27  ;;  %v17353_v14 = vld [vmem:[#allocation90_spill] sm:$0xff] }
 0x150   : > { %v11681_v57 = vpop.f32.mrf.mxu0  ;;  %11992 = vmatmul.mubr.f32.vlgmr.msra.gmra.mxu0 %v17350_v19  ;;  %v11713_v18 = vpop.f32.mrf.mxu1  ;;  %12024 = vmatmul.mubr.f32.gmra.mxu1 %v17351_v20  ;;  %v3740_v19 = vsel %vm302_vm2, %v14498_v59, 0 }
 0x151   : > { %v14505_v6 = vadd.f32 %v1420_v29, %v1259_v11  ;;  %v1548_v46 = vadd.f32 %v11681_v57, %v14422_v24  ;;  %12042 = vmatpush3.msra.mxu0 %v17335_v12  ;;  %11994 = vmatprep.mubr.f32.mxu0 %v17352_v31  ;;  %v4866_v24 = vsel %vm335_vm0, %v232_v0, 0  ;;  %v17355_v11 = vld [vmem:[#allocation66_spill] sm:$0xff]  ;;  %v17356_v31 = vld [vmem:[#allocation96_spill] sm:$0xff] }
 0x152   : > { %v1537_v17 = vpop.f32.mrf.mxu0  ;;  %v1787_v27 = vpop.f32.mrf.mxu1  ;;  %12026 = vmatprep.mubr.f32.mxu1 %v17353_v14  ;;  %12093 = vmatprep.subr.mxu0 %v17354_v60 }
 0x153   : > { %v14517_v35 = vadd.f32 %v11707_v1, %v1548_v46  ;;  %v1538_v29 = vadd.f32 %v1537_v17, %v14427_v22  ;;  %v14528_v1 = vand.u32 4294901760, %v3740_v19  ;;  %v3743_v22 = vsel %vm302_vm2, %v14514_v41, 0 }
 0x154   : > { %v11684_v12 = vpop.f32.mrf.mxu0  ;;  %11995 = vmatmul.mubr.f32.gmra.mxu0 %v17355_v11  ;;  %v11716_v57 = vpop.f32.mrf.mxu1  ;;  %12027 = vmatmul.mubr.f32.gmra.mxu1 %v17356_v31  ;;  %v14532_v17 = vand.u32 4294901760, %v4866_v24 }
 0x155   : > { %v14523_v13 = vadd.f32 %v1763_v58, %v1538_v29  ;;  %v1568_v4 = vadd.f32 %v11684_v12, %v14432_v16  ;;  %11997 = vmatprep.mubr.f32.mxu0 %v17357_v21  ;;  %12029 = vmatprep.mubr.f32.mxu1 %v17358_v48  ;;  %17359 = vst [vmem:[#allocation5_spill] sm:$0xff] %v14528_v1  ;;  %v17361_v12 = vld [vmem:[#allocation103_spill] sm:$0xff]  ;;  %v14539_v21 = vand.u32 4294901760, %v3743_v22 }
 0x156   : > { %v1557_v0 = vpop.f32.mrf.mxu0  ;;  %v1799_v46 = vpop.f32.mrf.mxu1 }
 0x157   : > { %v14534_v11 = vadd.f32 %v11710_v23, %v1568_v4  ;;  %v1558_v58 = vadd.f32 %v1557_v0, %v14437_v37  ;;  %17362 = vst [vmem:[#allocation163_spill] sm:$0xff] %v14539_v21  ;;  %v14547_v4 = vsub.f32 %v3740_v19, %v14528_v1  ;;  %v14550_v0 = vsub.f32 %v4866_v24, %v14532_v17  ;;  %v17370_v24 = vld [vmem:[#allocation113_spill] sm:$0xff] }
 0x158   : > { %v11687_v29 = vpop.f32.mrf.mxu0  ;;  %11998 = vmatmul.mubr.f32.gmra.mxu0 %v17360_v42  ;;  %v11719_v16 = vpop.f32.mrf.mxu1  ;;  %12030 = vmatmul.mubr.f32.gmra.mxu1 %v17361_v12 }
 0x159   : > { %v14541_v9 = vadd.f32 %v1775_v3, %v1558_v58  ;;  %v1588_v39 = vadd.f32 %v11687_v29, %v14442_v38  ;;  %12000 = vmatprep.mubr.f32.mxu0 %v17363_v34  ;;  %12032 = vmatprep.mubr.f32.mxu1 %v17364_v44  ;;  %17365 = vst [vmem:[#allocation80_spill] sm:$0xff] %v14547_v4  ;;  %v17366_v58 = vld [vmem:[#allocation121_spill] sm:$0xff]  ;;  %v17367_v29 = vld [vmem:[#allocation110_spill] sm:$0xff] }
 0x15a   : > { %v1577_v37 = vpop.f32.mrf.mxu0  ;;  %v1811_v23 = vpop.f32.mrf.mxu1  ;;  %v14558_v34 = vsub.f32 %v3743_v22, %v14539_v21 }
 0x15b   : > { %v14552_v42 = vadd.f32 %v11713_v18, %v1588_v39  ;;  %v1578_v51 = vadd.f32 %v1577_v37, %v14447_v30  ;;  %v14566_v39 = vand.u32 4294901760, %v14547_v4  ;;  %v14569_v37 = vand.u32 4294901760, %v14550_v0 }
 0x15c   : > { %v11690_v3 = vpop.f32.mrf.mxu0  ;;  %12001 = vmatmul.mubr.f32.gmra.mxu0 %v17366_v58  ;;  %v11722_v38 = vpop.f32.mrf.mxu1  ;;  %12033 = vmatmul.mubr.f32.gmra.mxu1 %v17367_v29  ;;  %17368 = vst [vmem:[#allocation81_spill] sm:$0xff] %v14558_v34 }
 0x15d   : > { %v14560_v19 = vadd.f32 %v1787_v27, %v1578_v51  ;;  %v1608_v53 = vadd.f32 %v11690_v3, %v14452_v26  ;;  %12003 = vmatprep.mubr.f32.mxu0 %v17369_v2  ;;  %12035 = vmatprep.mubr.f32.mxu1 %v17370_v24  ;;  %17371 = vst [vmem:[#allocation97_spill] sm:$0xff] %v14566_v39  ;;  %17372 = vst [vmem:[#allocation100_spill] sm:$0xff] %v14569_v37  ;;  %v17373_v27 = vld [vmem:[#allocation127_spill] sm:$0xff]  ;;  %v17374_v3 = vld [vmem:[#allocation117_spill] sm:$0xff]  ;;  %v14577_v2 = vand.u32 4294901760, %v14558_v34 }
 0x15e   : > { %v1597_v30 = vpop.f32.mrf.mxu0  ;;  %v1823_v18 = vpop.f32.mrf.mxu1 }
 0x15f   : > { %v14571_v58 = vadd.f32 %v11716_v57, %v1608_v53  ;;  %v1598_v22 = vadd.f32 %v1597_v30, %v14457_v43  ;;  %17375 = vst [vmem:[#allocation169_spill] sm:$0xff] %v14577_v2  ;;  %v3957_v53 = vsub.f32 %v14547_v4, %v14566_v39  ;;  %v5128_v30 = vsub.f32 %v14550_v0, %v14569_v37  ;;  %v17381_v37 = vld [vmem:[#allocation132_spill] sm:$0xff] }
 0x160   : > { %v11693_v51 = vpop.f32.mrf.mxu0  ;;  %12004 = vmatmul.mubr.f32.gmra.mxu0 %v17373_v27  ;;  %v11725_v26 = vpop.f32.mrf.mxu1  ;;  %12036 = vmatmul.mubr.f32.gmra.mxu1 %v17374_v3 }
 0x161   : > { %v14579_v50 = vadd.f32 %v1799_v46, %v1598_v22  ;;  %v1628_v15 = vadd.f32 %v11693_v51, %v14462_v62  ;;  %12006 = vmatprep.mubr.f32.mxu0 %v17376_v63  ;;  %12038 = vmatprep.mubr.f32.mxu1 %v14528_v1  ;;  %v17377_v22 = vld [vmem:[#allocation130_spill] sm:$0xff]  ;;  %v3967_v51 = vsub.f32 %v14558_v34, %v14577_v2  ;;  %v14599_v10 = vand.u32 4294901760, %v3957_v53 }
 0x162   : > { %v1617_v43 = vpop.f32.mrf.mxu0  ;;  %v1835_v57 = vpop.f32.mrf.mxu1 }
 0x163   : > { %v14588_v27 = vadd.f32 %v11719_v16, %v1628_v15  ;;  %v1618_v55 = vadd.f32 %v1617_v43, %v14467_v40  ;;  %17379 = vst [vmem:[#allocation176_spill] sm:$0xff] %v14599_v10  ;;  %v17380_v15 = vld [vmem:[#allocation9_spill] sm:$0xff]  ;;  %v14602_v43 = vand.u32 4294901760, %v5128_v30  ;;  %v17384_v30 = vld [vmem:[#allocation91_spill] sm:$0xff] }
 0x164   : > { %v11696_v46 = vpop.f32.mrf.mxu0  ;;  %12007 = vmatmul.mubr.f32.gmra.mxu0 %v17377_v22  ;;  %v11728_v62 = vpop.f32.mrf.mxu1  ;;  %12039 = vmatmul.mubr.f32.gmra.mxu1 %v14539_v21 }
 0x165   : > { %v14595_v63 = vadd.f32 %v1811_v23, %v1618_v55  ;;  %v1648_v54 = vadd.f32 %v11696_v46, %v14472_v33  ;;  %12009 = vmatprep.mubr.f32.mxu0 %v17378_v56  ;;  %12069 = vmatprep.mubr.f32.mxu1 %v17380_v15  ;;  %v14608_v55 = vand.u32 4294901760, %v3967_v51  ;;  %v17383_v23 = vld [vmem:[#allocation89_spill] sm:$0xff] }
 0x166   : > { %v1637_v40 = vpop.f32.mrf.mxu0  ;;  %v1847_v16 = vpop.f32.mrf.mxu1 }
 0x167   : > { %v14604_v22 = vadd.f32 %v11722_v38, %v1648_v54  ;;  %v1638_v45 = vadd.f32 %v1637_v40, %v14477_v32  ;;  %17382 = vst [vmem:[#allocation9_spill] sm:$0xff] %v14608_v55  ;;  %v17387_v40 = vld [vmem:[#allocation93_spill] sm:$0xff] }
 0x168   : > { %v11699_v47 = vpop.f32.mrf.mxu0  ;;  %12010 = vmatmul.mubr.f32.gmra.mxu0 %v17381_v37  ;;  %v11759_v33 = vpop.f32.mrf.mxu1  ;;  %12070 = vmatmul.mubr.f32.vlgmr.msra.gmra.mxu1 %v17383_v23  ;;  %v17436_v37 = vld [vmem:[#allocation48_spill] sm:$0xff] }
 0x169   : > { %v14611_v53 = vadd.f32 %v1823_v18, %v1638_v45  ;;  %v1668_v46 = vadd.f32 %v11699_v47, %v14484_v52  ;;  %12012 = vmatprep.mubr.f32.mxu0 %v14599_v10  ;;  %12120 = vmatpush3.msra.mxu1 %v14207_v5  ;;  %v17385_v18 = vld [vmem:[#allocation92_spill] sm:$0xff]  ;;  %v17386_v52 = vld [vmem:[#allocation6_spill] sm:$0xff]  ;;  %v17389_v10 = vld [vmem:[#allocation99_spill] sm:$0xff] }
 0x16a   : > { %v1657_v54 = vpop.f32.mrf.mxu0  ;;  %v2106_v38 = vpop.f32.mrf.mxu1  ;;  %12072 = vmatprep.mubr.f32.mxu1 %v17384_v30  ;;  %12171 = vmatprep.subr.mxu1 %v14602_v43 }
 0x16b   : > { %v14618_v32 = vadd.f32 %v11725_v26, %v1668_v46  ;;  %v1658_v51 = vadd.f32 %v1657_v54, %v14489_v61  ;;  %v17388_v54 = vld [vmem:[#allocation84_spill] sm:$0xff] }
 0x16c   : > { %v11702_v15 = vpop.f32.mrf.mxu0  ;;  %12013 = vmatmul.mubr.f32.gmra.mxu0 %v14608_v55  ;;  %v11762_v45 = vpop.f32.mrf.mxu1  ;;  %12073 = vmatmul.mubr.f32.gmra.mxu1 %v17385_v18  ;;  %v17434_v18 = vld [vmem:[#allocation46_spill] sm:$0xff] }
 0x16d   : > { %v14623_v47 = vadd.f32 %v1835_v57, %v1658_v51  ;;  %v1688_v5 = vadd.f32 %v11702_v15, %v14494_v8  ;;  %12043 = vmatprep.mubr.f32.mxu0 %v17386_v52  ;;  %12075 = vmatprep.mubr.f32.mxu1 %v17387_v40  ;;  %v17390_v51 = vld [vmem:[#allocation85_spill] sm:$0xff]  ;;  %v17397_v40 = vld [vmem:[#allocation115_spill] sm:$0xff] }
 0x16e   : > { %v1677_v23 = vpop.f32.mrf.mxu0  ;;  %v2122_v30 = vpop.f32.mrf.mxu1 }
 0x16f   : > { %v14628_v26 = vadd.f32 %v11728_v62, %v1688_v5  ;;  %v1678_v61 = vadd.f32 %v1677_v23, %v14505_v6  ;;  %v17391_v62 = vld [vmem:[#allocation101_spill] sm:$0xff] }
 0x170   : > { %v11733_v46 = vpop.f32.mrf.mxu0  ;;  %12044 = vmatmul.mubr.f32.vlgmr.msra.gmra.mxu0 %v17388_v54  ;;  %v11765_v55 = vpop.f32.mrf.mxu1  ;;  %12076 = vmatmul.mubr.f32.gmra.mxu1 %v17389_v10  ;;  %v17392_v54 = vld [vmem:[#allocation86_spill] sm:$0xff] }
 0x171   : > { %v14633_v57 = vadd.f32 %v1847_v16, %v1678_v61  ;;  %v1935_v8 = vadd.f32 %v11733_v46, %v14517_v35  ;;  %12094 = vmatpush3.msra.mxu0 %v17354_v60  ;;  %12046 = vmatprep.mubr.f32.mxu0 %v17390_v51  ;;  %v17393_v61 = vld [vmem:[#allocation108_spill] sm:$0xff]  ;;  %v17394_v46 = vld [vmem:[#allocation87_spill] sm:$0xff] }
 0x172   : > { %v1927_v15 = vpop.f32.mrf.mxu0  ;;  %v2138_v52 = vpop.f32.mrf.mxu1  ;;  %12078 = vmatprep.mubr.f32.mxu1 %v17391_v62  ;;  %12145 = vmatprep.subr.mxu0 %v14532_v17  ;;  %v17395_v51 = vld [vmem:[#allocation111_spill] sm:$0xff] }
 0x173   : > { %v14640_v6 = vadd.f32 %v11759_v33, %v1935_v8  ;;  %v1928_v5 = vadd.f32 %v1927_v15, %v14523_v13  ;;  %v17396_v15 = vld [vmem:[#allocation94_spill] sm:$0xff] }
 0x174   : > { %v11736_v23 = vpop.f32.mrf.mxu0  ;;  %12047 = vmatmul.mubr.f32.gmra.mxu0 %v17392_v54  ;;  %v11768_v16 = vpop.f32.mrf.mxu1  ;;  %12079 = vmatmul.mubr.f32.gmra.mxu1 %v17393_v61  ;;  %v17401_v61 = vld [vmem:[#allocation122_spill] sm:$0xff] }
 0x175   : > { %v14645_v35 = vadd.f32 %v2106_v38, %v1928_v5  ;;  %v1949_v60 = vadd.f32 %v11736_v23, %v14534_v11  ;;  %12049 = vmatprep.mubr.f32.mxu0 %v17394_v46  ;;  %12081 = vmatprep.mubr.f32.mxu1 %v17395_v51  ;;  %v17398_v5 = vld [vmem:[#allocation95_spill] sm:$0xff] }
 0x176   : > { %v1941_v62 = vpop.f32.mrf.mxu0  ;;  %v2154_v10 = vpop.f32.mrf.mxu1  ;;  %v17399_v23 = vld [vmem:[#allocation119_spill] sm:$0xff] }
 0x177   : > { %v14650_v33 = vadd.f32 %v11762_v45, %v1949_v60  ;;  %v1942_v13 = vadd.f32 %v1941_v62, %v14541_v9  ;;  %v17400_v60 = vld [vmem:[#allocation102_spill] sm:$0xff] }
 0x178   : > { %v11739_v8 = vpop.f32.mrf.mxu0  ;;  %12050 = vmatmul.mubr.f32.gmra.mxu0 %v17396_v15  ;;  %v11771_v54 = vpop.f32.mrf.mxu1  ;;  %12082 = vmatmul.mubr.f32.gmra.mxu1 %v17397_v40  ;;  %v17405_v40 = vld [vmem:[#allocation128_spill] sm:$0xff] }
 0x179   : > { %v14655_v38 = vadd.f32 %v2122_v30, %v1942_v13  ;;  %v1963_v11 = vadd.f32 %v11739_v8, %v14552_v42  ;;  %12052 = vmatprep.mubr.f32.mxu0 %v17398_v5  ;;  %12084 = vmatprep.mubr.f32.mxu1 %v17399_v23  ;;  %v17402_v13 = vld [vmem:[#allocation105_spill] sm:$0xff] }
 0x17a   : > { %v1955_v51 = vpop.f32.mrf.mxu0  ;;  %v2170_v46 = vpop.f32.mrf.mxu1  ;;  %v17403_v8 = vld [vmem:[#allocation125_spill] sm:$0xff] }
 0x17b   : > { %v14660_v45 = vadd.f32 %v11765_v55, %v1963_v11  ;;  %v1956_v9 = vadd.f32 %v1955_v51, %v14560_v19  ;;  %v17404_v11 = vld [vmem:[#allocation109_spill] sm:$0xff] }
 0x17c   : > { %v11742_v62 = vpop.f32.mrf.mxu0  ;;  %12053 = vmatmul.mubr.f32.gmra.mxu0 %v17400_v60  ;;  %v11774_v15 = vpop.f32.mrf.mxu1  ;;  %12085 = vmatmul.mubr.f32.gmra.mxu1 %v17401_v61  ;;  %v17433_v61 = vld [vmem:[#allocation44_spill] sm:$0xff] }
 0x17d   : > { %v14665_v30 = vadd.f32 %v2138_v52, %v1956_v9  ;;  %v1977_v42 = vadd.f32 %v11742_v62, %v14571_v58  ;;  %12055 = vmatprep.mubr.f32.mxu0 %v17402_v13  ;;  %12087 = vmatprep.mubr.f32.mxu1 %v17403_v8  ;;  %v17406_v9 = vld [vmem:[#allocation112_spill] sm:$0xff] }
 0x17e   : > { %v1969_v23 = vpop.f32.mrf.mxu0  ;;  %v2186_v5 = vpop.f32.mrf.mxu1 }
 0x17f   : > { %v14670_v55 = vadd.f32 %v11768_v16, %v1977_v42  ;;  %v1970_v19 = vadd.f32 %v1969_v23, %v14579_v50  ;;  %v17407_v42 = vld [vmem:[#allocation116_spill] sm:$0xff] }
 0x180   : > { %v11745_v51 = vpop.f32.mrf.mxu0  ;;  %12056 = vmatmul.mubr.f32.gmra.mxu0 %v17404_v11  ;;  %v11777_v60 = vpop.f32.mrf.mxu1  ;;  %12088 = vmatmul.mubr.f32.gmra.mxu1 %v17405_v40  ;;  %v17430_v40 = vld [vmem:[#allocation100_spill] sm:$0xff] }
 0x181   : > { %v14675_v52 = vadd.f32 %v2154_v10, %v1970_v19  ;;  %v1991_v58 = vadd.f32 %v11745_v51, %v14588_v27  ;;  %12058 = vmatprep.mubr.f32.mxu0 %v17406_v9  ;;  %12090 = vmatprep.mubr.f32.mxu1 %v14566_v39  ;;  %v17408_v19 = vld [vmem:[#allocation120_spill] sm:$0xff]  ;;  %v17425_v9 = vld [vmem:[#allocation29_spill] sm:$0xff] }
 0x182   : > { %v1983_v62 = vpop.f32.mrf.mxu0  ;;  %v2202_v8 = vpop.f32.mrf.mxu1 }
 0x183   : > { %v14680_v16 = vadd.f32 %v11771_v54, %v1991_v58  ;;  %v1984_v50 = vadd.f32 %v1983_v62, %v14595_v63  ;;  %v17409_v62 = vld [vmem:[#allocation123_spill] sm:$0xff] }
 0x184   : > { %v11748_v23 = vpop.f32.mrf.mxu0  ;;  %12059 = vmatmul.mubr.f32.gmra.mxu0 %v17407_v42  ;;  %v11780_v11 = vpop.f32.mrf.mxu1  ;;  %12091 = vmatmul.mubr.f32.gmra.mxu1 %v14577_v2 }
 0x185   : > { %v14685_v10 = vadd.f32 %v2170_v46, %v1984_v50  ;;  %v2005_v27 = vadd.f32 %v11748_v23, %v14604_v22  ;;  %12061 = vmatprep.mubr.f32.mxu0 %v17408_v19  ;;  %12121 = vmatprep.mubr.f32.mxu1 %v17344_v36 }
 0x186   : > { %v1997_v51 = vpop.f32.mrf.mxu0  ;;  %v2218_v39 = vpop.f32.mrf.mxu1 }
 0x187   : > { %v14690_v54 = vadd.f32 %v11774_v15, %v2005_v27  ;;  %v1998_v63 = vadd.f32 %v1997_v51, %v14611_v53 }
 0x188   : > { %v11751_v58 = vpop.f32.mrf.mxu0  ;;  %12062 = vmatmul.mubr.f32.gmra.mxu0 %v17409_v62  ;;  %v11811_v42 = vpop.f32.mrf.mxu1  ;;  %12122 = vmatmul.mubr.f32.vlgmr.msra.gmra.mxu1 %v17345_v7  ;;  %v17422_v62 = vld [vmem:[#allocation24_spill] sm:$0xff] }
 0x189   : > { %v14695_v46 = vadd.f32 %v2186_v5, %v1998_v63  ;;  %v2019_v22 = vadd.f32 %v11751_v58, %v14618_v32  ;;  %12064 = vmatprep.mubr.f32.mxu0 %v14547_v4  ;;  %12172 = vmatpush3.msra.mxu1 %v14602_v43 }
 0x18a   : > { %v2011_v50 = vpop.f32.mrf.mxu0  ;;  %v2462_v23 = vpop.f32.mrf.mxu1  ;;  %12124 = vmatprep.mubr.f32.mxu1 %v17346_v28  ;;  %12223 = vmatprep.subr.mxu1 %v14532_v17 }
 0x18b   : > { %v14702_v53 = vadd.f32 %v11777_v60, %v2019_v22  ;;  %v2012_v15 = vadd.f32 %v2011_v50, %v14623_v47 }
 0x18c   : > { %v11754_v27 = vpop.f32.mrf.mxu0  ;;  %12065 = vmatmul.mubr.f32.gmra.mxu0 %v14558_v34  ;;  %v11814_v5 = vpop.f32.mrf.mxu1  ;;  %12125 = vmatmul.mubr.f32.gmra.mxu1 %v17347_v25 }
 0x18d   : > { %v14707_v32 = vadd.f32 %v2202_v8, %v2012_v15  ;;  %v2033_v43 = vadd.f32 %v11754_v27, %v14628_v26  ;;  %12095 = vmatprep.mubr.f32.mxu0 %v17344_v36  ;;  %12127 = vmatprep.mubr.f32.mxu1 %v17349_v49 }
 0x18e   : > { %v2025_v51 = vpop.f32.mrf.mxu0  ;;  %v2474_v63 = vpop.f32.mrf.mxu1 }
 0x18f   : > { %v14712_v60 = vadd.f32 %v11780_v11, %v2033_v43  ;;  %v2026_v47 = vadd.f32 %v2025_v51, %v14633_v57 }
 0x190   : > { %v11785_v58 = vpop.f32.mrf.mxu0  ;;  %12096 = vmatmul.mubr.f32.vlgmr.msra.gmra.mxu0 %v17345_v7  ;;  %v11817_v22 = vpop.f32.mrf.mxu1  ;;  %12128 = vmatmul.mubr.f32.gmra.mxu1 %v17351_v20 }
 0x191   : > { %v14717_v8 = vadd.f32 %v2218_v39, %v2026_v47  ;;  %v2307_v26 = vadd.f32 %v11785_v58, %v14640_v6  ;;  %12146 = vmatpush3.msra.mxu0 %v14532_v17  ;;  %12098 = vmatprep.mubr.f32.mxu0 %v17346_v28 }
 0x192   : > { %v2300_v36 = vpop.f32.mrf.mxu0  ;;  %v2486_v50 = vpop.f32.mrf.mxu1  ;;  %12130 = vmatprep.mubr.f32.mxu1 %v17353_v14  ;;  %12197 = vmatprep.subr.mxu0 %v14550_v0 }
 0x193   : > { %v14724_v57 = vadd.f32 %v11811_v42, %v2307_v26  ;;  %v2301_v7 = vadd.f32 %v2300_v36, %v14645_v35 }
 0x194   : > { %v11788_v11 = vpop.f32.mrf.mxu0  ;;  %12099 = vmatmul.mubr.f32.gmra.mxu0 %v17347_v25  ;;  %v11820_v39 = vpop.f32.mrf.mxu1  ;;  %12131 = vmatmul.mubr.f32.gmra.mxu1 %v17356_v31 }
 0x195   : > { %v14729_v6 = vadd.f32 %v2462_v23, %v2301_v7  ;;  %v2319_v15 = vadd.f32 %v11788_v11, %v14650_v33  ;;  %12101 = vmatprep.mubr.f32.mxu0 %v17349_v49  ;;  %12133 = vmatprep.mubr.f32.mxu1 %v17358_v48 }
 0x196   : > { %v2312_v27 = vpop.f32.mrf.mxu0  ;;  %v2498_v43 = vpop.f32.mrf.mxu1 }
 0x197   : > { %v14734_v42 = vadd.f32 %v11814_v5, %v2319_v15  ;;  %v2313_v35 = vadd.f32 %v2312_v27, %v14655_v38 }
 0x198   : > { %v11791_v51 = vpop.f32.mrf.mxu0  ;;  %12102 = vmatmul.mubr.f32.gmra.mxu0 %v17351_v20  ;;  %v11823_v47 = vpop.f32.mrf.mxu1  ;;  %12134 = vmatmul.mubr.f32.gmra.mxu1 %v17361_v12  ;;  %v17452_v20 = vld [vmem:[#allocation73_spill] sm:$0xff] }
 0x199   : > { %v14739_v23 = vadd.f32 %v2474_v63, %v2313_v35  ;;  %v2331_v33 = vadd.f32 %v11791_v51, %v14660_v45  ;;  %12104 = vmatprep.mubr.f32.mxu0 %v17353_v14  ;;  %12136 = vmatprep.mubr.f32.mxu1 %v17364_v44  ;;  %v17449_v14 = vld [vmem:[#allocation70_spill] sm:$0xff] }
 0x19a   : > { %v2324_v58 = vpop.f32.mrf.mxu0  ;;  %v2510_v26 = vpop.f32.mrf.mxu1 }
 0x19b   : > { %v14744_v5 = vadd.f32 %v11817_v22, %v2331_v33  ;;  %v2325_v38 = vadd.f32 %v2324_v58, %v14665_v30 }
 0x19c   : > { %v11794_v36 = vpop.f32.mrf.mxu0  ;;  %12105 = vmatmul.mubr.f32.gmra.mxu0 %v17356_v31  ;;  %v11826_v7 = vpop.f32.mrf.mxu1  ;;  %12137 = vmatmul.mubr.f32.gmra.mxu1 %v17367_v29 }
 0x19d   : > { %v14749_v63 = vadd.f32 %v2486_v50, %v2325_v38  ;;  %v2343_v45 = vadd.f32 %v11794_v36, %v14670_v55  ;;  %12107 = vmatprep.mubr.f32.mxu0 %v17358_v48  ;;  %12139 = vmatprep.mubr.f32.mxu1 %v17370_v24  ;;  %v17413_v36 = vld [vmem:[#allocation10_spill] sm:$0xff] }
 0x19e   : > { %v2336_v11 = vpop.f32.mrf.mxu0  ;;  %v2522_v15 = vpop.f32.mrf.mxu1 }
 0x19f   : > { %v14754_v22 = vadd.f32 %v11820_v39, %v2343_v45  ;;  %v2337_v30 = vadd.f32 %v2336_v11, %v14675_v52 }
 0x1a0   : > { %v11797_v27 = vpop.f32.mrf.mxu0  ;;  %12108 = vmatmul.mubr.f32.gmra.mxu0 %v17361_v12  ;;  %v11829_v35 = vpop.f32.mrf.mxu1  ;;  %12140 = vmatmul.mubr.f32.gmra.mxu1 %v17374_v3  ;;  %v17446_v12 = vld [vmem:[#allocation69_spill] sm:$0xff] }
 0x1a1   : > { %v14759_v50 = vadd.f32 %v2498_v43, %v2337_v30  ;;  %v2355_v55 = vadd.f32 %v11797_v27, %v14680_v16  ;;  %12110 = vmatprep.mubr.f32.mxu0 %v17364_v44  ;;  %12142 = vmatprep.mubr.f32.mxu1 %v14528_v1 }
 0x1a2   : > { %v2348_v51 = vpop.f32.mrf.mxu0  ;;  %v2534_v33 = vpop.f32.mrf.mxu1 }
 0x1a3   : > { %17410 = vst [vmem:[#allocation89_spill] sm:$0xff] %v14759_v50  ;;  %v14764_v39 = vadd.f32 %v11823_v47, %v2355_v55  ;;  %v2349_v52 = vadd.f32 %v2348_v51, %v14685_v10  ;;  %v17415_v55 = vld [vmem:[#allocation11_spill] sm:$0xff] }
 0x1a4   : > { %v11800_v58 = vpop.f32.mrf.mxu0  ;;  %12111 = vmatmul.mubr.f32.gmra.mxu0 %v17367_v29  ;;  %v11832_v38 = vpop.f32.mrf.mxu1  ;;  %12143 = vmatmul.mubr.f32.gmra.mxu1 %v14539_v21  ;;  %v17442_v29 = vld [vmem:[#allocation61_spill] sm:$0xff] }
 0x1a5   : > { %17411 = vst [vmem:[#allocation6_spill] sm:$0xff] %v14764_v39  ;;  %v14769_v43 = vadd.f32 %v2510_v26, %v2349_v52  ;;  %v2367_v16 = vadd.f32 %v11800_v58, %v14690_v54  ;;  %12113 = vmatprep.mubr.f32.mxu0 %v17370_v24  ;;  %12173 = vmatprep.mubr.f32.mxu1 %v17413_v36  ;;  %v17417_v52 = vld [vmem:[#allocation16_spill] sm:$0xff]  ;;  %v17464_v39 = vld [vmem:[#allocation13_spill] sm:$0xff] }
 0x1a6   : > { %v2360_v45 = vpop.f32.mrf.mxu0  ;;  %v2546_v11 = vpop.f32.mrf.mxu1 }
 0x1a7   : > { %17412 = vst [vmem:[#allocation84_spill] sm:$0xff] %v14769_v43  ;;  %v14774_v47 = vadd.f32 %v11826_v7, %v2367_v16  ;;  %v2361_v10 = vadd.f32 %v2360_v45, %v14695_v46  ;;  %v4856_v46 = vrot.slane %v14498_v59, 1  ;;  %v14792_v45 = vld [vmem:[%s13220_s28 + $0xd0] sm:$0x3]  ;;  %v17423_v59 = vld [vmem:[#allocation26_spill] sm:$0xff] }
 0x1a8   : > { %v11803_v30 = vpop.f32.mrf.mxu0  ;;  %12114 = vmatmul.mubr.f32.gmra.mxu0 %v17374_v3  ;;  %v11863_v27 = vpop.f32.mrf.mxu1  ;;  %12174 = vmatmul.mubr.f32.vlgmr.msra.gmra.mxu1 %v17415_v55  ;;  %17419 = vst [vmem:[#allocation178_spill] sm:$0xff] %v14792_v45 }
 0x1a9   : > { %17414 = vst [vmem:[#allocation10_spill] sm:$0xff] %v14774_v47  ;;  %v14779_v26 = vadd.f32 %v2522_v15, %v2361_v10  ;;  %v2379_v54 = vadd.f32 %v11803_v30, %v14702_v53  ;;  %12116 = vmatprep.mubr.f32.mxu0 %v14528_v1  ;;  %12224 = vmatpush3.msra.mxu1 %v14532_v17  ;;  %v4857_v15 = vrot.slane %v14514_v41, 1  ;;  %v17420_v30 = vld [vmem:[#allocation18_spill] sm:$0xff]  ;;  %v4859_v41 = vrot.slane %v14792_v45, 1  ;;  %v17440_v1 = vld [vmem:[#allocation57_spill] sm:$0xff]  ;;  %v17456_v45 = vld [vmem:[#allocation15_spill] sm:$0xff] }
 0x1aa   : > { %v2372_v51 = vpop.f32.mrf.mxu0  ;;  %v2930_v7 = vpop.f32.mrf.mxu1  ;;  %12176 = vmatprep.mubr.f32.mxu1 %v17417_v52  ;;  %12275 = vmatprep.subr.mxu1 %v14532_v17 }
 0x1ab   : > { %17416 = vst [vmem:[#allocation11_spill] sm:$0xff] %v14779_v26  ;;  %v14787_v58 = vadd.f32 %v11829_v35, %v2379_v54  ;;  %v2373_v16 = vadd.f32 %v2372_v51, %v14707_v32  ;;  %v4858_v19 = vsel %vm261_vm1, %v4856_v46, %v4857_v15  ;;  %v17429_v46 = vld [vmem:[#allocation40_spill] sm:$0xff]  ;;  %v17457_v26 = vld [vmem:[#allocation79_spill] sm:$0xff] }
 0x1ac   : > { %v11806_v53 = vpop.f32.mrf.mxu0  ;;  %12117 = vmatmul.mubr.f32.gmra.mxu0 %v14539_v21  ;;  %v11866_v10 = vpop.f32.mrf.mxu1  ;;  %12177 = vmatmul.mubr.f32.gmra.mxu1 %v17420_v30  ;;  %v17439_v21 = vld [vmem:[#allocation60_spill] sm:$0xff] }
 0x1ad   : > { %17418 = vst [vmem:[#allocation177_spill] sm:$0xff] %v14787_v58  ;;  %v14796_v34 = vadd.f32 %v2534_v33, %v2373_v16  ;;  %v2391_v4 = vadd.f32 %v11806_v53, %v14712_v60  ;;  %12147 = vmatprep.mubr.f32.mxu0 %v17422_v62  ;;  %12179 = vmatprep.mubr.f32.mxu1 %v17423_v59  ;;  %v17426_v16 = vld [vmem:[#allocation32_spill] sm:$0xff]  ;;  %v233_v62 = vld [vmem:[%s16616_s1 + $0x14] sm:$0xf] }
 0x1ae   : > { %v2384_v35 = vpop.f32.mrf.mxu0  ;;  %v2942_v32 = vpop.f32.mrf.mxu1 }
 0x1af   : > { %17421 = vst [vmem:[#allocation179_spill] sm:$0xff] %v14796_v34  ;;  %v14802_v54 = vadd.f32 %v11832_v38, %v2391_v4  ;;  %v2385_v51 = vadd.f32 %v2384_v35, %v14717_v8  ;;  %v17428_v4 = vld [vmem:[#allocation33_spill] sm:$0xff]  ;;  %v4860_v35 = vsel %vm261_vm1, %v4857_v15, %v4859_v41 }
 0x1b0   : > { %v11837_v2 = vpop.f32.mrf.mxu0  ;;  %12148 = vmatmul.mubr.f32.vlgmr.msra.gmra.mxu0 %v17425_v9  ;;  %v11869_v33 = vpop.f32.mrf.mxu1  ;;  %12180 = vmatmul.mubr.f32.gmra.mxu1 %v17426_v16  ;;  %v4861_v9 = vsel %vm302_vm2, %v4858_v19, 0  ;;  %v4863_v15 = vsel %vm302_vm2, %v4860_v35, 0 }
 0x1b1   : > { %17424 = vst [vmem:[#allocation24_spill] sm:$0xff] %v14802_v54  ;;  %v14811_v60 = vadd.f32 %v2546_v11, %v2385_v51  ;;  %v14813_v53 = vadd.f32 %v11863_v27, %v11837_v2  ;;  %12198 = vmatpush3.msra.mxu0 %v14550_v0  ;;  %12150 = vmatprep.mubr.f32.mxu0 %v17428_v4  ;;  %v5985_v11 = vsel %vm335_vm0, %v233_v62, 0  ;;  %v17431_v27 = vld [vmem:[#allocation38_spill] sm:$0xff]  ;;  %v17432_v51 = vld [vmem:[#allocation43_spill] sm:$0xff]  ;;  %v14830_v19 = vand.u32 4294901760, %v4861_v9 }
 0x1b2   : > { %v2704_v8 = vpop.f32.mrf.mxu0  ;;  %v2954_v38 = vpop.f32.mrf.mxu1  ;;  %12182 = vmatprep.mubr.f32.mxu1 %v17429_v46  ;;  %12249 = vmatprep.subr.mxu0 %v17430_v40 }
 0x1b3   : > { %17427 = vst [vmem:[#allocation29_spill] sm:$0xff] %v14811_v60  ;;  %v14821_v13 = vadd.f32 %v2930_v7, %v2704_v8  ;;  %17435 = vst [vmem:[#allocation100_spill] sm:$0xff] %v14830_v19  ;;  %v14833_v8 = vand.u32 4294901760, %v5985_v11  ;;  %v14846_v35 = vsub.f32 %v4861_v9, %v14830_v19  ;;  %v17445_v9 = vld [vmem:[#allocation65_spill] sm:$0xff]  ;;  %v17453_v60 = vld [vmem:[#allocation74_spill] sm:$0xff] }
 0x1b4   : > { %v11840_v2 = vpop.f32.mrf.mxu0  ;;  %12151 = vmatmul.mubr.f32.gmra.mxu0 %v17431_v27  ;;  %v11872_v0 = vpop.f32.mrf.mxu1  ;;  %12183 = vmatmul.mubr.f32.gmra.mxu1 %v17432_v51 }
 0x1b5   : > { %v14826_v4 = vadd.f32 %v11866_v10, %v11840_v2  ;;  %12153 = vmatprep.mubr.f32.mxu0 %v17433_v61  ;;  %12185 = vmatprep.mubr.f32.mxu1 %v17434_v18  ;;  %v17437_v10 = vld [vmem:[#allocation52_spill] sm:$0xff]  ;;  %v14839_v2 = vand.u32 4294901760, %v4863_v15  ;;  %17441 = vst [vmem:[#allocation181_spill] sm:$0xff] %v14846_v35 }
 0x1b6   : > { %v2724_v7 = vpop.f32.mrf.mxu0  ;;  %v2966_v41 = vpop.f32.mrf.mxu1 }
 0x1b7   : > { %v14835_v62 = vadd.f32 %v2942_v32, %v2724_v7  ;;  %17438 = vst [vmem:[#allocation180_spill] sm:$0xff] %v14839_v2  ;;  %v14849_v7 = vsub.f32 %v5985_v11, %v14833_v8  ;;  %v14863_v11 = vand.u32 4294901760, %v14846_v35 }
 0x1b8   : > { %v11843_v27 = vpop.f32.mrf.mxu0  ;;  %12154 = vmatmul.mubr.f32.gmra.mxu0 %v17436_v37  ;;  %v11875_v56 = vpop.f32.mrf.mxu1  ;;  %12186 = vmatmul.mubr.f32.gmra.mxu1 %v17437_v10 }
 0x1b9   : > { %v14841_v61 = vadd.f32 %v11869_v33, %v11843_v27  ;;  %12156 = vmatprep.mubr.f32.mxu0 %v17439_v21  ;;  %12188 = vmatprep.mubr.f32.mxu1 %v17440_v1  ;;  %v17443_v33 = vld [vmem:[#allocation58_spill] sm:$0xff]  ;;  %v14856_v27 = vsub.f32 %v4863_v15, %v14839_v2  ;;  %17447 = vst [vmem:[#allocation183_spill] sm:$0xff] %v14863_v11  ;;  %v14866_v48 = vand.u32 4294901760, %v14849_v7 }
 0x1ba   : > { %v2744_v3 = vpop.f32.mrf.mxu0  ;;  %v2978_v32 = vpop.f32.mrf.mxu1  ;;  %v5077_v49 = vsub.f32 %v14846_v35, %v14863_v11 }
 0x1bb   : > { %v14851_v37 = vadd.f32 %v2954_v38, %v2744_v3  ;;  %17444 = vst [vmem:[#allocation182_spill] sm:$0xff] %v14856_v27  ;;  %17448 = vst [vmem:[#allocation184_spill] sm:$0xff] %v14866_v48 }
 0x1bc   : > { %v11846_v24 = vpop.f32.mrf.mxu0  ;;  %12157 = vmatmul.mubr.f32.gmra.mxu0 %v17442_v29  ;;  %v11878_v44 = vpop.f32.mrf.mxu1  ;;  %12189 = vmatmul.mubr.f32.gmra.mxu1 %v17443_v33  ;;  %v14892_v34 = vand.u32 4294901760, %v5077_v49 }
 0x1bd   : > { %v14858_v21 = vadd.f32 %v11872_v0, %v11846_v24  ;;  %12159 = vmatprep.mubr.f32.mxu0 %v17445_v9  ;;  %12191 = vmatprep.mubr.f32.mxu1 %v17446_v12  ;;  %v17450_v24 = vld [vmem:[#allocation72_spill] sm:$0xff]  ;;  %v14873_v0 = vand.u32 4294901760, %v14856_v27 }
 0x1be   : > { %v2764_v3 = vpop.f32.mrf.mxu0  ;;  %v2990_v38 = vpop.f32.mrf.mxu1  ;;  %17455 = vst [vmem:[#allocation186_spill] sm:$0xff] %v14892_v34 }
 0x1bf   : > { %v14868_v29 = vadd.f32 %v2966_v41, %v2764_v3  ;;  %17451 = vst [vmem:[#allocation185_spill] sm:$0xff] %v14873_v0 }
 0x1c0   : > { %v11849_v31 = vpop.f32.mrf.mxu0  ;;  %12160 = vmatmul.mubr.f32.gmra.mxu0 %v17449_v14  ;;  %v11881_v15 = vpop.f32.mrf.mxu1  ;;  %12192 = vmatmul.mubr.f32.gmra.mxu1 %v17450_v24  ;;  %v6247_v14 = vsub.f32 %v14849_v7, %v14866_v48 }
 0x1c1   : > { %v14875_v9 = vadd.f32 %v11875_v56, %v11849_v31  ;;  %12162 = vmatprep.mubr.f32.mxu0 %v17452_v20  ;;  %12194 = vmatprep.mubr.f32.mxu1 %v14830_v19  ;;  %v5087_v56 = vsub.f32 %v14856_v27, %v14873_v0  ;;  %v17454_v20 = vld [vmem:[#allocation78_spill] sm:$0xff] }
 0x1c2   : > { %v2784_v41 = vpop.f32.mrf.mxu0  ;;  %v3002_v3 = vpop.f32.mrf.mxu1  ;;  %v17473_v19 = vld [vmem:[#allocation62_spill] sm:$0xff] }
 0x1c3   : > { %v14883_v25 = vadd.f32 %v2978_v32, %v2784_v41  ;;  %v14895_v41 = vand.u32 4294901760, %v6247_v14  ;;  %v14900_v47 = vand.u32 4294901760, %v5087_v56  ;;  %v17460_v14 = vld [vmem:[#allocation25_spill] sm:$0xff] }
 0x1c4   : > { %v11852_v28 = vpop.f32.mrf.mxu0  ;;  %12163 = vmatmul.mubr.f32.gmra.mxu0 %v17453_v60  ;;  %v11884_v54 = vpop.f32.mrf.mxu1  ;;  %12195 = vmatmul.mubr.f32.gmra.mxu1 %v14839_v2  ;;  %v17469_v2 = vld [vmem:[#allocation51_spill] sm:$0xff] }
 0x1c5   : > { %v14889_v31 = vadd.f32 %v11878_v44, %v11852_v28  ;;  %12165 = vmatprep.mubr.f32.mxu0 %v17454_v20  ;;  %12225 = vmatprep.mubr.f32.mxu1 %v17456_v45  ;;  %17458 = vst [vmem:[#allocation15_spill] sm:$0xff] %v14900_v47  ;;  %v17459_v44 = vld [vmem:[#allocation17_spill] sm:$0xff] }
 0x1c6   : > { %v2804_v48 = vpop.f32.mrf.mxu0  ;;  %v3014_v32 = vpop.f32.mrf.mxu1 }
 0x1c7   : > { %v14897_v58 = vadd.f32 %v2990_v38, %v2804_v48 }
 0x1c8   : > { %v11855_v60 = vpop.f32.mrf.mxu0  ;;  %12166 = vmatmul.mubr.f32.gmra.mxu0 %v17457_v26  ;;  %v11915_v43 = vpop.f32.mrf.mxu1  ;;  %12226 = vmatmul.mubr.f32.vlgmr.msra.gmra.mxu1 %v17459_v44  ;;  %v17461_v26 = vld [vmem:[#allocation30_spill] sm:$0xff] }
 0x1c9   : > { %v14903_v28 = vadd.f32 %v11881_v15, %v11855_v60  ;;  %12168 = vmatprep.mubr.f32.mxu0 %v14892_v34  ;;  %12276 = vmatpush3.msra.mxu1 %v14532_v17  ;;  %v17462_v15 = vld [vmem:[#allocation12_spill] sm:$0xff]  ;;  %v17463_v44 = vld [vmem:[#allocation34_spill] sm:$0xff] }
 0x1ca   : > { %v2824_v49 = vpop.f32.mrf.mxu0  ;;  %v3273_v45 = vpop.f32.mrf.mxu1  ;;  %12228 = vmatprep.mubr.f32.mxu1 %v17460_v14  ;;  %12327 = vmatprep.subr.mxu1 %v14895_v41 }
 0x1cb   : > { %v14909_v48 = vadd.f32 %v3002_v3, %v2824_v49  ;;  %v17465_v49 = vld [vmem:[#allocation39_spill] sm:$0xff] }
 0x1cc   : > { %v11858_v38 = vpop.f32.mrf.mxu0  ;;  %12169 = vmatmul.mubr.f32.gmra.mxu0 %v14900_v47  ;;  %v11918_v56 = vpop.f32.mrf.mxu1  ;;  %12229 = vmatmul.mubr.f32.gmra.mxu1 %v17461_v26  ;;  %v17467_v26 = vld [vmem:[#allocation49_spill] sm:$0xff] }
 0x1cd   : > { %v14913_v60 = vadd.f32 %v11884_v54, %v11858_v38  ;;  %12199 = vmatprep.mubr.f32.mxu0 %v17462_v15  ;;  %12231 = vmatprep.mubr.f32.mxu1 %v17463_v44  ;;  %v17466_v54 = vld [vmem:[#allocation19_spill] sm:$0xff]  ;;  %v17468_v44 = vld [vmem:[#allocation21_spill] sm:$0xff] }
 0x1ce   : > { %v2844_v17 = vpop.f32.mrf.mxu0  ;;  %v3289_v34 = vpop.f32.mrf.mxu1 }
 0x1cf   : > { %v14917_v20 = vadd.f32 %v3014_v32, %v2844_v17 }
 0x1d0   : > { %v11889_v14 = vpop.f32.mrf.mxu0  ;;  %12200 = vmatmul.mubr.f32.vlgmr.msra.gmra.mxu0 %v17464_v39  ;;  %v11921_v3 = vpop.f32.mrf.mxu1  ;;  %12232 = vmatmul.mubr.f32.gmra.mxu1 %v17465_v49 }
 0x1d1   : > { %v3102_v47 = vadd.f32 %v11889_v14, %v14813_v53  ;;  %12250 = vmatpush3.msra.mxu0 %v17430_v40  ;;  %12202 = vmatprep.mubr.f32.mxu0 %v17466_v54  ;;  %v17470_v14 = vld [vmem:[#allocation31_spill] sm:$0xff] }
 0x1d2   : > { %v3094_v38 = vpop.f32.mrf.mxu0  ;;  %v3305_v15 = vpop.f32.mrf.mxu1  ;;  %12234 = vmatprep.mubr.f32.mxu1 %v17467_v26  ;;  %12301 = vmatprep.subr.mxu0 %v14833_v8  ;;  %v17471_v54 = vld [vmem:[#allocation55_spill] sm:$0xff] }
 0x1d3   : > { %v14926_v32 = vadd.f32 %v11915_v43, %v3102_v47  ;;  %v3095_v17 = vadd.f32 %v3094_v38, %v14821_v13  ;;  %v17472_v38 = vld [vmem:[#allocation35_spill] sm:$0xff] }
 0x1d4   : > { %v11892_v39 = vpop.f32.mrf.mxu0  ;;  %12203 = vmatmul.mubr.f32.gmra.mxu0 %v17468_v44  ;;  %v11924_v49 = vpop.f32.mrf.mxu1  ;;  %12235 = vmatmul.mubr.f32.gmra.mxu1 %v17469_v2  ;;  %v17477_v2 = vld [vmem:[#allocation68_spill] sm:$0xff] }
 0x1d5   : > { %v14931_v53 = vadd.f32 %v3273_v45, %v3095_v17  ;;  %v3116_v40 = vadd.f32 %v11892_v39, %v14826_v4  ;;  %12205 = vmatprep.mubr.f32.mxu0 %v17470_v14  ;;  %12237 = vmatprep.mubr.f32.mxu1 %v17471_v54  ;;  %v17474_v17 = vld [vmem:[#allocation45_spill] sm:$0xff]  ;;  %v17475_v39 = vld [vmem:[#allocation67_spill] sm:$0xff] }
 0x1d6   : > { %v3108_v26 = vpop.f32.mrf.mxu0  ;;  %v3321_v50 = vpop.f32.mrf.mxu1 }
 0x1d7   : > { %v14936_v43 = vadd.f32 %v11918_v56, %v3116_v40  ;;  %v3109_v13 = vadd.f32 %v3108_v26, %v14835_v62  ;;  %v17476_v40 = vld [vmem:[#allocation47_spill] sm:$0xff] }
 0x1d8   : > { %v11895_v47 = vpop.f32.mrf.mxu0  ;;  %12206 = vmatmul.mubr.f32.gmra.mxu0 %v17472_v38  ;;  %v11927_v44 = vpop.f32.mrf.mxu1  ;;  %12238 = vmatmul.mubr.f32.gmra.mxu1 %v17473_v19  ;;  %v17481_v19 = vld [vmem:[#allocation77_spill] sm:$0xff] }
 0x1d9   : > { %v14941_v45 = vadd.f32 %v3289_v34, %v3109_v13  ;;  %v3130_v4 = vadd.f32 %v11895_v47, %v14841_v61  ;;  %12208 = vmatprep.mubr.f32.mxu0 %v17474_v17  ;;  %12240 = vmatprep.mubr.f32.mxu1 %v17475_v39  ;;  %v17478_v13 = vld [vmem:[#allocation50_spill] sm:$0xff]  ;;  %v17479_v47 = vld [vmem:[#allocation75_spill] sm:$0xff] }
 0x1da   : > { %v3122_v54 = vpop.f32.mrf.mxu0  ;;  %v3337_v14 = vpop.f32.mrf.mxu1 }
 0x1db   : > { %v14946_v56 = vadd.f32 %v11921_v3, %v3130_v4  ;;  %v3123_v26 = vadd.f32 %v3122_v54, %v14851_v37  ;;  %v17480_v4 = vld [vmem:[#allocation56_spill] sm:$0xff] }
 0x1dc   : > { %v11898_v62 = vpop.f32.mrf.mxu0  ;;  %12209 = vmatmul.mubr.f32.gmra.mxu0 %v17476_v40  ;;  %v11930_v38 = vpop.f32.mrf.mxu1  ;;  %12241 = vmatmul.mubr.f32.gmra.mxu1 %v17477_v2  ;;  %v17526_v2 = vld [vmem:[#allocation157_spill] sm:$0xff] }
 0x1dd   : > { %v14951_v34 = vadd.f32 %v3305_v15, %v3123_v26  ;;  %v3144_v61 = vadd.f32 %v11898_v62, %v14858_v21  ;;  %12211 = vmatprep.mubr.f32.mxu0 %v17478_v13  ;;  %12243 = vmatprep.mubr.f32.mxu1 %v17479_v47  ;;  %v17482_v26 = vld [vmem:[#allocation63_spill] sm:$0xff] }
 0x1de   : > { %v3136_v39 = vpop.f32.mrf.mxu0  ;;  %v3353_v17 = vpop.f32.mrf.mxu1 }
 0x1df   : > { %v14956_v3 = vadd.f32 %v11924_v49, %v3144_v61  ;;  %v3137_v37 = vadd.f32 %v3136_v39, %v14868_v29  ;;  %v17483_v61 = vld [vmem:[#allocation64_spill] sm:$0xff] }
 0x1e0   : > { %v11901_v54 = vpop.f32.mrf.mxu0  ;;  %12212 = vmatmul.mubr.f32.gmra.mxu0 %v17480_v4  ;;  %v11933_v40 = vpop.f32.mrf.mxu1  ;;  %12244 = vmatmul.mubr.f32.gmra.mxu1 %v17481_v19  ;;  %v17523_v19 = vld [vmem:[#allocation156_spill] sm:$0xff] }
 0x1e1   : > { %v14961_v15 = vadd.f32 %v3321_v50, %v3137_v37  ;;  %v3158_v21 = vadd.f32 %v11901_v54, %v14875_v9  ;;  %12214 = vmatprep.mubr.f32.mxu0 %v17482_v26  ;;  %12246 = vmatprep.mubr.f32.mxu1 %v14863_v11  ;;  %v17484_v37 = vld [vmem:[#allocation71_spill] sm:$0xff]  ;;  %v17516_v26 = vld [vmem:[#allocation29_spill] sm:$0xff] }
 0x1e2   : > { %v3150_v62 = vpop.f32.mrf.mxu0  ;;  %v3369_v47 = vpop.f32.mrf.mxu1 }
 0x1e3   : > { %v14966_v49 = vadd.f32 %v11927_v44, %v3158_v21  ;;  %v3151_v29 = vadd.f32 %v3150_v62, %v14883_v25  ;;  %v17485_v62 = vld [vmem:[#allocation76_spill] sm:$0xff] }
 0x1e4   : > { %v11904_v39 = vpop.f32.mrf.mxu0  ;;  %12215 = vmatmul.mubr.f32.gmra.mxu0 %v17483_v61  ;;  %v11936_v4 = vpop.f32.mrf.mxu1  ;;  %12247 = vmatmul.mubr.f32.gmra.mxu1 %v14873_v0  ;;  %v17515_v0 = vld [vmem:[#allocation184_spill] sm:$0xff] }
 0x1e5   : > { %v14971_v50 = vadd.f32 %v3337_v14, %v3151_v29  ;;  %v3172_v9 = vadd.f32 %v11904_v39, %v14889_v31  ;;  %12217 = vmatprep.mubr.f32.mxu0 %v17484_v37  ;;  %12277 = vmatprep.mubr.f32.mxu1 %v17413_v36 }
 0x1e6   : > { %v3164_v54 = vpop.f32.mrf.mxu0  ;;  %v3385_v11 = vpop.f32.mrf.mxu1 }
 0x1e7   : > { %v14976_v44 = vadd.f32 %v11930_v38, %v3172_v9  ;;  %v3165_v25 = vadd.f32 %v3164_v54, %v14897_v58 }
 0x1e8   : > { %v11907_v21 = vpop.f32.mrf.mxu0  ;;  %12218 = vmatmul.mubr.f32.gmra.mxu0 %v17485_v62  ;;  %v11967_v61 = vpop.f32.mrf.mxu1  ;;  %12278 = vmatmul.mubr.f32.vlgmr.msra.gmra.mxu1 %v17415_v55 }
 0x1e9   : > { %v14981_v14 = vadd.f32 %v3353_v17, %v3165_v25  ;;  %v3186_v31 = vadd.f32 %v11907_v21, %v14903_v28  ;;  %12220 = vmatprep.mubr.f32.mxu0 %v14846_v35  ;;  %12328 = vmatpush3.msra.mxu1 %v14895_v41  ;;  %v17504_v35 = vld [vmem:[#allocation141_spill] sm:$0xff] }
 0x1ea   : > { %v3178_v29 = vpop.f32.mrf.mxu0  ;;  %v3629_v39 = vpop.f32.mrf.mxu1  ;;  %12280 = vmatprep.mubr.f32.mxu1 %v17417_v52  ;;  %12379 = vmatprep.subr.mxu1 %v14833_v8 }
 0x1eb   : > { %v14988_v58 = vadd.f32 %v11933_v40, %v3186_v31  ;;  %v3179_v38 = vadd.f32 %v3178_v29, %v14909_v48 }
 0x1ec   : > { %v11910_v9 = vpop.f32.mrf.mxu0  ;;  %12221 = vmatmul.mubr.f32.gmra.mxu0 %v14856_v27  ;;  %v11970_v17 = vpop.f32.mrf.mxu1  ;;  %12281 = vmatmul.mubr.f32.gmra.mxu1 %v17420_v30 }
 0x1ed   : > { %v14993_v28 = vadd.f32 %v3369_v47, %v3179_v38  ;;  %v3200_v41 = vadd.f32 %v11910_v9, %v14913_v60  ;;  %12251 = vmatprep.mubr.f32.mxu0 %v17413_v36  ;;  %12283 = vmatprep.mubr.f32.mxu1 %v17423_v59 }
 0x1ee   : > { %v3192_v54 = vpop.f32.mrf.mxu0  ;;  %v3641_v25 = vpop.f32.mrf.mxu1 }
 0x1ef   : > { %v14998_v40 = vadd.f32 %v11936_v4, %v3200_v41  ;;  %v3193_v48 = vadd.f32 %v3192_v54, %v14917_v20 }
 0x1f0   : > { %v11941_v21 = vpop.f32.mrf.mxu0  ;;  %12252 = vmatmul.mubr.f32.vlgmr.msra.gmra.mxu0 %v17415_v55  ;;  %v11973_v31 = vpop.f32.mrf.mxu1  ;;  %12284 = vmatmul.mubr.f32.gmra.mxu1 %v17426_v16 }
 0x1f1   : > { %v15003_v47 = vadd.f32 %v3385_v11, %v3193_v48  ;;  %v3474_v60 = vadd.f32 %v11941_v21, %v14926_v32  ;;  %12302 = vmatpush3.msra.mxu0 %v14833_v8  ;;  %12254 = vmatprep.mubr.f32.mxu0 %v17417_v52  ;;  %v17540_v52 = vld [vmem:[#allocation173_spill] sm:$0xff] }
 0x1f2   : > { %v3467_v36 = vpop.f32.mrf.mxu0  ;;  %v3653_v29 = vpop.f32.mrf.mxu1  ;;  %12286 = vmatprep.mubr.f32.mxu1 %v17429_v46  ;;  %12353 = vmatprep.subr.mxu0 %v14849_v7 }
 0x1f3   : > { %v3636_v20 = vadd.f32 %v11967_v61, %v3474_v60  ;;  %v3468_v55 = vadd.f32 %v3467_v36, %v14931_v53 }
 0x1f4   : > { %v11944_v4 = vpop.f32.mrf.mxu0  ;;  %12255 = vmatmul.mubr.f32.gmra.mxu0 %v17420_v30  ;;  %v11976_v11 = vpop.f32.mrf.mxu1  ;;  %12287 = vmatmul.mubr.f32.gmra.mxu1 %v17432_v51 }
 0x1f5   : > { %v15014_v32 = vadd.f32 %v3636_v20, %v14724_v57  ;;  %v3630_v38 = vadd.f32 %v3629_v39, %v3468_v55  ;;  %v3486_v9 = vadd.f32 %v11944_v4, %v14936_v43  ;;  %12257 = vmatprep.mubr.f32.mxu0 %v17423_v59  ;;  %12289 = vmatprep.mubr.f32.mxu1 %v17434_v18 }
 0x1f6   : > { %v3479_v41 = vpop.f32.mrf.mxu0  ;;  %v3665_v61 = vpop.f32.mrf.mxu1 }
 0x1f7   : > { %v15020_v53 = vadd.f32 %v3630_v38, %v14729_v6  ;;  %v3648_v54 = vadd.f32 %v11970_v17, %v3486_v9  ;;  %v3480_v48 = vadd.f32 %v3479_v41, %v14941_v45 }
 0x1f8   : > { %v11947_v21 = vpop.f32.mrf.mxu0  ;;  %12258 = vmatmul.mubr.f32.gmra.mxu0 %v17426_v16  ;;  %v11979_v57 = vpop.f32.mrf.mxu1  ;;  %12290 = vmatmul.mubr.f32.gmra.mxu1 %v17437_v10 }
 0x1f9   : > { %v15026_v43 = vadd.f32 %v3648_v54, %v14734_v42  ;;  %v3642_v39 = vadd.f32 %v3641_v25, %v3480_v48  ;;  %v3498_v60 = vadd.f32 %v11947_v21, %v14946_v56  ;;  %12260 = vmatprep.mubr.f32.mxu0 %v17429_v46  ;;  %12292 = vmatprep.mubr.f32.mxu1 %v17440_v1  ;;  %v17486_v48 = vld [vmem:[#allocation100_spill] sm:$0xff]  ;;  %v17487_v21 = vld [vmem:[#allocation89_spill] sm:$0xff] }
 0x1fa   : > { %v3491_v6 = vpop.f32.mrf.mxu0  ;;  %v3677_v17 = vpop.f32.mrf.mxu1  ;;  %v17539_v46 = vld [vmem:[#allocation172_spill] sm:$0xff] }
 0x1fb   : > { %v15032_v45 = vadd.f32 %v3642_v39, %v14739_v23  ;;  %v3660_v36 = vadd.f32 %v11973_v31, %v3498_v60  ;;  %v3492_v20 = vadd.f32 %v3491_v6, %v14951_v34 }
 0x1fc   : > { %v11950_v55 = vpop.f32.mrf.mxu0  ;;  %12261 = vmatmul.mubr.f32.gmra.mxu0 %v17432_v51  ;;  %v11982_v42 = vpop.f32.mrf.mxu1  ;;  %12293 = vmatmul.mubr.f32.gmra.mxu1 %v17443_v33  ;;  %v17536_v51 = vld [vmem:[#allocation170_spill] sm:$0xff] }
 0x1fd   : > { %v15038_v56 = vadd.f32 %v3660_v36, %v14744_v5  ;;  %v3654_v25 = vadd.f32 %v3653_v29, %v3492_v20  ;;  %v3510_v4 = vadd.f32 %v11950_v55, %v14956_v3  ;;  %12263 = vmatprep.mubr.f32.mxu0 %v17434_v18  ;;  %12295 = vmatprep.mubr.f32.mxu1 %v17446_v12  ;;  %v17489_v36 = vld [vmem:[#allocation180_spill] sm:$0xff] }
 0x1fe   : > { %v3503_v23 = vpop.f32.mrf.mxu0  ;;  %v3689_v31 = vpop.f32.mrf.mxu1 }
 0x1ff   : > { %v15044_v34 = vadd.f32 %v3654_v25, %v14749_v63  ;;  %v3672_v38 = vadd.f32 %v11976_v11, %v3510_v4  ;;  %v3504_v9 = vadd.f32 %v3503_v23, %v14961_v15  ;;  %v17492_v25 = vld [vmem:[#allocation7_spill] sm:$0xff] }
 0x200   : > { %v11953_v41 = vpop.f32.mrf.mxu0  ;;  %12264 = vmatmul.mubr.f32.gmra.mxu0 %v17437_v10  ;;  %v11985_v5 = vpop.f32.mrf.mxu1  ;;  %12296 = vmatmul.mubr.f32.gmra.mxu1 %v17450_v24 }
 0x201   : > { %v15050_v3 = vadd.f32 %v3672_v38, %v14754_v22  ;;  %v3666_v29 = vadd.f32 %v3665_v61, %v3504_v9  ;;  %v3522_v54 = vadd.f32 %v11953_v41, %v14966_v49  ;;  %12266 = vmatprep.mubr.f32.mxu0 %v17440_v1  ;;  %12298 = vmatprep.mubr.f32.mxu1 %v17486_v48  ;;  %v17490_v61 = vld [vmem:[#allocation6_spill] sm:$0xff]  ;;  %v17533_v1 = vld [vmem:[#allocation155_spill] sm:$0xff] }
 0x202   : > { %v3515_v63 = vpop.f32.mrf.mxu0  ;;  %v3701_v11 = vpop.f32.mrf.mxu1 }
 0x203   : > { %v15056_v15 = vadd.f32 %v3666_v29, %v17487_v21  ;;  %v3684_v39 = vadd.f32 %v11979_v57, %v3522_v54  ;;  %v3516_v60 = vadd.f32 %v3515_v63, %v14971_v50  ;;  %v17493_v50 = vld [vmem:[#allocation84_spill] sm:$0xff] }
 0x204   : > { %v11956_v6 = vpop.f32.mrf.mxu0  ;;  %12267 = vmatmul.mubr.f32.gmra.mxu0 %v17443_v33  ;;  %v11988_v22 = vpop.f32.mrf.mxu1  ;;  %12299 = vmatmul.mubr.f32.gmra.mxu1 %v17489_v36 }
 0x205   : > { %17488 = vst [vmem:[#allocation17_spill] sm:$0xff] %v15056_v15  ;;  %v15062_v49 = vadd.f32 %v3684_v39, %v17490_v61  ;;  %v3678_v20 = vadd.f32 %v3677_v17, %v3516_v60  ;;  %v3534_v55 = vadd.f32 %v11956_v6, %v14976_v44  ;;  %12269 = vmatprep.mubr.f32.mxu0 %v17446_v12  ;;  %v17495_v17 = vld [vmem:[#allocation20_spill] sm:$0xff]  ;;  %v17496_v44 = vld [vmem:[#allocation10_spill] sm:$0xff]  ;;  %v17499_v61 = vld [vmem:[#allocation11_spill] sm:$0xff] }
 0x206   : > { %12329 = vmatprep.mubr.f32.mxu1 %v17492_v25  ;;  %v3527_v57 = vpop.f32.mrf.mxu0  ;;  %v3713_v4 = vpop.f32.mrf.mxu1  ;;  %v17498_v6 = vld [vmem:[#allocation22_spill] sm:$0xff]  ;;  %v17529_v12 = vld [vmem:[#allocation164_spill] sm:$0xff] }
 0x207   : > { %17491 = vst [vmem:[#allocation12_spill] sm:$0xff] %v15062_v49  ;;  %v15068_v23 = vadd.f32 %v3678_v20, %v17493_v50  ;;  %v3696_v38 = vadd.f32 %v11982_v42, %v3534_v55  ;;  %v3528_v9 = vadd.f32 %v3527_v57, %v14981_v14  ;;  %v13000_v42 = vld [vmem:[%s13220_s28 + $0xc0] sm:$0xff]  ;;  %v13001_v57 = vld [vmem:[%s13220_s28 + $0xc8] sm:$0xff]  ;;  %v17551_v49 = vld [vmem:[#allocation28_spill] sm:$0xff] }
 0x208   : > { %v11959_v41 = vpop.f32.mrf.mxu0  ;;  %12270 = vmatmul.mubr.f32.gmra.mxu0 %v17450_v24  ;;  %v12019_v29 = vpop.f32.mrf.mxu1  ;;  %12330 = vmatmul.mubr.f32.vlgmr.msra.gmra.mxu1 %v17495_v17  ;;  %v5975_v39 = vrot.slane %v13000_v42, 2 }
 0x209   : > { %17494 = vst [vmem:[#allocation13_spill] sm:$0xff] %v15068_v23  ;;  %v15074_v54 = vadd.f32 %v3696_v38, %v17496_v44  ;;  %v3690_v63 = vadd.f32 %v3689_v31, %v3528_v9  ;;  %v3546_v21 = vadd.f32 %v11959_v41, %v14988_v58  ;;  %12272 = vmatprep.mubr.f32.mxu0 %v17486_v48  ;;  %v5976_v58 = vrot.slane %v13001_v57, 2  ;;  %v17501_v9 = vld [vmem:[#allocation133_spill] sm:$0xff] }
 0x20a   : > { %12380 = vmatpush3.msra.mxu1 %v14833_v8  ;;  %v3539_v14 = vpop.f32.mrf.mxu0  ;;  %v4046_v60 = vpop.f32.mrf.mxu1  ;;  %12332 = vmatprep.mubr.f32.mxu1 %v17498_v6  ;;  %v17502_v41 = vld [vmem:[#allocation177_spill] sm:$0xff] }
 0x20b   : > { %17497 = vst [vmem:[#allocation89_spill] sm:$0xff] %v15074_v54  ;;  %12431 = vmatprep.subr.mxu1 %v14833_v8  ;;  %v15083_v20 = vadd.f32 %v3690_v63, %v17499_v61  ;;  %v3708_v55 = vadd.f32 %v11985_v5, %v3546_v21  ;;  %v3540_v31 = vadd.f32 %v3539_v14, %v14993_v28  ;;  %v17505_v63 = vld [vmem:[#allocation23_spill] sm:$0xff]  ;;  %v17506_v21 = vld [vmem:[#allocation178_spill] sm:$0xff] }
 0x20c   : > { %v11962_v50 = vpop.f32.mrf.mxu0  ;;  %12273 = vmatmul.mubr.f32.gmra.mxu0 %v17489_v36  ;;  %v12022_v38 = vpop.f32.mrf.mxu1  ;;  %12333 = vmatmul.mubr.f32.gmra.mxu1 %v17501_v9  ;;  %v5978_v14 = vrot.slane %v17506_v21, 2  ;;  %v17507_v61 = vld [vmem:[#allocation179_spill] sm:$0xff]  ;;  %v17527_v36 = vld [vmem:[#allocation148_spill] sm:$0xff] }
 0x20d   : > { %17500 = vst [vmem:[#allocation6_spill] sm:$0xff] %v15083_v20  ;;  %v15090_v44 = vadd.f32 %v3708_v55, %v17502_v41  ;;  %v3702_v42 = vadd.f32 %v3701_v11, %v3540_v31  ;;  %v3558_v27 = vadd.f32 %v11962_v50, %v14998_v40  ;;  %12303 = vmatprep.mubr.f32.mxu0 %v17504_v35  ;;  %v17509_v11 = vld [vmem:[#allocation143_spill] sm:$0xff]  ;;  %v17510_v31 = vld [vmem:[#allocation137_spill] sm:$0xff]  ;;  %v234_v35 = vld [vmem:[%s16616_s1 + $0x18] sm:$0xf] }
 0x20e   : > { %12335 = vmatprep.mubr.f32.mxu1 %v17505_v63  ;;  %v3551_v5 = vpop.f32.mrf.mxu0  ;;  %v4058_v28 = vpop.f32.mrf.mxu1  ;;  %v5977_v55 = vsel %vm2556_vm3, %v5975_v39, %v5976_v58  ;;  %v17511_v50 = vld [vmem:[#allocation24_spill] sm:$0xff]  ;;  %v17514_v39 = vld [vmem:[#allocation37_spill] sm:$0xff]  ;;  %v17544_v20 = vld [vmem:[#allocation175_spill] sm:$0xff] }
 0x20f   : > { %17503 = vst [vmem:[#allocation7_spill] sm:$0xff] %v15090_v44  ;;  %v15097_v57 = vadd.f32 %v3702_v42, %v17507_v61  ;;  %v3720_v62 = vadd.f32 %v11988_v22, %v3558_v27  ;;  %v3552_v37 = vadd.f32 %v3551_v5, %v15003_v47  ;;  %v17513_v27 = vld [vmem:[#allocation147_spill] sm:$0xff]  ;;  %v5980_v5 = vsel %vm302_vm2, %v5977_v55, 0  ;;  %v17520_v55 = vld [vmem:[#allocation126_spill] sm:$0xff] }
 0x210   : > { %v11993_v41 = vpop.f32.mrf.mxu0  ;;  %12304 = vmatmul.mubr.f32.vlgmr.msra.gmra.mxu0 %v17509_v11  ;;  %v12025_v40 = vpop.f32.mrf.mxu1  ;;  %12336 = vmatmul.mubr.f32.gmra.mxu1 %v17510_v31  ;;  %v5979_v11 = vsel %vm2556_vm3, %v5976_v58, %v5978_v14  ;;  %v17521_v58 = vld [vmem:[#allocation54_spill] sm:$0xff]  ;;  %v15129_v14 = vand.u32 4294901760, %v5980_v5 }
 0x211   : > { %17508 = vst [vmem:[#allocation84_spill] sm:$0xff] %v15097_v57  ;;  %v15107_v21 = vadd.f32 %v3720_v62, %v17511_v50  ;;  %v3714_v42 = vadd.f32 %v3713_v4, %v3552_v37  ;;  %v15109_v61 = vadd.f32 %v12019_v29, %v11993_v41  ;;  %12354 = vmatpush3.msra.mxu0 %v14849_v7  ;;  %v7101_v4 = vsel %vm335_vm0, %v234_v35, 0  ;;  %v17518_v29 = vld [vmem:[#allocation149_spill] sm:$0xff]  ;;  %v17519_v50 = vld [vmem:[#allocation42_spill] sm:$0xff]  ;;  %v17543_v57 = vld [vmem:[#allocation27_spill] sm:$0xff] }
 0x212   : > { %12306 = vmatprep.mubr.f32.mxu0 %v17513_v27  ;;  %v3820_v47 = vpop.f32.mrf.mxu0  ;;  %v4070_v22 = vpop.f32.mrf.mxu1  ;;  %12338 = vmatprep.mubr.f32.mxu1 %v17514_v39  ;;  %17522 = vst [vmem:[#allocation11_spill] sm:$0xff] %v15129_v14 }
 0x213   : > { %17512 = vst [vmem:[#allocation20_spill] sm:$0xff] %v15107_v21  ;;  %12405 = vmatprep.subr.mxu0 %v17515_v0  ;;  %v15118_v62 = vadd.f32 %v3714_v42, %v17516_v26  ;;  %v15120_v37 = vadd.f32 %v4046_v60, %v3820_v47  ;;  %v5982_v26 = vsel %vm302_vm2, %v5979_v11, 0  ;;  %v15132_v47 = vand.u32 4294901760, %v7101_v4 }
 0x214   : > { %v11996_v7 = vpop.f32.mrf.mxu0  ;;  %12307 = vmatmul.mubr.f32.gmra.mxu0 %v17518_v29  ;;  %v12028_v41 = vpop.f32.mrf.mxu1  ;;  %12339 = vmatmul.mubr.f32.gmra.mxu1 %v17519_v50  ;;  %v15145_v11 = vsub.f32 %v5980_v5, %v15129_v14  ;;  %v17532_v5 = vld [vmem:[#allocation167_spill] sm:$0xff] }
 0x215   : > { %17517 = vst [vmem:[#allocation10_spill] sm:$0xff] %v15118_v62  ;;  %v15125_v27 = vadd.f32 %v12022_v38, %v11996_v7  ;;  %12309 = vmatprep.mubr.f32.mxu0 %v17520_v55  ;;  %12341 = vmatprep.mubr.f32.mxu1 %v17521_v58  ;;  %v17524_v38 = vld [vmem:[#allocation146_spill] sm:$0xff]  ;;  %v15138_v7 = vand.u32 4294901760, %v5982_v26 }
 0x216   : > { %v3840_v60 = vpop.f32.mrf.mxu0  ;;  %v4082_v42 = vpop.f32.mrf.mxu1  ;;  %17528 = vst [vmem:[#allocation141_spill] sm:$0xff] %v15145_v11 }
 0x217   : > { %v15134_v35 = vadd.f32 %v4058_v28, %v3840_v60  ;;  %17525 = vst [vmem:[#allocation177_spill] sm:$0xff] %v15138_v7  ;;  %v15148_v60 = vsub.f32 %v7101_v4, %v15132_v47  ;;  %v15162_v4 = vand.u32 4294901760, %v15145_v11 }
 0x218   : > { %v11999_v29 = vpop.f32.mrf.mxu0  ;;  %12310 = vmatmul.mubr.f32.gmra.mxu0 %v17523_v19  ;;  %v12031_v13 = vpop.f32.mrf.mxu1  ;;  %12342 = vmatmul.mubr.f32.gmra.mxu1 %v17524_v38 }
 0x219   : > { %v15140_v55 = vadd.f32 %v12025_v40, %v11999_v29  ;;  %12312 = vmatprep.mubr.f32.mxu0 %v17526_v2  ;;  %12344 = vmatprep.mubr.f32.mxu1 %v17527_v36  ;;  %v17530_v40 = vld [vmem:[#allocation153_spill] sm:$0xff]  ;;  %v15155_v29 = vsub.f32 %v5982_v26, %v15138_v7  ;;  %17534 = vst [vmem:[#allocation179_spill] sm:$0xff] %v15162_v4  ;;  %v15165_v10 = vand.u32 4294901760, %v15148_v60 }
 0x21a   : > { %v3860_v48 = vpop.f32.mrf.mxu0  ;;  %v4094_v28 = vpop.f32.mrf.mxu1  ;;  %v6196_v16 = vsub.f32 %v15145_v11, %v15162_v4 }
 0x21b   : > { %v15150_v19 = vadd.f32 %v4070_v22, %v3860_v48  ;;  %17531 = vst [vmem:[#allocation178_spill] sm:$0xff] %v15155_v29  ;;  %17535 = vst [vmem:[#allocation143_spill] sm:$0xff] %v15165_v10 }
 0x21c   : > { %v12002_v24 = vpop.f32.mrf.mxu0  ;;  %12313 = vmatmul.mubr.f32.gmra.mxu0 %v17529_v12  ;;  %v12034_v33 = vpop.f32.mrf.mxu1  ;;  %12345 = vmatmul.mubr.f32.gmra.mxu1 %v17530_v40  ;;  %v15191_v21 = vand.u32 4294901760, %v6196_v16 }
 0x21d   : > { %v15157_v2 = vadd.f32 %v12028_v41, %v12002_v24  ;;  %12315 = vmatprep.mubr.f32.mxu0 %v17532_v5  ;;  %12347 = vmatprep.mubr.f32.mxu1 %v17533_v1  ;;  %v17537_v24 = vld [vmem:[#allocation160_spill] sm:$0xff]  ;;  %v15172_v41 = vand.u32 4294901760, %v15155_v29 }
 0x21e   : > { %v3880_v48 = vpop.f32.mrf.mxu0  ;;  %v4106_v22 = vpop.f32.mrf.mxu1  ;;  %17542 = vst [vmem:[#allocation184_spill] sm:$0xff] %v15191_v21 }
 0x21f   : > { %v15167_v12 = vadd.f32 %v4082_v42, %v3880_v48  ;;  %17538 = vst [vmem:[#allocation24_spill] sm:$0xff] %v15172_v41 }
 0x220   : > { %v12005_v18 = vpop.f32.mrf.mxu0  ;;  %12316 = vmatmul.mubr.f32.gmra.mxu0 %v17536_v51  ;;  %v12037_v26 = vpop.f32.mrf.mxu1  ;;  %12348 = vmatmul.mubr.f32.gmra.mxu1 %v17537_v24  ;;  %v7363_v51 = vsub.f32 %v15148_v60, %v15165_v10 }
 0x221   : > { %v15174_v5 = vadd.f32 %v12031_v13, %v12005_v18  ;;  %12318 = vmatprep.mubr.f32.mxu0 %v17539_v46  ;;  %12350 = vmatprep.mubr.f32.mxu1 %v15129_v14  ;;  %v6206_v18 = vsub.f32 %v15155_v29, %v15172_v41  ;;  %v17541_v46 = vld [vmem:[#allocation174_spill] sm:$0xff] }
 0x222   : > { %v3900_v42 = vpop.f32.mrf.mxu0  ;;  %v4118_v48 = vpop.f32.mrf.mxu1  ;;  %v17560_v14 = vld [vmem:[#allocation158_spill] sm:$0xff] }
 0x223   : > { %v15182_v59 = vadd.f32 %v4094_v28, %v3900_v42  ;;  %v15194_v42 = vand.u32 4294901760, %v7363_v51  ;;  %v15199_v54 = vand.u32 4294901760, %v6206_v18  ;;  %v17547_v51 = vld [vmem:[#allocation41_spill] sm:$0xff] }
 0x224   : > { %v12008_v30 = vpop.f32.mrf.mxu0  ;;  %12319 = vmatmul.mubr.f32.gmra.mxu0 %v17540_v52  ;;  %v12040_v62 = vpop.f32.mrf.mxu1  ;;  %12351 = vmatmul.mubr.f32.gmra.mxu1 %v15138_v7  ;;  %v17556_v7 = vld [vmem:[#allocation150_spill] sm:$0xff] }
 0x225   : > { %v15188_v13 = vadd.f32 %v12034_v33, %v12008_v30  ;;  %12321 = vmatprep.mubr.f32.mxu0 %v17541_v46  ;;  %12381 = vmatprep.mubr.f32.mxu1 %v17543_v57  ;;  %17545 = vst [vmem:[#allocation29_spill] sm:$0xff] %v15199_v54  ;;  %v17546_v30 = vld [vmem:[#allocation36_spill] sm:$0xff] }
 0x226   : > { %v3920_v10 = vpop.f32.mrf.mxu0  ;;  %v4130_v28 = vpop.f32.mrf.mxu1 }
 0x227   : > { %v15196_v44 = vadd.f32 %v4106_v22, %v3920_v10 }
 0x228   : > { %v12011_v52 = vpop.f32.mrf.mxu0  ;;  %12322 = vmatmul.mubr.f32.gmra.mxu0 %v17544_v20  ;;  %v12071_v23 = vpop.f32.mrf.mxu1  ;;  %12382 = vmatmul.mubr.f32.vlgmr.msra.gmra.mxu1 %v17546_v30  ;;  %v17548_v20 = vld [vmem:[#allocation138_spill] sm:$0xff]  ;;  %v17550_v30 = vld [vmem:[#allocation139_spill] sm:$0xff] }
 0x229   : > { %v15202_v33 = vadd.f32 %v12037_v26, %v12011_v52  ;;  %12324 = vmatprep.mubr.f32.mxu0 %v15191_v21  ;;  %12432 = vmatpush3.msra.mxu1 %v14833_v8  ;;  %v17549_v26 = vld [vmem:[#allocation14_spill] sm:$0xff] }
 0x22a   : > { %v3940_v16 = vpop.f32.mrf.mxu0  ;;  %v4389_v57 = vpop.f32.mrf.mxu1  ;;  %12384 = vmatprep.mubr.f32.mxu1 %v17547_v51  ;;  %12483 = vmatprep.subr.mxu1 %v15194_v42 }
 0x22b   : > { %v15208_v10 = vadd.f32 %v4118_v48, %v3940_v16  ;;  %v17552_v16 = vld [vmem:[#allocation142_spill] sm:$0xff] }
 0x22c   : > { %v12014_v22 = vpop.f32.mrf.mxu0  ;;  %12325 = vmatmul.mubr.f32.gmra.mxu0 %v15199_v54  ;;  %v12074_v18 = vpop.f32.mrf.mxu1  ;;  %12385 = vmatmul.mubr.f32.gmra.mxu1 %v17548_v20  ;;  %v17554_v20 = vld [vmem:[#allocation144_spill] sm:$0xff] }
 0x22d   : > { %v15212_v52 = vadd.f32 %v12040_v62, %v12014_v22  ;;  %12355 = vmatprep.mubr.f32.mxu0 %v17549_v26  ;;  %12387 = vmatprep.mubr.f32.mxu1 %v17550_v30  ;;  %v17553_v62 = vld [vmem:[#allocation134_spill] sm:$0xff]  ;;  %v17555_v30 = vld [vmem:[#allocation135_spill] sm:$0xff] }
 0x22e   : > { %v3960_v8 = vpop.f32.mrf.mxu0  ;;  %v4405_v21 = vpop.f32.mrf.mxu1 }
 0x22f   : > { %v15216_v46 = vadd.f32 %v4130_v28, %v3960_v8 }
 0x230   : > { %v12045_v51 = vpop.f32.mrf.mxu0  ;;  %12356 = vmatmul.mubr.f32.vlgmr.msra.gmra.mxu0 %v17551_v49  ;;  %v12077_v48 = vpop.f32.mrf.mxu1  ;;  %12388 = vmatmul.mubr.f32.gmra.mxu1 %v17552_v16 }
 0x231   : > { %v4218_v54 = vadd.f32 %v12045_v51, %v15109_v61  ;;  %12406 = vmatpush3.msra.mxu0 %v17515_v0  ;;  %12358 = vmatprep.mubr.f32.mxu0 %v17553_v62  ;;  %v17557_v51 = vld [vmem:[#allocation136_spill] sm:$0xff]  ;;  %v17558_v62 = vld [vmem:[#allocation151_spill] sm:$0xff] }
 0x232   : > { %v4210_v22 = vpop.f32.mrf.mxu0  ;;  %v4421_v26 = vpop.f32.mrf.mxu1  ;;  %12390 = vmatprep.mubr.f32.mxu1 %v17554_v20  ;;  %12457 = vmatprep.subr.mxu0 %v15132_v47 }
 0x233   : > { %v15225_v28 = vadd.f32 %v12071_v23, %v4218_v54  ;;  %v4211_v8 = vadd.f32 %v4210_v22, %v15120_v37  ;;  %v17559_v22 = vld [vmem:[#allocation140_spill] sm:$0xff] }
 0x234   : > { %v12048_v49 = vpop.f32.mrf.mxu0  ;;  %12359 = vmatmul.mubr.f32.gmra.mxu0 %v17555_v30  ;;  %v12080_v16 = vpop.f32.mrf.mxu1  ;;  %12391 = vmatmul.mubr.f32.gmra.mxu1 %v17556_v7  ;;  %v17564_v7 = vld [vmem:[#allocation165_spill] sm:$0xff] }
 0x235   : > { %v15230_v61 = vadd.f32 %v4389_v57, %v4211_v8  ;;  %v4232_v0 = vadd.f32 %v12048_v49, %v15125_v27  ;;  %12361 = vmatprep.mubr.f32.mxu0 %v17557_v51  ;;  %12393 = vmatprep.mubr.f32.mxu1 %v17558_v62  ;;  %v17561_v8 = vld [vmem:[#allocation53_spill] sm:$0xff] }
 0x236   : > { %v4224_v20 = vpop.f32.mrf.mxu0  ;;  %v4437_v15 = vpop.f32.mrf.mxu1  ;;  %v17562_v49 = vld [vmem:[#allocation161_spill] sm:$0xff] }
 0x237   : > { %v15235_v23 = vadd.f32 %v12074_v18, %v4232_v0  ;;  %v4225_v54 = vadd.f32 %v4224_v20, %v15134_v35  ;;  %v17563_v0 = vld [vmem:[#allocation59_spill] sm:$0xff] }
 0x238   : > { %v12051_v37 = vpop.f32.mrf.mxu0  ;;  %12362 = vmatmul.mubr.f32.gmra.mxu0 %v17559_v22  ;;  %v12083_v30 = vpop.f32.mrf.mxu1  ;;  %12394 = vmatmul.mubr.f32.gmra.mxu1 %v17560_v14  ;;  %v17568_v14 = vld [vmem:[#allocation171_spill] sm:$0xff] }
 0x239   : > { %v15240_v57 = vadd.f32 %v4405_v21, %v4225_v54  ;;  %v4246_v27 = vadd.f32 %v12051_v37, %v15140_v55  ;;  %12364 = vmatprep.mubr.f32.mxu0 %v17561_v8  ;;  %12396 = vmatprep.mubr.f32.mxu1 %v17562_v49  ;;  %v17565_v54 = vld [vmem:[#allocation145_spill] sm:$0xff]  ;;  %v17566_v37 = vld [vmem:[#allocation168_spill] sm:$0xff] }
 0x23a   : > { %v4238_v62 = vpop.f32.mrf.mxu0  ;;  %v4453_v51 = vpop.f32.mrf.mxu1 }
 0x23b   : > { %v15245_v18 = vadd.f32 %v12077_v48, %v4246_v27  ;;  %v4239_v20 = vadd.f32 %v4238_v62, %v15150_v19  ;;  %v17567_v27 = vld [vmem:[#allocation152_spill] sm:$0xff] }
 0x23c   : > { %v12054_v35 = vpop.f32.mrf.mxu0  ;;  %12365 = vmatmul.mubr.f32.gmra.mxu0 %v17563_v0  ;;  %v12086_v22 = vpop.f32.mrf.mxu1  ;;  %12397 = vmatmul.mubr.f32.gmra.mxu1 %v17564_v7 }
 0x23d   : > { %v15250_v21 = vadd.f32 %v4421_v26, %v4239_v20  ;;  %v4260_v55 = vadd.f32 %v12054_v35, %v15157_v2  ;;  %12367 = vmatprep.mubr.f32.mxu0 %v17565_v54  ;;  %12399 = vmatprep.mubr.f32.mxu1 %v17566_v37  ;;  %v17569_v20 = vld [vmem:[#allocation154_spill] sm:$0xff]  ;;  %v17609_v54 = vld [vmem:[#allocation121_spill] sm:$0xff] }
 0x23e   : > { %v4252_v49 = vpop.f32.mrf.mxu0  ;;  %v4469_v8 = vpop.f32.mrf.mxu1 }
 0x23f   : > { %v15255_v48 = vadd.f32 %v12080_v16, %v4260_v55  ;;  %v4253_v19 = vadd.f32 %v4252_v49, %v15167_v12  ;;  %v17570_v55 = vld [vmem:[#allocation159_spill] sm:$0xff] }
 0x240   : > { %v12057_v62 = vpop.f32.mrf.mxu0  ;;  %12368 = vmatmul.mubr.f32.gmra.mxu0 %v17567_v27  ;;  %v12089_v0 = vpop.f32.mrf.mxu1  ;;  %12400 = vmatmul.mubr.f32.gmra.mxu1 %v17568_v14 }
 0x241   : > { %v15260_v26 = vadd.f32 %v4437_v15, %v4253_v19  ;;  %v4274_v2 = vadd.f32 %v12057_v62, %v15174_v5  ;;  %12370 = vmatprep.mubr.f32.mxu0 %v17569_v20  ;;  %12402 = vmatprep.mubr.f32.mxu1 %v15162_v4  ;;  %v17571_v19 = vld [vmem:[#allocation162_spill] sm:$0xff] }
 0x242   : > { %v4266_v35 = vpop.f32.mrf.mxu0  ;;  %v4485_v37 = vpop.f32.mrf.mxu1  ;;  %v17608_v20 = vld [vmem:[#allocation106_spill] sm:$0xff] }
 0x243   : > { %v15265_v16 = vadd.f32 %v12083_v30, %v4274_v2  ;;  %v4267_v12 = vadd.f32 %v4266_v35, %v15182_v59  ;;  %v17572_v35 = vld [vmem:[#allocation166_spill] sm:$0xff] }
 0x244   : > { %v12060_v49 = vpop.f32.mrf.mxu0  ;;  %12371 = vmatmul.mubr.f32.gmra.mxu0 %v17570_v55  ;;  %v12092_v27 = vpop.f32.mrf.mxu1  ;;  %12403 = vmatmul.mubr.f32.gmra.mxu1 %v15172_v41  ;;  %v17607_v41 = vld [vmem:[#allocation118_spill] sm:$0xff] }
 0x245   : > { %v15270_v15 = vadd.f32 %v4453_v51, %v4267_v12  ;;  %v4288_v5 = vadd.f32 %v12060_v49, %v15188_v13  ;;  %12373 = vmatprep.mubr.f32.mxu0 %v17571_v19  ;;  %12433 = vmatprep.mubr.f32.mxu1 %v17492_v25 }
 0x246   : > { %v4280_v62 = vpop.f32.mrf.mxu0  ;;  %v4501_v4 = vpop.f32.mrf.mxu1 }
 0x247   : > { %v15275_v30 = vadd.f32 %v12086_v22, %v4288_v5  ;;  %v4281_v59 = vadd.f32 %v4280_v62, %v15196_v44 }
 0x248   : > { %v12063_v2 = vpop.f32.mrf.mxu0  ;;  %12374 = vmatmul.mubr.f32.gmra.mxu0 %v17572_v35  ;;  %v12123_v55 = vpop.f32.mrf.mxu1  ;;  %12434 = vmatmul.mubr.f32.vlgmr.msra.gmra.mxu1 %v17495_v17  ;;  %v17602_v35 = vld [vmem:[#allocation143_spill] sm:$0xff] }
 0x249   : > { %v15280_v51 = vadd.f32 %v4469_v8, %v4281_v59  ;;  %v4302_v13 = vadd.f32 %v12063_v2, %v15202_v33  ;;  %12376 = vmatprep.mubr.f32.mxu0 %v15145_v11  ;;  %12484 = vmatpush3.msra.mxu1 %v15194_v42  ;;  %v15415_v11 = vld [vmem:[%s13220_s28 + $0xe0] sm:$0xff] }
 0x24a   : > { %v4294_v12 = vpop.f32.mrf.mxu0  ;;  %v4745_v49 = vpop.f32.mrf.mxu1  ;;  %12436 = vmatprep.mubr.f32.mxu1 %v17498_v6  ;;  %12535 = vmatprep.subr.mxu1 %v15132_v47 }
 0x24b   : > { %v15287_v44 = vadd.f32 %v12089_v0, %v4302_v13  ;;  %v4295_v22 = vadd.f32 %v4294_v12, %v15208_v10 }
 0x24c   : > { %v12066_v5 = vpop.f32.mrf.mxu0  ;;  %12377 = vmatmul.mubr.f32.gmra.mxu0 %v15155_v29  ;;  %v12126_v8 = vpop.f32.mrf.mxu1  ;;  %12437 = vmatmul.mubr.f32.gmra.mxu1 %v17501_v9  ;;  %v15397_v29 = vld [vmem:[%s13220_s28 + $0xd8] sm:$0xff] }
 0x24d   : > { %v15292_v33 = vadd.f32 %v4485_v37, %v4295_v22  ;;  %v4316_v42 = vadd.f32 %v12066_v5, %v15212_v52  ;;  %12407 = vmatprep.mubr.f32.mxu0 %v17492_v25  ;;  %12439 = vmatprep.mubr.f32.mxu1 %v17505_v63 }
 0x24e   : > { %v4308_v62 = vpop.f32.mrf.mxu0  ;;  %v4757_v59 = vpop.f32.mrf.mxu1 }
 0x24f   : > { %v15297_v0 = vadd.f32 %v12092_v27, %v4316_v42  ;;  %v4309_v10 = vadd.f32 %v4308_v62, %v15216_v46 }
 0x250   : > { %v12097_v2 = vpop.f32.mrf.mxu0  ;;  %12408 = vmatmul.mubr.f32.vlgmr.msra.gmra.mxu0 %v17495_v17  ;;  %v12129_v13 = vpop.f32.mrf.mxu1  ;;  %12440 = vmatmul.mubr.f32.gmra.mxu1 %v17510_v31 }
 0x251   : > { %v15302_v37 = vadd.f32 %v4501_v4, %v4309_v10  ;;  %v4590_v52 = vadd.f32 %v12097_v2, %v15225_v28  ;;  %12458 = vmatpush3.msra.mxu0 %v15132_v47  ;;  %12410 = vmatprep.mubr.f32.mxu0 %v17498_v6 }
 0x252   : > { %v4583_v25 = vpop.f32.mrf.mxu0  ;;  %v4769_v12 = vpop.f32.mrf.mxu1  ;;  %12442 = vmatprep.mubr.f32.mxu1 %v17514_v39  ;;  %12509 = vmatprep.subr.mxu0 %v15148_v60 }
 0x253   : > { %v4752_v46 = vadd.f32 %v12123_v55, %v4590_v52  ;;  %v4584_v17 = vadd.f32 %v4583_v25, %v15230_v61 }
 0x254   : > { %v12100_v27 = vpop.f32.mrf.mxu0  ;;  %12411 = vmatmul.mubr.f32.gmra.mxu0 %v17501_v9  ;;  %v12132_v4 = vpop.f32.mrf.mxu1  ;;  %12443 = vmatmul.mubr.f32.gmra.mxu1 %v17519_v50 }
 0x255   : > { %v15313_v28 = vadd.f32 %v4752_v46, %v15014_v32  ;;  %v4746_v22 = vadd.f32 %v4745_v49, %v4584_v17  ;;  %v4602_v5 = vadd.f32 %v12100_v27, %v15235_v23  ;;  %12413 = vmatprep.mubr.f32.mxu0 %v17505_v63  ;;  %12445 = vmatprep.mubr.f32.mxu1 %v17521_v58  ;;  %v17620_v63 = vld [vmem:[#allocation163_spill] sm:$0xff] }
 0x256   : > { %v4595_v42 = vpop.f32.mrf.mxu0  ;;  %v4781_v55 = vpop.f32.mrf.mxu1 }
 0x257   : > { %v15319_v61 = vadd.f32 %v4746_v22, %v15020_v53  ;;  %v4764_v62 = vadd.f32 %v12126_v8, %v4602_v5  ;;  %v4596_v10 = vadd.f32 %v4595_v42, %v15240_v57 }
 0x258   : > { %v12103_v2 = vpop.f32.mrf.mxu0  ;;  %12414 = vmatmul.mubr.f32.gmra.mxu0 %v17510_v31  ;;  %v12135_v32 = vpop.f32.mrf.mxu1  ;;  %12446 = vmatmul.mubr.f32.gmra.mxu1 %v17524_v38  ;;  %v17619_v31 = vld [vmem:[#allocation130_spill] sm:$0xff] }
 0x259   : > { %v15325_v23 = vadd.f32 %v4764_v62, %v15026_v43  ;;  %v4758_v49 = vadd.f32 %v4757_v59, %v4596_v10  ;;  %v4614_v52 = vadd.f32 %v12103_v2, %v15245_v18  ;;  %12416 = vmatprep.mubr.f32.mxu0 %v17514_v39  ;;  %12448 = vmatprep.mubr.f32.mxu1 %v17527_v36  ;;  %v17573_v10 = vld [vmem:[#allocation11_spill] sm:$0xff]  ;;  %v17574_v2 = vld [vmem:[#allocation17_spill] sm:$0xff] }
 0x25a   : > { %v4607_v53 = vpop.f32.mrf.mxu0  ;;  %v4793_v8 = vpop.f32.mrf.mxu1 }
 0x25b   : > { %v15331_v57 = vadd.f32 %v4758_v49, %v15032_v45  ;;  %v4776_v25 = vadd.f32 %v12129_v13, %v4614_v52  ;;  %v4608_v46 = vadd.f32 %v4607_v53, %v15250_v21 }
 0x25c   : > { %v12106_v17 = vpop.f32.mrf.mxu0  ;;  %12417 = vmatmul.mubr.f32.gmra.mxu0 %v17519_v50  ;;  %v12138_v43 = vpop.f32.mrf.mxu1  ;;  %12449 = vmatmul.mubr.f32.gmra.mxu1 %v17530_v40 }
 0x25d   : > { %v15337_v18 = vadd.f32 %v4776_v25, %v15038_v56  ;;  %v4770_v59 = vadd.f32 %v4769_v12, %v4608_v46  ;;  %v4626_v27 = vadd.f32 %v12106_v17, %v15255_v48  ;;  %12419 = vmatprep.mubr.f32.mxu0 %v17521_v58  ;;  %12451 = vmatprep.mubr.f32.mxu1 %v17533_v1  ;;  %v17575_v25 = vld [vmem:[#allocation177_spill] sm:$0xff] }
 0x25e   : > { %v4619_v45 = vpop.f32.mrf.mxu0  ;;  %v4805_v13 = vpop.f32.mrf.mxu1  ;;  %v17617_v58 = vld [vmem:[#allocation5_spill] sm:$0xff] }
 0x25f   : > { %v15343_v21 = vadd.f32 %v4770_v59, %v15044_v34  ;;  %v4788_v22 = vadd.f32 %v12132_v4, %v4626_v27  ;;  %v4620_v5 = vadd.f32 %v4619_v45, %v15260_v26  ;;  %v17578_v59 = vld [vmem:[#allocation8_spill] sm:$0xff]  ;;  %v17579_v45 = vld [vmem:[#allocation13_spill] sm:$0xff] }
 0x260   : > { %v12109_v42 = vpop.f32.mrf.mxu0  ;;  %12420 = vmatmul.mubr.f32.gmra.mxu0 %v17524_v38  ;;  %v12141_v56 = vpop.f32.mrf.mxu1  ;;  %12452 = vmatmul.mubr.f32.gmra.mxu1 %v17537_v24  ;;  %17594 = vst [vmem:[#allocation8_spill] sm:$0xff] %v15397_v29 }
 0x261   : > { %v15349_v48 = vadd.f32 %v4788_v22, %v15050_v3  ;;  %v4782_v12 = vadd.f32 %v4781_v55, %v4620_v5  ;;  %v4638_v62 = vadd.f32 %v12109_v42, %v15265_v16  ;;  %12422 = vmatprep.mubr.f32.mxu0 %v17527_v36  ;;  %12454 = vmatprep.mubr.f32.mxu1 %v17573_v10  ;;  %v17576_v55 = vld [vmem:[#allocation12_spill] sm:$0xff]  ;;  %v17614_v36 = vld [vmem:[#allocation127_spill] sm:$0xff] }
 0x262   : > { %v4631_v34 = vpop.f32.mrf.mxu0  ;;  %v4817_v4 = vpop.f32.mrf.mxu1 }
 0x263   : > { %v15355_v26 = vadd.f32 %v4782_v12, %v17574_v2  ;;  %v4800_v49 = vadd.f32 %v12135_v32, %v4638_v62  ;;  %v4632_v52 = vadd.f32 %v4631_v34, %v15270_v15  ;;  %v17581_v62 = vld [vmem:[#allocation82_spill] sm:$0xff] }
 0x264   : > { %v12112_v53 = vpop.f32.mrf.mxu0  ;;  %12423 = vmatmul.mubr.f32.gmra.mxu0 %v17530_v40  ;;  %v12144_v3 = vpop.f32.mrf.mxu1  ;;  %12455 = vmatmul.mubr.f32.gmra.mxu1 %v17575_v25  ;;  %17601 = vst [vmem:[#allocation82_spill] sm:$0xff] %v15415_v11 }
 0x265   : > { %v15361_v16 = vadd.f32 %v4800_v49, %v17576_v55  ;;  %v4794_v46 = vadd.f32 %v4793_v8, %v4632_v52  ;;  %v4650_v17 = vadd.f32 %v12112_v53, %v15275_v30  ;;  %12425 = vmatprep.mubr.f32.mxu0 %v17533_v1  ;;  %12485 = vmatprep.mubr.f32.mxu1 %v17578_v59  ;;  %v17582_v8 = vld [vmem:[#allocation89_spill] sm:$0xff]  ;;  %v17584_v52 = vld [vmem:[#allocation83_spill] sm:$0xff] }
 0x266   : > { %v4643_v27 = vpop.f32.mrf.mxu0  ;;  %v4829_v32 = vpop.f32.mrf.mxu1 }
 0x267   : > { %17577 = vst [vmem:[#allocation27_spill] sm:$0xff] %v15361_v16  ;;  %v15367_v15 = vadd.f32 %v4794_v46, %v17579_v45  ;;  %v4812_v22 = vadd.f32 %v12138_v43, %v4650_v17  ;;  %v4644_v5 = vadd.f32 %v4643_v27, %v15280_v51  ;;  %v17585_v51 = vld [vmem:[#allocation6_spill] sm:$0xff]  ;;  %v17587_v17 = vld [vmem:[#allocation88_spill] sm:$0xff]  ;;  %v17588_v27 = vld [vmem:[#allocation7_spill] sm:$0xff] }
 0x268   : > { %v12115_v42 = vpop.f32.mrf.mxu0  ;;  %12426 = vmatmul.mubr.f32.gmra.mxu0 %v17537_v24  ;;  %v12175_v12 = vpop.f32.mrf.mxu1  ;;  %12486 = vmatmul.mubr.f32.vlgmr.msra.gmra.mxu1 %v17581_v62 }
 0x269   : > { %17580 = vst [vmem:[#allocation36_spill] sm:$0xff] %v15367_v15  ;;  %v15373_v30 = vadd.f32 %v4812_v22, %v17582_v8  ;;  %v4806_v34 = vadd.f32 %v4805_v13, %v4644_v5  ;;  %v4662_v2 = vadd.f32 %v12115_v42, %v15287_v44  ;;  %12428 = vmatprep.mubr.f32.mxu0 %v17573_v10  ;;  %v17590_v42 = vld [vmem:[#allocation104_spill] sm:$0xff]  ;;  %v17591_v8 = vld [vmem:[#allocation90_spill] sm:$0xff]  ;;  %v17613_v10 = vld [vmem:[#allocation113_spill] sm:$0xff] }
 0x26a   : > { %12536 = vmatpush3.msra.mxu1 %v15132_v47  ;;  %v4655_v49 = vpop.f32.mrf.mxu0  ;;  %v5166_v43 = vpop.f32.mrf.mxu1  ;;  %12488 = vmatprep.mubr.f32.mxu1 %v17584_v52  ;;  %v17636_v15 = vld [vmem:[#allocation115_spill] sm:$0xff] }
 0x26b   : > { %17583 = vst [vmem:[#allocation14_spill] sm:$0xff] %v15373_v30  ;;  %12587 = vmatprep.subr.mxu1 %v15132_v47  ;;  %v15381_v53 = vadd.f32 %v4806_v34, %v17585_v51  ;;  %v4824_v55 = vadd.f32 %v12141_v56, %v4662_v2  ;;  %v4656_v46 = vadd.f32 %v4655_v49, %v15292_v33  ;;  %v17592_v2 = vld [vmem:[#allocation84_spill] sm:$0xff] }
 0x26c   : > { %v12118_v13 = vpop.f32.mrf.mxu0  ;;  %12429 = vmatmul.mubr.f32.gmra.mxu0 %v17575_v25  ;;  %v12178_v44 = vpop.f32.mrf.mxu1  ;;  %12489 = vmatmul.mubr.f32.gmra.mxu1 %v17587_v17  ;;  %v17612_v25 = vld [vmem:[#allocation124_spill] sm:$0xff] }
 0x26d   : > { %17586 = vst [vmem:[#allocation28_spill] sm:$0xff] %v15381_v53  ;;  %v15387_v45 = vadd.f32 %v4824_v55, %v17588_v27  ;;  %v4818_v22 = vadd.f32 %v4817_v4, %v4656_v46  ;;  %v4674_v5 = vadd.f32 %v12118_v13, %v15297_v0  ;;  %12459 = vmatprep.mubr.f32.mxu0 %v17590_v42  ;;  %v17595_v27 = vld [vmem:[#allocation66_spill] sm:$0xff]  ;;  %v17596_v0 = vld [vmem:[#allocation96_spill] sm:$0xff]  ;;  %v17625_v53 = vld [vmem:[#allocation9_spill] sm:$0xff] }
 0x26e   : > { %12491 = vmatprep.mubr.f32.mxu1 %v17591_v8  ;;  %v4667_v56 = vpop.f32.mrf.mxu0  ;;  %v5178_v34 = vpop.f32.mrf.mxu1  ;;  %v235_v46 = vld [vmem:[%s16616_s1 + $0x1c] sm:$0xf] }
 0x26f   : > { %17589 = vst [vmem:[#allocation17_spill] sm:$0xff] %v15387_v45  ;;  %v15393_v33 = vadd.f32 %v4818_v22, %v17592_v2  ;;  %v4836_v49 = vadd.f32 %v12144_v3, %v4674_v5  ;;  %v4668_v51 = vadd.f32 %v4667_v56, %v15302_v37  ;;  %v17597_v13 = vld [vmem:[#allocation20_spill] sm:$0xff]  ;;  %v17599_v37 = vld [vmem:[#allocation107_spill] sm:$0xff]  ;;  %v17600_v2 = vld [vmem:[#allocation98_spill] sm:$0xff] }
 0x270   : > { %v12149_v55 = vpop.f32.mrf.mxu0  ;;  %12460 = vmatmul.mubr.f32.vlgmr.msra.gmra.mxu0 %v17595_v27  ;;  %v12181_v4 = vpop.f32.mrf.mxu1  ;;  %12492 = vmatmul.mubr.f32.gmra.mxu1 %v17596_v0  ;;  %v7095_v27 = vsel %vm302_vm2, %v15397_v29, 0  ;;  %v17624_v45 = vld [vmem:[#allocation91_spill] sm:$0xff]  ;;  %v17626_v30 = vld [vmem:[#allocation92_spill] sm:$0xff] }
 0x271   : > { %17593 = vst [vmem:[#allocation12_spill] sm:$0xff] %v15393_v33  ;;  %v15405_v42 = vadd.f32 %v4836_v49, %v17597_v13  ;;  %v4830_v22 = vadd.f32 %v4829_v32, %v4668_v51  ;;  %v15407_v3 = vadd.f32 %v12175_v12, %v12149_v55  ;;  %12510 = vmatpush3.msra.mxu0 %v15148_v60  ;;  %v17603_v49 = vld [vmem:[#allocation10_spill] sm:$0xff]  ;;  %v8221_v60 = vsel %vm335_vm0, %v235_v46, 0 }
 0x272   : > { %12462 = vmatprep.mubr.f32.mxu0 %v17599_v37  ;;  %v4940_v5 = vpop.f32.mrf.mxu0  ;;  %v5190_v56 = vpop.f32.mrf.mxu1  ;;  %12494 = vmatprep.mubr.f32.mxu1 %v17600_v2  ;;  %v17605_v51 = vld [vmem:[#allocation114_spill] sm:$0xff]  ;;  %v17606_v37 = vld [vmem:[#allocation103_spill] sm:$0xff]  ;;  %v15430_v14 = vand.u32 4294901760, %v7095_v27  ;;  %v15434_v46 = vand.u32 4294901760, %v8221_v60 }
 0x273   : > { %17598 = vst [vmem:[#allocation13_spill] sm:$0xff] %v15405_v42  ;;  %12561 = vmatprep.subr.mxu0 %v17602_v35  ;;  %v15419_v13 = vadd.f32 %v4830_v22, %v17603_v49  ;;  %v15421_v32 = vadd.f32 %v5166_v43, %v4940_v5  ;;  %v7098_v43 = vsel %vm302_vm2, %v15415_v11, 0  ;;  %v17622_v42 = vld [vmem:[#allocation132_spill] sm:$0xff] }
 0x274   : > { %v12152_v12 = vpop.f32.mrf.mxu0  ;;  %12463 = vmatmul.mubr.f32.gmra.mxu0 %v17605_v51  ;;  %v12184_v55 = vpop.f32.mrf.mxu1  ;;  %12495 = vmatmul.mubr.f32.gmra.mxu1 %v17606_v37  ;;  %v15447_v24 = vsub.f32 %v7095_v27, %v15430_v14  ;;  %v17616_v27 = vld [vmem:[#allocation129_spill] sm:$0xff] }
 0x275   : > { %17604 = vst [vmem:[#allocation89_spill] sm:$0xff] %v15419_v13  ;;  %v15426_v19 = vadd.f32 %v12178_v44, %v12152_v12  ;;  %12465 = vmatprep.mubr.f32.mxu0 %v17607_v41  ;;  %12497 = vmatprep.mubr.f32.mxu1 %v17608_v20  ;;  %v17610_v12 = vld [vmem:[#allocation110_spill] sm:$0xff]  ;;  %v15440_v41 = vand.u32 4294901760, %v7098_v43 }
 0x276   : > { %v4960_v22 = vpop.f32.mrf.mxu0  ;;  %v5202_v5 = vpop.f32.mrf.mxu1 }
 0x277   : > { %v15436_v49 = vadd.f32 %v5178_v34, %v4960_v22  ;;  %17611 = vst [vmem:[#allocation83_spill] sm:$0xff] %v15440_v41  ;;  %v15450_v22 = vsub.f32 %v8221_v60, %v15434_v46  ;;  %v17074_v60 = vand.u32 4294901760, %v15447_v24 }
 0x278   : > { %v12155_v51 = vpop.f32.mrf.mxu0  ;;  %12466 = vmatmul.mubr.f32.gmra.mxu0 %v17609_v54  ;;  %v12187_v44 = vpop.f32.mrf.mxu1  ;;  %12498 = vmatmul.mubr.f32.gmra.mxu1 %v17610_v12 }
 0x279   : > { %v15442_v7 = vadd.f32 %v12181_v4, %v12155_v51  ;;  %12468 = vmatprep.mubr.f32.mxu0 %v17612_v25  ;;  %12500 = vmatprep.mubr.f32.mxu1 %v17613_v10  ;;  %v17615_v4 = vld [vmem:[#allocation117_spill] sm:$0xff]  ;;  %v15457_v25 = vsub.f32 %v7098_v43, %v15440_v41  ;;  %v7312_v9 = vsub.f32 %v15447_v24, %v17074_v60  ;;  %v17623_v60 = vld [vmem:[#allocation176_spill] sm:$0xff] }
 0x27a   : > { %v4980_v1 = vpop.f32.mrf.mxu0  ;;  %v5214_v34 = vpop.f32.mrf.mxu1 }
 0x27b   : > { %v15452_v54 = vadd.f32 %v5190_v56, %v4980_v1  ;;  %v15465_v56 = vand.u32 4294901760, %v15450_v22  ;;  %v7313_v33 = vand.u32 4294901760, %v7312_v9 }
 0x27c   : > { %v12158_v40 = vpop.f32.mrf.mxu0  ;;  %12469 = vmatmul.mubr.f32.gmra.mxu0 %v17614_v36  ;;  %v12190_v38 = vpop.f32.mrf.mxu1  ;;  %12501 = vmatmul.mubr.f32.gmra.mxu1 %v17615_v4 }
 0x27d   : > { %v15459_v51 = vadd.f32 %v12184_v55, %v12158_v40  ;;  %12471 = vmatprep.mubr.f32.mxu0 %v17616_v27  ;;  %12503 = vmatprep.mubr.f32.mxu1 %v17617_v58  ;;  %17618 = vst [vmem:[#allocation6_spill] sm:$0xff] %v15465_v56  ;;  %v17079_v40 = vand.u32 4294901760, %v15457_v25  ;;  %v17621_v27 = vld [vmem:[#allocation131_spill] sm:$0xff] }
 0x27e   : > { %v5000_v50 = vpop.f32.mrf.mxu0  ;;  %v5226_v1 = vpop.f32.mrf.mxu1 }
 0x27f   : > { %v15467_v36 = vadd.f32 %v5202_v5, %v5000_v50 }
 0x280   : > { %v12161_v39 = vpop.f32.mrf.mxu0  ;;  %12472 = vmatmul.mubr.f32.gmra.mxu0 %v17619_v31  ;;  %v12193_v43 = vpop.f32.mrf.mxu1  ;;  %12504 = vmatmul.mubr.f32.gmra.mxu1 %v17620_v63  ;;  %v8483_v31 = vsub.f32 %v15450_v22, %v15465_v56 }
 0x281   : > { %v15472_v55 = vadd.f32 %v12187_v44, %v12161_v39  ;;  %12474 = vmatprep.mubr.f32.mxu0 %v17621_v27  ;;  %12506 = vmatprep.mubr.f32.mxu1 %v15430_v14  ;;  %v7322_v44 = vsub.f32 %v15457_v25, %v17079_v40 }
 0x282   : > { %v5020_v50 = vpop.f32.mrf.mxu0  ;;  %v5238_v5 = vpop.f32.mrf.mxu1 }
 0x283   : > { %v15481_v6 = vadd.f32 %v5214_v34, %v5020_v50  ;;  %v15492_v50 = vand.u32 4294901760, %v8483_v31  ;;  %v7323_v29 = vand.u32 4294901760, %v7322_v44 }
 0x284   : > { %v12164_v13 = vpop.f32.mrf.mxu0  ;;  %12475 = vmatmul.mubr.f32.gmra.mxu0 %v17622_v42  ;;  %v12196_v39 = vpop.f32.mrf.mxu1  ;;  %12507 = vmatmul.mubr.f32.gmra.mxu1 %v15440_v41  ;;  %v17640_v41 = vld [vmem:[#allocation122_spill] sm:$0xff] }
 0x285   : > { %v15488_v27 = vadd.f32 %v12190_v38, %v12164_v13  ;;  %12477 = vmatprep.mubr.f32.mxu0 %v17623_v60  ;;  %12537 = vmatprep.mubr.f32.mxu1 %v17624_v45  ;;  %v17627_v13 = vld [vmem:[#allocation93_spill] sm:$0xff] }
 0x286   : > { %v5040_v56 = vpop.f32.mrf.mxu0  ;;  %v5250_v34 = vpop.f32.mrf.mxu1 }
 0x287   : > { %v15494_v11 = vadd.f32 %v5226_v1, %v5040_v56  ;;  %v17628_v56 = vld [vmem:[#allocation99_spill] sm:$0xff] }
 0x288   : > { %v12167_v42 = vpop.f32.mrf.mxu0  ;;  %12478 = vmatmul.mubr.f32.gmra.mxu0 %v17625_v53  ;;  %v12227_v40 = vpop.f32.mrf.mxu1  ;;  %12538 = vmatmul.mubr.f32.vlgmr.msra.gmra.mxu1 %v17626_v30  ;;  %v17629_v30 = vld [vmem:[#allocation85_spill] sm:$0xff] }
 0x289   : > { %v15498_v38 = vadd.f32 %v12193_v43, %v12167_v42  ;;  %12480 = vmatprep.mubr.f32.mxu0 %v7313_v33  ;;  %12588 = vmatpush3.msra.mxu1 %v15132_v47  ;;  %v17630_v33 = vld [vmem:[#allocation101_spill] sm:$0xff] }
 0x28a   : > { %v5060_v9 = vpop.f32.mrf.mxu0  ;;  %v5509_v45 = vpop.f32.mrf.mxu1  ;;  %12540 = vmatprep.mubr.f32.mxu1 %v17627_v13  ;;  %12639 = vmatprep.subr.mxu1 %v15492_v50  ;;  %v17631_v13 = vld [vmem:[#allocation86_spill] sm:$0xff] }
 0x28b   : > { %v15503_v60 = vadd.f32 %v5238_v5, %v5060_v9  ;;  %v17632_v9 = vld [vmem:[#allocation108_spill] sm:$0xff] }
 0x28c   : > { %v12170_v1 = vpop.f32.mrf.mxu0  ;;  %12481 = vmatmul.mubr.f32.gmra.mxu0 %v7323_v29  ;;  %v12230_v53 = vpop.f32.mrf.mxu1  ;;  %12541 = vmatmul.mubr.f32.gmra.mxu1 %v17628_v56 }
 0x28d   : > { %v15506_v31 = vadd.f32 %v12196_v39, %v12170_v1  ;;  %12511 = vmatprep.mubr.f32.mxu0 %v17629_v30  ;;  %12543 = vmatprep.mubr.f32.mxu1 %v17630_v33  ;;  %v17633_v39 = vld [vmem:[#allocation87_spill] sm:$0xff] }
 0x28e   : > { %v5080_v47 = vpop.f32.mrf.mxu0  ;;  %v5525_v43 = vpop.f32.mrf.mxu1  ;;  %v17634_v30 = vld [vmem:[#allocation111_spill] sm:$0xff] }
 0x28f   : > { %v15510_v44 = vadd.f32 %v5250_v34, %v5080_v47 }
 0x290   : > { %v12201_v42 = vpop.f32.mrf.mxu0  ;;  %12512 = vmatmul.mubr.f32.vlgmr.msra.gmra.mxu0 %v17631_v13  ;;  %v12233_v5 = vpop.f32.mrf.mxu1  ;;  %12544 = vmatmul.mubr.f32.gmra.mxu1 %v17632_v9  ;;  %v17635_v13 = vld [vmem:[#allocation94_spill] sm:$0xff] }
 0x291   : > { %v5338_v29 = vadd.f32 %v12201_v42, %v15407_v3  ;;  %12562 = vmatpush3.msra.mxu0 %v17602_v35  ;;  %12514 = vmatprep.mubr.f32.mxu0 %v17633_v39  ;;  %v17637_v42 = vld [vmem:[#allocation95_spill] sm:$0xff] }
 0x292   : > { %v5330_v1 = vpop.f32.mrf.mxu0  ;;  %v5541_v56 = vpop.f32.mrf.mxu1  ;;  %12546 = vmatprep.mubr.f32.mxu1 %v17634_v30  ;;  %12613 = vmatprep.subr.mxu0 %v15434_v46  ;;  %v17638_v39 = vld [vmem:[#allocation119_spill] sm:$0xff] }
 0x293   : > { %v15519_v34 = vadd.f32 %v12227_v40, %v5338_v29  ;;  %v5331_v33 = vadd.f32 %v5330_v1, %v15421_v32  ;;  %v17639_v1 = vld [vmem:[#allocation102_spill] sm:$0xff] }
 0x294   : > { %v12204_v47 = vpop.f32.mrf.mxu0  ;;  %12515 = vmatmul.mubr.f32.gmra.mxu0 %v17635_v13  ;;  %v12236_v9 = vpop.f32.mrf.mxu1  ;;  %12547 = vmatmul.mubr.f32.gmra.mxu1 %v17636_v15 }
 0x295   : > { %v15524_v3 = vadd.f32 %v5509_v45, %v5331_v33  ;;  %v5352_v35 = vadd.f32 %v12204_v47, %v15426_v19  ;;  %12517 = vmatprep.mubr.f32.mxu0 %v17637_v42  ;;  %12549 = vmatprep.mubr.f32.mxu1 %v17638_v39  ;;  %v17641_v45 = vld [vmem:[#allocation105_spill] sm:$0xff] }
 0x296   : > { %v5344_v30 = vpop.f32.mrf.mxu0  ;;  %v5557_v16 = vpop.f32.mrf.mxu1  ;;  %v17642_v33 = vld [vmem:[#allocation125_spill] sm:$0xff] }
 0x297   : > { %v15529_v40 = vadd.f32 %v12230_v53, %v5352_v35  ;;  %v5345_v32 = vadd.f32 %v5344_v30, %v15436_v49  ;;  %v17643_v39 = vld [vmem:[#allocation109_spill] sm:$0xff] }
 0x298   : > { %v12207_v29 = vpop.f32.mrf.mxu0  ;;  %12518 = vmatmul.mubr.f32.gmra.mxu0 %v17639_v1  ;;  %v12239_v13 = vpop.f32.mrf.mxu1  ;;  %12550 = vmatmul.mubr.f32.gmra.mxu1 %v17640_v41  ;;  %v17644_v1 = vld [vmem:[#allocation128_spill] sm:$0xff] }
 0x299   : > { %v15534_v15 = vadd.f32 %v5525_v43, %v5345_v32  ;;  %v5366_v19 = vadd.f32 %v12207_v29, %v15442_v7  ;;  %12520 = vmatprep.mubr.f32.mxu0 %v17641_v45  ;;  %12552 = vmatprep.mubr.f32.mxu1 %v17642_v33  ;;  %v17645_v43 = vld [vmem:[#allocation112_spill] sm:$0xff]  ;;  %v17646_v32 = vld [vmem:[#allocation97_spill] sm:$0xff] }
 0x29a   : > { %v5358_v47 = vpop.f32.mrf.mxu0  ;;  %v5573_v42 = vpop.f32.mrf.mxu1  ;;  %v17647_v33 = vld [vmem:[#allocation116_spill] sm:$0xff] }
 0x29b   : > { %v15539_v53 = vadd.f32 %v12233_v5, %v5366_v19  ;;  %v5359_v49 = vadd.f32 %v5358_v47, %v15452_v54 }
 0x29c   : > { %v12210_v35 = vpop.f32.mrf.mxu0  ;;  %12521 = vmatmul.mubr.f32.gmra.mxu0 %v17643_v39  ;;  %v12242_v30 = vpop.f32.mrf.mxu1  ;;  %12553 = vmatmul.mubr.f32.gmra.mxu1 %v17644_v1  ;;  %v17648_v39 = vld [vmem:[#allocation169_spill] sm:$0xff] }
 0x29d   : > { %v15544_v41 = vadd.f32 %v5541_v56, %v5359_v49  ;;  %v5380_v7 = vadd.f32 %v12210_v35, %v15459_v51  ;;  %12523 = vmatprep.mubr.f32.mxu0 %v17645_v43  ;;  %12555 = vmatprep.mubr.f32.mxu1 %v17646_v32  ;;  %v17649_v49 = vld [vmem:[#allocation120_spill] sm:$0xff]  ;;  %v17650_v35 = vand.u32 4294901760, %v15447_v24  ;;  %v17651_v32 = vld [vmem:[#allocation123_spill] sm:$0xff] }
 0x29e   : > { %v5372_v29 = vpop.f32.mrf.mxu0  ;;  %v5589_v45 = vpop.f32.mrf.mxu1 }
 0x29f   : > { %v15549_v5 = vadd.f32 %v12236_v9, %v5380_v7  ;;  %v5373_v54 = vadd.f32 %v5372_v29, %v15467_v36 }
 0x2a0   : > { %v12213_v19 = vpop.f32.mrf.mxu0  ;;  %12524 = vmatmul.mubr.f32.gmra.mxu0 %v17647_v33  ;;  %v12245_v47 = vpop.f32.mrf.mxu1  ;;  %12556 = vmatmul.mubr.f32.gmra.mxu1 %v17648_v39 }
 0x2a1   : > { %v15554_v56 = vadd.f32 %v5557_v16, %v5373_v54  ;;  %v5394_v51 = vadd.f32 %v12213_v19, %v15472_v55  ;;  %12526 = vmatprep.mubr.f32.mxu0 %v17649_v49  ;;  %12558 = vmatprep.mubr.f32.mxu1 %v17650_v35  ;;  %v17652_v16 = vand.u32 4294901760, %v15457_v25  ;;  %v17653_v19 = vld [vmem:[#allocation80_spill] sm:$0xff]  ;;  %v17654_v49 = vld [vmem:[#allocation81_spill] sm:$0xff] }
 0x2a2   : > { %v5386_v1 = vpop.f32.mrf.mxu0  ;;  %v5605_v9 = vpop.f32.mrf.mxu1 }
 0x2a3   : > { %v15560_v7 = vadd.f32 %v12239_v13, %v5394_v51  ;;  %v5387_v36 = vadd.f32 %v5386_v1, %v15481_v6 }
 0x2a4   : > { %v12216_v43 = vpop.f32.mrf.mxu0  ;;  %12527 = vmatmul.mubr.f32.gmra.mxu0 %v17651_v32  ;;  %v12248_v29 = vpop.f32.mrf.mxu1  ;;  %12559 = vmatmul.mubr.f32.gmra.mxu1 %v17652_v16 }
 0x2a5   : > { %v15566_v54 = vadd.f32 %v5573_v42, %v5387_v36  ;;  %v5408_v55 = vadd.f32 %v12216_v43, %v15488_v27  ;;  %12529 = vmatprep.mubr.f32.mxu0 %v17653_v19  ;;  %12589 = vmatprep.mubr.f32.mxu1 %v17578_v59 }
 0x2a6   : > { %v5400_v33 = vpop.f32.mrf.mxu0  ;;  %v5621_v13 = vpop.f32.mrf.mxu1 }
 0x2a7   : > { %v15571_v39 = vadd.f32 %v12242_v30, %v5408_v55  ;;  %v5401_v6 = vadd.f32 %v5400_v33, %v15494_v11 }
 0x2a8   : > { %v12219_v51 = vpop.f32.mrf.mxu0  ;;  %12530 = vmatmul.mubr.f32.gmra.mxu0 %v17654_v49  ;;  %v12279_v35 = vpop.f32.mrf.mxu1  ;;  %12590 = vmatmul.mubr.f32.vlgmr.msra.gmra.mxu1 %v17581_v62 }
 0x2a9   : > { %v15576_v42 = vadd.f32 %v5589_v45, %v5401_v6  ;;  %v5422_v27 = vadd.f32 %v12219_v51, %v15498_v38  ;;  %12532 = vmatprep.mubr.f32.mxu0 %v15447_v24  ;;  %12640 = vmatpush3.msra.mxu1 %v15492_v50 }
 0x2aa   : > { %v5414_v1 = vpop.f32.mrf.mxu0  ;;  %v5865_v36 = vpop.f32.mrf.mxu1  ;;  %12592 = vmatprep.mubr.f32.mxu1 %v17584_v52  ;;  %12691 = vmatprep.subr.mxu1 %v15434_v46 }
 0x2ab   : > { %v15583_v11 = vadd.f32 %v12245_v47, %v5422_v27  ;;  %v5415_v30 = vadd.f32 %v5414_v1, %v15503_v60 }
 0x2ac   : > { %v12222_v43 = vpop.f32.mrf.mxu0  ;;  %12533 = vmatmul.mubr.f32.gmra.mxu0 %v15457_v25  ;;  %v12282_v45 = vpop.f32.mrf.mxu1  ;;  %12593 = vmatmul.mubr.f32.gmra.mxu1 %v17587_v17 }
 0x2ad   : > { %v15588_v38 = vadd.f32 %v5605_v9, %v5415_v30  ;;  %v5436_v24 = vadd.f32 %v12222_v43, %v15506_v31  ;;  %12563 = vmatprep.mubr.f32.mxu0 %v17578_v59  ;;  %12595 = vmatprep.mubr.f32.mxu1 %v17591_v8 }
 0x2ae   : > { %v5428_v50 = vpop.f32.mrf.mxu0  ;;  %v5877_v32 = vpop.f32.mrf.mxu1 }
 0x2af   : > { %v15593_v47 = vadd.f32 %v12248_v29, %v5436_v24  ;;  %v5429_v60 = vadd.f32 %v5428_v50, %v15510_v44 }
 0x2b0   : > { %v12253_v16 = vpop.f32.mrf.mxu0  ;;  %12564 = vmatmul.mubr.f32.vlgmr.msra.gmra.mxu0 %v17581_v62  ;;  %v12285_v25 = vpop.f32.mrf.mxu1  ;;  %12596 = vmatmul.mubr.f32.gmra.mxu1 %v17596_v0 }
 0x2b1   : > { %v15598_v9 = vadd.f32 %v5621_v13, %v5429_v60  ;;  %v5710_v31 = vadd.f32 %v12253_v16, %v15519_v34  ;;  %12614 = vmatpush3.msra.mxu0 %v15434_v46  ;;  %12566 = vmatprep.mubr.f32.mxu0 %v17584_v52 }
 0x2b2   : > { %v5703_v59 = vpop.f32.mrf.mxu0  ;;  %v5889_v55 = vpop.f32.mrf.mxu1  ;;  %12598 = vmatprep.mubr.f32.mxu1 %v17600_v2  ;;  %12665 = vmatprep.subr.mxu0 %v15450_v22 }
 0x2b3   : > { %v5872_v44 = vadd.f32 %v12279_v35, %v5710_v31  ;;  %v5704_v62 = vadd.f32 %v5703_v59, %v15524_v3  ;;  %v17656_v31 = vld [vmem:[#allocation27_spill] sm:$0xff] }
 0x2b4   : > { %v12256_v29 = vpop.f32.mrf.mxu0  ;;  %12567 = vmatmul.mubr.f32.gmra.mxu0 %v17587_v17  ;;  %v12288_v19 = vpop.f32.mrf.mxu1  ;;  %12599 = vmatmul.mubr.f32.gmra.mxu1 %v17606_v37 }
 0x2b5   : > { %v15609_v34 = vadd.f32 %v5872_v44, %v15313_v28  ;;  %v5866_v33 = vadd.f32 %v5865_v36, %v5704_v62  ;;  %v5722_v52 = vadd.f32 %v12256_v29, %v15529_v40  ;;  %12569 = vmatprep.mubr.f32.mxu0 %v17591_v8  ;;  %12601 = vmatprep.mubr.f32.mxu1 %v17608_v20  ;;  %v17659_v62 = vld [vmem:[#allocation36_spill] sm:$0xff] }
 0x2b6   : > { %v5715_v13 = vpop.f32.mrf.mxu0  ;;  %v5901_v6 = vpop.f32.mrf.mxu1 }
 0x2b7   : > { %v15615_v3 = vadd.f32 %v5866_v33, %v15319_v61  ;;  %v5884_v51 = vadd.f32 %v12282_v45, %v5722_v52  ;;  %v5716_v17 = vadd.f32 %v5715_v13, %v15534_v15  ;;  %v17661_v52 = vld [vmem:[#allocation18_spill] sm:$0xff] }
 0x2b8   : > { %v12259_v49 = vpop.f32.mrf.mxu0  ;;  %12570 = vmatmul.mubr.f32.gmra.mxu0 %v17596_v0  ;;  %v12291_v28 = vpop.f32.mrf.mxu1  ;;  %12602 = vmatmul.mubr.f32.gmra.mxu1 %v17610_v12 }
 0x2b9   : > { %v15621_v40 = vadd.f32 %v5884_v51, %v15325_v23  ;;  %v5878_v8 = vadd.f32 %v5877_v32, %v5716_v17  ;;  %v5734_v35 = vadd.f32 %v12259_v49, %v15539_v53  ;;  %12572 = vmatprep.mubr.f32.mxu0 %v17600_v2  ;;  %12604 = vmatprep.mubr.f32.mxu1 %v17613_v10  ;;  %v17664_v51 = vld [vmem:[#allocation8_spill] sm:$0xff] }
 0x2ba   : > { %v5727_v61 = vpop.f32.mrf.mxu0  ;;  %v5913_v27 = vpop.f32.mrf.mxu1  ;;  %v8211_v17 = vrot.slane %v17664_v51, 1  ;;  %v17686_v51 = vld [vmem:[#allocation48_spill] sm:$0xff] }
 0x2bb   : > { %v15627_v15 = vadd.f32 %v5878_v8, %v15331_v57  ;;  %v5896_v1 = vadd.f32 %v12285_v25, %v5734_v35  ;;  %v5728_v0 = vadd.f32 %v5727_v61, %v15544_v41  ;;  %v17655_v25 = vld [vmem:[#allocation83_spill] sm:$0xff] }
 0x2bc   : > { %v12262_v36 = vpop.f32.mrf.mxu0  ;;  %12573 = vmatmul.mubr.f32.gmra.mxu0 %v17606_v37  ;;  %v12294_v23 = vpop.f32.mrf.mxu1  ;;  %12605 = vmatmul.mubr.f32.gmra.mxu1 %v17615_v4 }
 0x2bd   : > { %v15633_v53 = vadd.f32 %v5896_v1, %v15337_v18  ;;  %v5890_v2 = vadd.f32 %v5889_v55, %v5728_v0  ;;  %v5746_v30 = vadd.f32 %v12262_v36, %v15549_v5  ;;  %12575 = vmatprep.mubr.f32.mxu0 %v17608_v20  ;;  %12607 = vmatprep.mubr.f32.mxu1 %v17617_v58  ;;  %v17658_v55 = vld [vmem:[#allocation16_spill] sm:$0xff]  ;;  %v15683_v1 = vld [vmem:[%s13220_s28 + $0xe8] sm:$0x3] }
 0x2be   : > { %v5739_v57 = vpop.f32.mrf.mxu0  ;;  %v5925_v43 = vpop.f32.mrf.mxu1  ;;  %17669 = vst [vmem:[#allocation84_spill] sm:$0xff] %v15683_v1  ;;  %v17670_v36 = vld [vmem:[#allocation32_spill] sm:$0xff] }
 0x2bf   : > { %v15639_v41 = vadd.f32 %v5890_v2, %v15343_v21  ;;  %v5908_v45 = vadd.f32 %v12288_v19, %v5746_v30  ;;  %v5740_v37 = vadd.f32 %v5739_v57, %v15554_v56 }
 0x2c0   : > { %v12265_v24 = vpop.f32.mrf.mxu0  ;;  %12576 = vmatmul.mubr.f32.gmra.mxu0 %v17610_v12  ;;  %v12297_v18 = vpop.f32.mrf.mxu1  ;;  %12608 = vmatmul.mubr.f32.gmra.mxu1 %v17620_v63 }
 0x2c1   : > { %v15645_v5 = vadd.f32 %v5908_v45, %v15349_v48  ;;  %v5902_v20 = vadd.f32 %v5901_v6, %v5740_v37  ;;  %v5758_v50 = vadd.f32 %v12265_v24, %v15560_v7  ;;  %12578 = vmatprep.mubr.f32.mxu0 %v17613_v10  ;;  %12610 = vmatprep.mubr.f32.mxu1 %v15430_v14  ;;  %v17674_v45 = vld [vmem:[#allocation40_spill] sm:$0xff]  ;;  %v8214_v24 = vrot.slane %v15683_v1, 1 }
 0x2c2   : > { %v5751_v21 = vpop.f32.mrf.mxu0  ;;  %v5937_v32 = vpop.f32.mrf.mxu1 }
 0x2c3   : > { %v15651_v56 = vadd.f32 %v5902_v20, %v15355_v26  ;;  %v5920_v60 = vadd.f32 %v12291_v28, %v5758_v50  ;;  %v5752_v12 = vadd.f32 %v5751_v21, %v15566_v54  ;;  %v17665_v28 = vld [vmem:[#allocation26_spill] sm:$0xff] }
 0x2c4   : > { %v12268_v16 = vpop.f32.mrf.mxu0  ;;  %12579 = vmatmul.mubr.f32.gmra.mxu0 %v17615_v4  ;;  %v12300_v48 = vpop.f32.mrf.mxu1  ;;  %12611 = vmatmul.mubr.f32.gmra.mxu1 %v17655_v25 }
 0x2c5   : > { %v15657_v7 = vadd.f32 %v5920_v60, %v17656_v31  ;;  %v5914_v10 = vadd.f32 %v5913_v27, %v5752_v12  ;;  %v5770_v59 = vadd.f32 %v12268_v16, %v15571_v39  ;;  %12581 = vmatprep.mubr.f32.mxu0 %v17617_v58  ;;  %12641 = vmatprep.mubr.f32.mxu1 %v17658_v55  ;;  %v17662_v39 = vld [vmem:[#allocation14_spill] sm:$0xff]  ;;  %v17678_v16 = vld [vmem:[#allocation43_spill] sm:$0xff]  ;;  %v17679_v31 = vld [vmem:[#allocation13_spill] sm:$0xff] }
 0x2c6   : > { %v5763_v26 = vpop.f32.mrf.mxu0  ;;  %v5949_v44 = vpop.f32.mrf.mxu1  ;;  %v17668_v27 = vld [vmem:[#allocation82_spill] sm:$0xff] }
 0x2c7   : > { %17657 = vst [vmem:[#allocation88_spill] sm:$0xff] %v15657_v7  ;;  %v15663_v54 = vadd.f32 %v5914_v10, %v17659_v62  ;;  %v5932_v29 = vadd.f32 %v12294_v23, %v5770_v59  ;;  %v5764_v4 = vadd.f32 %v5763_v26, %v15576_v42  ;;  %v17671_v23 = vld [vmem:[#allocation17_spill] sm:$0xff] }
 0x2c8   : > { %v12271_v19 = vpop.f32.mrf.mxu0  ;;  %12582 = vmatmul.mubr.f32.gmra.mxu0 %v17620_v63  ;;  %v12331_v33 = vpop.f32.mrf.mxu1  ;;  %12642 = vmatmul.mubr.f32.vlgmr.msra.gmra.mxu1 %v17661_v52  ;;  %v17666_v63 = vld [vmem:[#allocation28_spill] sm:$0xff] }
 0x2c9   : > { %17660 = vst [vmem:[#allocation7_spill] sm:$0xff] %v15663_v54  ;;  %v15669_v13 = vadd.f32 %v5932_v29, %v17662_v39  ;;  %v5926_v58 = vadd.f32 %v5925_v43, %v5764_v4  ;;  %v5782_v6 = vadd.f32 %v12271_v19, %v15583_v11  ;;  %12584 = vmatprep.mubr.f32.mxu0 %v15430_v14  ;;  %v8212_v11 = vrot.slane %v17668_v27, 1  ;;  %v17673_v43 = vld [vmem:[#allocation33_spill] sm:$0xff]  ;;  %v17682_v29 = vld [vmem:[#allocation46_spill] sm:$0xff] }
 0x2ca   : > { %12692 = vmatpush3.msra.mxu1 %v15434_v46  ;;  %v5775_v42 = vpop.f32.mrf.mxu0  ;;  %v6285_v49 = vpop.f32.mrf.mxu1  ;;  %12644 = vmatprep.mubr.f32.mxu1 %v17665_v28  ;;  %v17683_v39 = vld [vmem:[#allocation6_spill] sm:$0xff] }
 0x2cb   : > { %17663 = vst [vmem:[#allocation104_spill] sm:$0xff] %v15669_v13  ;;  %12743 = vmatprep.subr.mxu1 %v15434_v46  ;;  %v15678_v8 = vadd.f32 %v5926_v58, %v17666_v63  ;;  %v5944_v35 = vadd.f32 %v12297_v18, %v5782_v6  ;;  %v5776_v61 = vadd.f32 %v5775_v42, %v15588_v38  ;;  %v17675_v18 = vld [vmem:[#allocation12_spill] sm:$0xff]  ;;  %v17684_v58 = vld [vmem:[#allocation89_spill] sm:$0xff]  ;;  %v17707_v13 = vld [vmem:[#allocation30_spill] sm:$0xff] }
 0x2cc   : > { %v12274_v14 = vpop.f32.mrf.mxu0  ;;  %12585 = vmatmul.mubr.f32.gmra.mxu0 %v17655_v25  ;;  %v12334_v0 = vpop.f32.mrf.mxu1  ;;  %12645 = vmatmul.mubr.f32.gmra.mxu1 %v17670_v36  ;;  %v8213_v60 = vsel %vm261_vm1, %v8211_v17, %v8212_v11  ;;  %v236_v25 = vld [vmem:[%s16616_s1 + $0x20] sm:$0xf]  ;;  %v8215_v19 = vsel %vm261_vm1, %v8212_v11, %v8214_v24  ;;  %v17687_v42 = vld [vmem:[#allocation52_spill] sm:$0xff]  ;;  %v17717_v54 = vld [vmem:[#allocation62_spill] sm:$0xff] }
 0x2cd   : > { %17667 = vst [vmem:[#allocation90_spill] sm:$0xff] %v15678_v8  ;;  %v15688_v2 = vadd.f32 %v5944_v35, %v17671_v23  ;;  %v5938_v30 = vadd.f32 %v5937_v32, %v5776_v61  ;;  %v5794_v57 = vadd.f32 %v12274_v14, %v15593_v47  ;;  %12615 = vmatprep.mubr.f32.mxu0 %v17673_v43  ;;  %v17677_v32 = vld [vmem:[#allocation38_spill] sm:$0xff]  ;;  %v8216_v4 = vsel %vm302_vm2, %v8213_v60, 0  ;;  %v17688_v35 = vld [vmem:[#allocation60_spill] sm:$0xff]  ;;  %v17689_v61 = vld [vmem:[#allocation57_spill] sm:$0xff] }
 0x2ce   : > { %12647 = vmatprep.mubr.f32.mxu1 %v17674_v45  ;;  %v5787_v38 = vpop.f32.mrf.mxu0  ;;  %v6297_v37 = vpop.f32.mrf.mxu1  ;;  %v15727_v27 = vand.u32 4294901760, %v8216_v4  ;;  %v8218_v11 = vsel %vm302_vm2, %v8215_v19, 0  ;;  %v17690_v43 = vld [vmem:[#allocation61_spill] sm:$0xff] }
 0x2cf   : > { %17672 = vst [vmem:[#allocation66_spill] sm:$0xff] %v15688_v2  ;;  %v15695_v20 = vadd.f32 %v5938_v30, %v17675_v18  ;;  %v5956_v50 = vadd.f32 %v12300_v48, %v5794_v57  ;;  %v5788_v21 = vadd.f32 %v5787_v38, %v15598_v9  ;;  %v17681_v9 = vld [vmem:[#allocation44_spill] sm:$0xff]  ;;  %v15736_v24 = vand.u32 4294901760, %v8218_v11  ;;  %v17706_v2 = vld [vmem:[#allocation15_spill] sm:$0xff] }
 0x2d0   : > { %v12305_v12 = vpop.f32.mrf.mxu0  ;;  %12616 = vmatmul.mubr.f32.vlgmr.msra.gmra.mxu0 %v17677_v32  ;;  %v12337_v47 = vpop.f32.mrf.mxu1  ;;  %12648 = vmatmul.mubr.f32.gmra.mxu1 %v17678_v16  ;;  %v15743_v60 = vsub.f32 %v8216_v4, %v15727_v27  ;;  %v17697_v4 = vld [vmem:[#allocation73_spill] sm:$0xff] }
 0x2d1   : > { %17676 = vst [vmem:[#allocation96_spill] sm:$0xff] %v15695_v20  ;;  %v15705_v10 = vadd.f32 %v5956_v50, %v17679_v31  ;;  %v5950_v59 = vadd.f32 %v5949_v44, %v5788_v21  ;;  %v15707_v26 = vadd.f32 %v12331_v33, %v12305_v12  ;;  %12666 = vmatpush3.msra.mxu0 %v15450_v22  ;;  %v9340_v33 = vsel %vm335_vm0, %v236_v25, 0  ;;  %v17693_v50 = vld [vmem:[#allocation65_spill] sm:$0xff] }
 0x2d2   : > { %12618 = vmatprep.mubr.f32.mxu0 %v17681_v9  ;;  %v6059_v48 = vpop.f32.mrf.mxu0  ;;  %v6309_v62 = vpop.f32.mrf.mxu1  ;;  %12650 = vmatprep.mubr.f32.mxu1 %v17682_v29  ;;  %v15730_v23 = vand.u32 4294901760, %v9340_v33  ;;  %17692 = vst [vmem:[#allocation98_spill] sm:$0xff] %v15736_v24  ;;  %v17694_v21 = vld [vmem:[#allocation69_spill] sm:$0xff] }
 0x2d3   : > { %17680 = vst [vmem:[#allocation20_spill] sm:$0xff] %v15705_v10  ;;  %12717 = vmatprep.subr.mxu0 %v17683_v39  ;;  %v15716_v6 = vadd.f32 %v5950_v59, %v17684_v58  ;;  %v15718_v44 = vadd.f32 %v6285_v49, %v6059_v48  ;;  %v17695_v59 = vld [vmem:[#allocation70_spill] sm:$0xff]  ;;  %v15753_v48 = vsub.f32 %v8218_v11, %v15736_v24  ;;  %v17698_v58 = vld [vmem:[#allocation100_spill] sm:$0xff]  ;;  %v17705_v20 = vld [vmem:[#allocation25_spill] sm:$0xff] }
 0x2d4   : > { %v12308_v22 = vpop.f32.mrf.mxu0  ;;  %12619 = vmatmul.mubr.f32.gmra.mxu0 %v17686_v51  ;;  %v12340_v17 = vpop.f32.mrf.mxu1  ;;  %12651 = vmatmul.mubr.f32.gmra.mxu1 %v17687_v42  ;;  %v15746_v32 = vsub.f32 %v9340_v33, %v15730_v23  ;;  %v17082_v33 = vand.u32 4294901760, %v15743_v60 }
 0x2d5   : > { %17685 = vst [vmem:[#allocation107_spill] sm:$0xff] %v15716_v6  ;;  %v15723_v63 = vadd.f32 %v12334_v0, %v12308_v22  ;;  %12621 = vmatprep.mubr.f32.mxu0 %v17688_v35  ;;  %12653 = vmatprep.mubr.f32.mxu1 %v17689_v61  ;;  %v17691_v0 = vld [vmem:[#allocation58_spill] sm:$0xff]  ;;  %v17703_v6 = vld [vmem:[#allocation79_spill] sm:$0xff] }
 0x2d6   : > { %v6079_v49 = vpop.f32.mrf.mxu0  ;;  %v6321_v14 = vpop.f32.mrf.mxu1  ;;  %v15761_v51 = vand.u32 4294901760, %v15746_v32 }
 0x2d7   : > { %v15732_v30 = vadd.f32 %v6297_v37, %v6079_v49 }
 0x2d8   : > { %v12311_v57 = vpop.f32.mrf.mxu0  ;;  %12622 = vmatmul.mubr.f32.gmra.mxu0 %v17690_v43  ;;  %v12343_v38 = vpop.f32.mrf.mxu1  ;;  %12654 = vmatmul.mubr.f32.gmra.mxu1 %v17691_v0  ;;  %17699 = vst [vmem:[#allocation143_spill] sm:$0xff] %v15761_v51  ;;  %v17701_v43 = vld [vmem:[#allocation180_spill] sm:$0xff] }
 0x2d9   : > { %v15738_v18 = vadd.f32 %v12337_v47, %v12311_v57  ;;  %12624 = vmatprep.mubr.f32.mxu0 %v17693_v50  ;;  %12656 = vmatprep.mubr.f32.mxu1 %v17694_v21  ;;  %v17696_v47 = vld [vmem:[#allocation72_spill] sm:$0xff]  ;;  %v17700_v57 = vld [vmem:[#allocation74_spill] sm:$0xff] }
 0x2da   : > { %v6099_v12 = vpop.f32.mrf.mxu0  ;;  %v6333_v37 = vpop.f32.mrf.mxu1 }
 0x2db   : > { %v15748_v25 = vadd.f32 %v6309_v62, %v6099_v12  ;;  %v17702_v12 = vld [vmem:[#allocation78_spill] sm:$0xff] }
 0x2dc   : > { %v12314_v31 = vpop.f32.mrf.mxu0  ;;  %12625 = vmatmul.mubr.f32.gmra.mxu0 %v17695_v59  ;;  %v12346_v9 = vpop.f32.mrf.mxu1  ;;  %12657 = vmatmul.mubr.f32.gmra.mxu1 %v17696_v47 }
 0x2dd   : > { %v15755_v19 = vadd.f32 %v12340_v17, %v12314_v31  ;;  %12627 = vmatprep.mubr.f32.mxu0 %v17697_v4  ;;  %12659 = vmatprep.mubr.f32.mxu1 %v17698_v58  ;;  %v17086_v17 = vand.u32 4294901760, %v15753_v48  ;;  %v8432_v31 = vsub.f32 %v15743_v60, %v17082_v33  ;;  %v9602_v4 = vsub.f32 %v15746_v32, %v15761_v51  ;;  %v17704_v33 = vld [vmem:[#allocation186_spill] sm:$0xff] }
 0x2de   : > { %v6119_v22 = vpop.f32.mrf.mxu0  ;;  %v6345_v62 = vpop.f32.mrf.mxu1 }
 0x2df   : > { %v15763_v35 = vadd.f32 %v6321_v14, %v6119_v22  ;;  %v8433_v10 = vand.u32 4294901760, %v8432_v31  ;;  %v17708_v31 = vld [vmem:[#allocation34_spill] sm:$0xff] }
 0x2e0   : > { %v12317_v49 = vpop.f32.mrf.mxu0  ;;  %12628 = vmatmul.mubr.f32.gmra.mxu0 %v17700_v57  ;;  %v12349_v11 = vpop.f32.mrf.mxu1  ;;  %12660 = vmatmul.mubr.f32.gmra.mxu1 %v17701_v43 }
 0x2e1   : > { %v15768_v50 = vadd.f32 %v12343_v38, %v12317_v49  ;;  %12630 = vmatprep.mubr.f32.mxu0 %v17702_v12  ;;  %12662 = vmatprep.mubr.f32.mxu1 %v15727_v27  ;;  %v8442_v49 = vsub.f32 %v15753_v48, %v17086_v17 }
 0x2e2   : > { %v6139_v14 = vpop.f32.mrf.mxu0  ;;  %v6357_v59 = vpop.f32.mrf.mxu1 }
 0x2e3   : > { %v15777_v22 = vadd.f32 %v6333_v37, %v6139_v14  ;;  %v15788_v14 = vand.u32 4294901760, %v9602_v4  ;;  %v8443_v8 = vand.u32 4294901760, %v8442_v49  ;;  %v17709_v4 = vld [vmem:[#allocation39_spill] sm:$0xff] }
 0x2e4   : > { %v12320_v57 = vpop.f32.mrf.mxu0  ;;  %12631 = vmatmul.mubr.f32.gmra.mxu0 %v17703_v6  ;;  %v12352_v38 = vpop.f32.mrf.mxu1  ;;  %12663 = vmatmul.mubr.f32.gmra.mxu1 %v15736_v24  ;;  %v17721_v24 = vld [vmem:[#allocation68_spill] sm:$0xff] }
 0x2e5   : > { %v15784_v12 = vadd.f32 %v12346_v9, %v12320_v57  ;;  %12633 = vmatprep.mubr.f32.mxu0 %v17704_v33  ;;  %12693 = vmatprep.mubr.f32.mxu1 %v17705_v20 }
 0x2e6   : > { %v6159_v51 = vpop.f32.mrf.mxu0  ;;  %v6369_v37 = vpop.f32.mrf.mxu1 }
 0x2e7   : > { %v15790_v1 = vadd.f32 %v6345_v62, %v6159_v51 }
 0x2e8   : > { %v12323_v6 = vpop.f32.mrf.mxu0  ;;  %12634 = vmatmul.mubr.f32.gmra.mxu0 %v17706_v2  ;;  %v12383_v17 = vpop.f32.mrf.mxu1  ;;  %12694 = vmatmul.mubr.f32.vlgmr.msra.gmra.mxu1 %v17707_v13  ;;  %v17710_v13 = vld [vmem:[#allocation19_spill] sm:$0xff] }
 0x2e9   : > { %v15794_v9 = vadd.f32 %v12349_v11, %v12323_v6  ;;  %12636 = vmatprep.mubr.f32.mxu0 %v8433_v10  ;;  %12744 = vmatpush3.msra.mxu1 %v15434_v46  ;;  %v17711_v10 = vld [vmem:[#allocation49_spill] sm:$0xff] }
 0x2ea   : > { %v6179_v33 = vpop.f32.mrf.mxu0  ;;  %v6628_v20 = vpop.f32.mrf.mxu1  ;;  %12696 = vmatprep.mubr.f32.mxu1 %v17708_v31  ;;  %12795 = vmatprep.subr.mxu1 %v15788_v14  ;;  %v17712_v31 = vld [vmem:[#allocation21_spill] sm:$0xff] }
 0x2eb   : > { %v15799_v62 = vadd.f32 %v6357_v59, %v6179_v33  ;;  %v17713_v33 = vld [vmem:[#allocation51_spill] sm:$0xff] }
 0x2ec   : > { %v12326_v51 = vpop.f32.mrf.mxu0  ;;  %12637 = vmatmul.mubr.f32.gmra.mxu0 %v8443_v8  ;;  %v12386_v2 = vpop.f32.mrf.mxu1  ;;  %12697 = vmatmul.mubr.f32.gmra.mxu1 %v17709_v4 }
 0x2ed   : > { %v15802_v57 = vadd.f32 %v12352_v38, %v12326_v51  ;;  %12667 = vmatprep.mubr.f32.mxu0 %v17710_v13  ;;  %12699 = vmatprep.mubr.f32.mxu1 %v17711_v10  ;;  %v17714_v38 = vld [vmem:[#allocation31_spill] sm:$0xff] }
 0x2ee   : > { %v6199_v46 = vpop.f32.mrf.mxu0  ;;  %v6644_v11 = vpop.f32.mrf.mxu1  ;;  %v17715_v13 = vld [vmem:[#allocation55_spill] sm:$0xff] }
 0x2ef   : > { %v15806_v49 = vadd.f32 %v6369_v37, %v6199_v46 }
 0x2f0   : > { %v12357_v6 = vpop.f32.mrf.mxu0  ;;  %12668 = vmatmul.mubr.f32.vlgmr.msra.gmra.mxu0 %v17712_v31  ;;  %v12389_v59 = vpop.f32.mrf.mxu1  ;;  %12700 = vmatmul.mubr.f32.gmra.mxu1 %v17713_v33  ;;  %v17716_v31 = vld [vmem:[#allocation35_spill] sm:$0xff] }
 0x2f1   : > { %v6457_v8 = vadd.f32 %v12357_v6, %v15707_v26  ;;  %12718 = vmatpush3.msra.mxu0 %v17683_v39  ;;  %12670 = vmatprep.mubr.f32.mxu0 %v17714_v38  ;;  %v17718_v6 = vld [vmem:[#allocation45_spill] sm:$0xff]  ;;  %v17719_v38 = vld [vmem:[#allocation67_spill] sm:$0xff] }
 0x2f2   : > { %v6449_v51 = vpop.f32.mrf.mxu0  ;;  %v6660_v4 = vpop.f32.mrf.mxu1  ;;  %12702 = vmatprep.mubr.f32.mxu1 %v17715_v13  ;;  %12769 = vmatprep.subr.mxu0 %v15730_v23 }
 0x2f3   : > { %v15815_v37 = vadd.f32 %v12383_v17, %v6457_v8  ;;  %v6450_v10 = vadd.f32 %v6449_v51, %v15718_v44  ;;  %v17720_v51 = vld [vmem:[#allocation47_spill] sm:$0xff] }
 0x2f4   : > { %v12360_v46 = vpop.f32.mrf.mxu0  ;;  %12671 = vmatmul.mubr.f32.gmra.mxu0 %v17716_v31  ;;  %v12392_v33 = vpop.f32.mrf.mxu1  ;;  %12703 = vmatmul.mubr.f32.gmra.mxu1 %v17717_v54 }
 0x2f5   : > { %v15820_v26 = vadd.f32 %v6628_v20, %v6450_v10  ;;  %v6471_v39 = vadd.f32 %v12360_v46, %v15723_v63  ;;  %12673 = vmatprep.mubr.f32.mxu0 %v17718_v6  ;;  %12705 = vmatprep.mubr.f32.mxu1 %v17719_v38  ;;  %v17722_v20 = vld [vmem:[#allocation50_spill] sm:$0xff]  ;;  %v17723_v10 = vld [vmem:[#allocation75_spill] sm:$0xff]  ;;  %v17724_v38 = vld [vmem:[#allocation56_spill] sm:$0xff] }
 0x2f6   : > { %v6463_v13 = vpop.f32.mrf.mxu0  ;;  %v6676_v7 = vpop.f32.mrf.mxu1 }
 0x2f7   : > { %v15825_v17 = vadd.f32 %v12386_v2, %v6471_v39  ;;  %v6464_v44 = vadd.f32 %v6463_v13, %v15732_v30 }
 0x2f8   : > { %v12363_v8 = vpop.f32.mrf.mxu0  ;;  %12674 = vmatmul.mubr.f32.gmra.mxu0 %v17720_v51  ;;  %v12395_v31 = vpop.f32.mrf.mxu1  ;;  %12706 = vmatmul.mubr.f32.gmra.mxu1 %v17721_v24  ;;  %v17725_v51 = vld [vmem:[#allocation77_spill] sm:$0xff] }
 0x2f9   : > { %v15830_v54 = vadd.f32 %v6644_v11, %v6464_v44  ;;  %v6485_v63 = vadd.f32 %v12363_v8, %v15738_v18  ;;  %12676 = vmatprep.mubr.f32.mxu0 %v17722_v20  ;;  %12708 = vmatprep.mubr.f32.mxu1 %v17723_v10  ;;  %v17726_v11 = vld [vmem:[#allocation63_spill] sm:$0xff]  ;;  %v17728_v10 = vld [vmem:[#allocation64_spill] sm:$0xff] }
 0x2fa   : > { %v6477_v46 = vpop.f32.mrf.mxu0  ;;  %v6692_v6 = vpop.f32.mrf.mxu1  ;;  %v17727_v44 = vld [vmem:[#allocation183_spill] sm:$0xff] }
 0x2fb   : > { %v15835_v2 = vadd.f32 %v12389_v59, %v6485_v63  ;;  %v6478_v30 = vadd.f32 %v6477_v46, %v15748_v25 }
 0x2fc   : > { %v12366_v39 = vpop.f32.mrf.mxu0  ;;  %12677 = vmatmul.mubr.f32.gmra.mxu0 %v17724_v38  ;;  %v12398_v13 = vpop.f32.mrf.mxu1  ;;  %12709 = vmatmul.mubr.f32.gmra.mxu1 %v17725_v51  ;;  %v17729_v38 = vld [vmem:[#allocation185_spill] sm:$0xff] }
 0x2fd   : > { %v15840_v24 = vadd.f32 %v6660_v4, %v6478_v30  ;;  %v6499_v18 = vadd.f32 %v12366_v39, %v15755_v19  ;;  %12679 = vmatprep.mubr.f32.mxu0 %v17726_v11  ;;  %12711 = vmatprep.mubr.f32.mxu1 %v17727_v44  ;;  %v17730_v30 = vld [vmem:[#allocation71_spill] sm:$0xff]  ;;  %v17731_v39 = vand.u32 4294901760, %v15743_v60  ;;  %v17732_v44 = vld [vmem:[#allocation76_spill] sm:$0xff] }
 0x2fe   : > { %v6491_v8 = vpop.f32.mrf.mxu0  ;;  %v6708_v20 = vpop.f32.mrf.mxu1 }
 0x2ff   : > { %v15845_v59 = vadd.f32 %v12392_v33, %v6499_v18  ;;  %v6492_v25 = vadd.f32 %v6491_v8, %v15763_v35 }
 0x300   : > { %v12369_v63 = vpop.f32.mrf.mxu0  ;;  %12680 = vmatmul.mubr.f32.gmra.mxu0 %v17728_v10  ;;  %v12401_v46 = vpop.f32.mrf.mxu1  ;;  %12712 = vmatmul.mubr.f32.gmra.mxu1 %v17729_v38 }
 0x301   : > { %v15850_v4 = vadd.f32 %v6676_v7, %v6492_v25  ;;  %v6513_v19 = vadd.f32 %v12369_v63, %v15768_v50  ;;  %12682 = vmatprep.mubr.f32.mxu0 %v17730_v30  ;;  %12714 = vmatprep.mubr.f32.mxu1 %v17731_v39  ;;  %v17733_v7 = vand.u32 4294901760, %v15753_v48  ;;  %v17734_v63 = vld [vmem:[#allocation181_spill] sm:$0xff]  ;;  %v17735_v30 = vld [vmem:[#allocation182_spill] sm:$0xff] }
 0x302   : > { %v6505_v51 = vpop.f32.mrf.mxu0  ;;  %v6724_v33 = vpop.f32.mrf.mxu1 }
 0x303   : > { %v15856_v18 = vadd.f32 %v12395_v31, %v6513_v19  ;;  %v6506_v35 = vadd.f32 %v6505_v51, %v15777_v22 }
 0x304   : > { %v12372_v11 = vpop.f32.mrf.mxu0  ;;  %12683 = vmatmul.mubr.f32.gmra.mxu0 %v17732_v44  ;;  %v12404_v8 = vpop.f32.mrf.mxu1  ;;  %12715 = vmatmul.mubr.f32.gmra.mxu1 %v17733_v7 }
 0x305   : > { %v15862_v25 = vadd.f32 %v6692_v6, %v6506_v35  ;;  %v6527_v50 = vadd.f32 %v12372_v11, %v15784_v12  ;;  %12685 = vmatprep.mubr.f32.mxu0 %v17734_v63  ;;  %12745 = vmatprep.mubr.f32.mxu1 %v17658_v55 }
 0x306   : > { %v6519_v10 = vpop.f32.mrf.mxu0  ;;  %v6740_v31 = vpop.f32.mrf.mxu1 }
 0x307   : > { %v15867_v38 = vadd.f32 %v12398_v13, %v6527_v50  ;;  %v6520_v22 = vadd.f32 %v6519_v10, %v15790_v1 }
 0x308   : > { %v12375_v19 = vpop.f32.mrf.mxu0  ;;  %12686 = vmatmul.mubr.f32.gmra.mxu0 %v17735_v30  ;;  %v12435_v39 = vpop.f32.mrf.mxu1  ;;  %12746 = vmatmul.mubr.f32.vlgmr.msra.gmra.mxu1 %v17661_v52 }
 0x309   : > { %v15872_v6 = vadd.f32 %v6708_v20, %v6520_v22  ;;  %v6541_v12 = vadd.f32 %v12375_v19, %v15794_v9  ;;  %12688 = vmatprep.mubr.f32.mxu0 %v15743_v60  ;;  %12796 = vmatpush3.msra.mxu1 %v15788_v14 }
 0x30a   : > { %v6533_v51 = vpop.f32.mrf.mxu0  ;;  %v6984_v35 = vpop.f32.mrf.mxu1  ;;  %12748 = vmatprep.mubr.f32.mxu1 %v17665_v28  ;;  %12847 = vmatprep.subr.mxu1 %v15730_v23 }
 0x30b   : > { %v15879_v1 = vadd.f32 %v12401_v46, %v6541_v12  ;;  %v6534_v13 = vadd.f32 %v6533_v51, %v15799_v62 }
 0x30c   : > { %v12378_v11 = vpop.f32.mrf.mxu0  ;;  %12689 = vmatmul.mubr.f32.gmra.mxu0 %v15753_v48  ;;  %v12438_v20 = vpop.f32.mrf.mxu1  ;;  %12749 = vmatmul.mubr.f32.gmra.mxu1 %v17670_v36 }
 0x30d   : > { %v15884_v9 = vadd.f32 %v6724_v33, %v6534_v13  ;;  %v6555_v60 = vadd.f32 %v12378_v11, %v15802_v57  ;;  %12719 = vmatprep.mubr.f32.mxu0 %v17658_v55  ;;  %12751 = vmatprep.mubr.f32.mxu1 %v17674_v45 }
 0x30e   : > { %v6547_v14 = vpop.f32.mrf.mxu0  ;;  %v6996_v44 = vpop.f32.mrf.mxu1 }
 0x30f   : > { %v15889_v46 = vadd.f32 %v12404_v8, %v6555_v60  ;;  %v6548_v62 = vadd.f32 %v6547_v14, %v15806_v49 }
 0x310   : > { %v12409_v7 = vpop.f32.mrf.mxu0  ;;  %12720 = vmatmul.mubr.f32.vlgmr.msra.gmra.mxu0 %v17661_v52  ;;  %v12441_v48 = vpop.f32.mrf.mxu1  ;;  %12752 = vmatmul.mubr.f32.gmra.mxu1 %v17678_v16 }
 0x311   : > { %v15894_v33 = vadd.f32 %v6740_v31, %v6548_v62  ;;  %v6829_v57 = vadd.f32 %v12409_v7, %v15815_v37  ;;  %12770 = vmatpush3.msra.mxu0 %v15730_v23  ;;  %12722 = vmatprep.mubr.f32.mxu0 %v17665_v28 }
 0x312   : > { %v6822_v55 = vpop.f32.mrf.mxu0  ;;  %v7008_v50 = vpop.f32.mrf.mxu1  ;;  %12754 = vmatprep.mubr.f32.mxu1 %v17682_v29  ;;  %12821 = vmatprep.subr.mxu0 %v15746_v32 }
 0x313   : > { %v6991_v49 = vadd.f32 %v12435_v39, %v6829_v57  ;;  %v6823_v52 = vadd.f32 %v6822_v55, %v15820_v26  ;;  %v17737_v57 = vld [vmem:[#allocation88_spill] sm:$0xff] }
 0x314   : > { %v12412_v8 = vpop.f32.mrf.mxu0  ;;  %12723 = vmatmul.mubr.f32.gmra.mxu0 %v17670_v36  ;;  %v12444_v63 = vpop.f32.mrf.mxu1  ;;  %12755 = vmatmul.mubr.f32.gmra.mxu1 %v17687_v42 }
 0x315   : > { %v15905_v37 = vadd.f32 %v6991_v49, %v15609_v34  ;;  %v6985_v10 = vadd.f32 %v6984_v35, %v6823_v52  ;;  %v6841_v28 = vadd.f32 %v12412_v8, %v15825_v17  ;;  %12725 = vmatprep.mubr.f32.mxu0 %v17674_v45  ;;  %12757 = vmatprep.mubr.f32.mxu1 %v17689_v61 }
 0x316   : > { %v6834_v31 = vpop.f32.mrf.mxu0  ;;  %v7020_v22 = vpop.f32.mrf.mxu1 }
 0x317   : > { %v15911_v26 = vadd.f32 %v6985_v10, %v15615_v3  ;;  %v7003_v19 = vadd.f32 %v12438_v20, %v6841_v28  ;;  %v6835_v36 = vadd.f32 %v6834_v31, %v15830_v54  ;;  %v17740_v28 = vld [vmem:[#allocation133_spill] sm:$0xff] }
 0x318   : > { %v12415_v30 = vpop.f32.mrf.mxu0  ;;  %12726 = vmatmul.mubr.f32.gmra.mxu0 %v17678_v16  ;;  %v12447_v34 = vpop.f32.mrf.mxu1  ;;  %12758 = vmatmul.mubr.f32.gmra.mxu1 %v17691_v0 }
 0x319   : > { %v15917_v17 = vadd.f32 %v7003_v19, %v15621_v40  ;;  %v6997_v45 = vadd.f32 %v6996_v44, %v6835_v36  ;;  %v6853_v39 = vadd.f32 %v12415_v30, %v15835_v2  ;;  %12728 = vmatprep.mubr.f32.mxu0 %v17682_v29  ;;  %12760 = vmatprep.mubr.f32.mxu1 %v17694_v21  ;;  %v13002_v19 = vld [vmem:[%s13220_s28 + $0xd8] sm:$0xff] }
 0x31a   : > { %v6846_v3 = vpop.f32.mrf.mxu0  ;;  %v7032_v12 = vpop.f32.mrf.mxu1  ;;  %v9330_v36 = vrot.slane %v13002_v19, 2  ;;  %v17764_v19 = vld [vmem:[#allocation146_spill] sm:$0xff] }
 0x31b   : > { %v15923_v54 = vadd.f32 %v6997_v45, %v15627_v15  ;;  %v7015_v51 = vadd.f32 %v12441_v48, %v6853_v39  ;;  %v6847_v16 = vadd.f32 %v6846_v3, %v15840_v24  ;;  %v17736_v48 = vld [vmem:[#allocation98_spill] sm:$0xff] }
 0x31c   : > { %v12418_v35 = vpop.f32.mrf.mxu0  ;;  %12729 = vmatmul.mubr.f32.gmra.mxu0 %v17687_v42  ;;  %v12450_v40 = vpop.f32.mrf.mxu1  ;;  %12761 = vmatmul.mubr.f32.gmra.mxu1 %v17696_v47 }
 0x31d   : > { %v15929_v2 = vadd.f32 %v7015_v51, %v15633_v53  ;;  %v7009_v29 = vadd.f32 %v7008_v50, %v6847_v16  ;;  %v6865_v13 = vadd.f32 %v12418_v35, %v15845_v59  ;;  %12731 = vmatprep.mubr.f32.mxu0 %v17689_v61  ;;  %12763 = vmatprep.mubr.f32.mxu1 %v17698_v58  ;;  %v17738_v50 = vld [vmem:[#allocation22_spill] sm:$0xff]  ;;  %v17746_v16 = vld [vmem:[#allocation137_spill] sm:$0xff] }
 0x31e   : > { %v6858_v15 = vpop.f32.mrf.mxu0  ;;  %v7044_v11 = vpop.f32.mrf.mxu1  ;;  %v17747_v35 = vld [vmem:[#allocation66_spill] sm:$0xff] }
 0x31f   : > { %v15935_v24 = vadd.f32 %v7009_v29, %v15639_v41  ;;  %v7027_v20 = vadd.f32 %v12444_v63, %v6865_v13  ;;  %v6859_v42 = vadd.f32 %v6858_v15, %v15850_v4  ;;  %v17749_v15 = vld [vmem:[#allocation147_spill] sm:$0xff] }
 0x320   : > { %v12421_v60 = vpop.f32.mrf.mxu0  ;;  %12732 = vmatmul.mubr.f32.gmra.mxu0 %v17691_v0  ;;  %v12453_v53 = vpop.f32.mrf.mxu1  ;;  %12764 = vmatmul.mubr.f32.gmra.mxu1 %v17701_v43 }
 0x321   : > { %v15941_v59 = vadd.f32 %v7027_v20, %v15645_v5  ;;  %v7021_v61 = vadd.f32 %v7020_v22, %v6859_v42  ;;  %v6877_v14 = vadd.f32 %v12421_v60, %v15856_v18  ;;  %12734 = vmatprep.mubr.f32.mxu0 %v17694_v21  ;;  %12766 = vmatprep.mubr.f32.mxu1 %v15727_v27  ;;  %v17751_v42 = vld [vmem:[#allocation84_spill] sm:$0xff] }
 0x322   : > { %v6870_v41 = vpop.f32.mrf.mxu0  ;;  %v7056_v44 = vpop.f32.mrf.mxu1  ;;  %v9333_v60 = vrot.slane %v17751_v42, 2  ;;  %v17770_v42 = vld [vmem:[#allocation155_spill] sm:$0xff] }
 0x323   : > { %v15947_v4 = vadd.f32 %v7021_v61, %v15651_v56  ;;  %v7039_v62 = vadd.f32 %v12447_v34, %v6877_v14  ;;  %v6871_v0 = vadd.f32 %v6870_v41, %v15862_v25  ;;  %v17739_v25 = vld [vmem:[#allocation7_spill] sm:$0xff] }
 0x324   : > { %v12424_v7 = vpop.f32.mrf.mxu0  ;;  %12735 = vmatmul.mubr.f32.gmra.mxu0 %v17696_v47  ;;  %v12456_v5 = vpop.f32.mrf.mxu1  ;;  %12767 = vmatmul.mubr.f32.gmra.mxu1 %v17736_v48  ;;  %v17743_v34 = vld [vmem:[#allocation23_spill] sm:$0xff] }
 0x325   : > { %v15953_v18 = vadd.f32 %v7039_v62, %v17737_v57  ;;  %v7033_v21 = vadd.f32 %v7032_v12, %v6871_v0  ;;  %v6889_v55 = vadd.f32 %v12424_v7, %v15867_v38  ;;  %12737 = vmatprep.mubr.f32.mxu0 %v17698_v58  ;;  %12797 = vmatprep.mubr.f32.mxu1 %v17738_v50  ;;  %v17741_v38 = vld [vmem:[#allocation104_spill] sm:$0xff]  ;;  %v13003_v12 = vld [vmem:[%s13220_s28 + $0xe0] sm:$0xff]  ;;  %v17755_v7 = vld [vmem:[#allocation42_spill] sm:$0xff]  ;;  %s185_s28 = sand.u32 1, %s13072_s13  }
 0x326   : > { %v6882_v56 = vpop.f32.mrf.mxu0  ;;  %v7068_v49 = vpop.f32.mrf.mxu1  ;;  %s10594_s4 = sshll.u32 %s185_s28, 7  ;;  %s16564_s24 = scalar_lea.sflag [#allocation3], %s185_s28 }
 0x327   : > { %v15959_v52 = vadd.f32 %v7033_v21, %v17739_v25  ;;  %v7051_v47 = vadd.f32 %v12450_v40, %v6889_v55  ;;  %v6883_v8 = vadd.f32 %v6882_v56, %v15872_v6  ;;  %v17758_v56 = vld [vmem:[#allocation126_spill] sm:$0xff]  ;;  %s16473_s7 = scalar_lea.vmem [#allocation2], %s10594_s4  ;;  %s13008_s4 = sshll.u32 %s13098_s29, 4  ;;  %s13009_s4 = int_to_ptr.vmem [resolvable:$false] %s13008_s4 }
 0x328   : > { %v12427_v63 = vpop.f32.mrf.mxu0  ;;  %12738 = vmatmul.mubr.f32.gmra.mxu0 %v17701_v43  ;;  %v12487_v10 = vpop.f32.mrf.mxu1  ;;  %12798 = vmatmul.mubr.f32.vlgmr.msra.gmra.mxu1 %v17740_v28  ;;  %v17744_v43 = vld [vmem:[#allocation90_spill] sm:$0xff]  ;;  %s10504_s16 = sshll.u32 %s16473_s7, 4  ;;  %s13010_s5 = scalar_lea.vmem %s13009_s4, 4096  ;;  %s16557_s16 = int_to_ptr.vmem [resolvable:$true] %s10504_s16 }
 0x329   : > { %v15965_v58 = vadd.f32 %v7051_v47, %v17741_v38  ;;  %v7045_v31 = vadd.f32 %v7044_v11, %v6883_v8  ;;  %v6901_v22 = vadd.f32 %v12427_v63, %v15879_v1  ;;  %12740 = vmatprep.mubr.f32.mxu0 %v15727_v27  ;;  %12848 = vmatpush3.msra.mxu1 %v15730_v23  ;;  %v9331_v1 = vrot.slane %v13003_v12, 2  ;;  %v17750_v11 = vld [vmem:[#allocation37_spill] sm:$0xff]  ;;  %v17759_v25 = vld [vmem:[#allocation54_spill] sm:$0xff]  ;;  %v17760_v63 = vld [vmem:[#allocation143_spill] sm:$0xff]  ;;  %s13004_s27 = scalar_lea.vmem %s16557_s16, 2048  ;;  %p13011_p4 = scmp.lt.s32.totalorder %s16557_s16, %s13009_s4 }
 0x32a   : > { %v6894_v6 = vpop.f32.mrf.mxu0  ;;  %v7401_v30 = vpop.f32.mrf.mxu1  ;;  %12800 = vmatprep.mubr.f32.mxu1 %v17743_v34  ;;  %12899 = vmatprep.subr.mxu1 %v15730_v23  ;;  %v17761_v38 = vld [vmem:[#allocation107_spill] sm:$0xff]  ;;  %p13005_p0 = scmp.ne.s32.totalorder %s16557_s16, %s13004_s27  ;;  %p13012_p5 = scmp.lt.s32.totalorder %s13010_s5, %s13004_s27 }
 0x32b   : > { %17742 = vst [vmem:[#allocation10_spill] sm:$0xff] %v15965_v58  ;;  %v15974_v45 = vadd.f32 %v7045_v31, %v17744_v43  ;;  %v7063_v39 = vadd.f32 %v12453_v53, %v6901_v22  ;;  %v6895_v3 = vadd.f32 %v6894_v6, %v15884_v9  ;;  %v17752_v53 = vld [vmem:[#allocation96_spill] sm:$0xff]  ;;  %v9332_v62 = vsel %vm2556_vm3, %v9330_v36, %v9331_v1  ;;  %v17765_v6 = vld [vmem:[#allocation157_spill] sm:$0xff] }
 0x32c   : > { %v12430_v51 = vpop.f32.mrf.mxu0  ;;  %12741 = vmatmul.mubr.f32.gmra.mxu0 %v17736_v48  ;;  %v12490_v27 = vpop.f32.mrf.mxu1  ;;  %12801 = vmatmul.mubr.f32.gmra.mxu1 %v17746_v16  ;;  %v17756_v48 = vld [vmem:[#allocation20_spill] sm:$0xff]  ;;  %v9335_v47 = vsel %vm302_vm2, %v9332_v62, 0  ;;  %v9334_v8 = vsel %vm2556_vm3, %v9331_v1, %v9333_v60  ;;  %v17771_v62 = vld [vmem:[#allocation170_spill] sm:$0xff]  ;;  %v17796_v58 = vld [vmem:[#allocation165_spill] sm:$0xff]  ;;  %p13006_p1 = pnand %p13005_p0, %p13172_p3  ;;  %p13013_p6 = por %p13012_p5, %p13011_p4 }
 0x32d   : > { %17745 = vst [vmem:[#allocation114_spill] sm:$0xff] %v15974_v45  ;;  %v15981_v40 = vadd.f32 %v7063_v39, %v17747_v35  ;;  %v7057_v29 = vadd.f32 %v7056_v44, %v6895_v3  ;;  %v6913_v13 = vadd.f32 %v12430_v51, %v15889_v46  ;;  %12771 = vmatprep.mubr.f32.mxu0 %v17749_v15  ;;  %v17754_v44 = vld [vmem:[#allocation149_spill] sm:$0xff]  ;;  %v17763_v22 = vld [vmem:[#allocation156_spill] sm:$0xff]  ;;  %v16016_v39 = vand.u32 4294901760, %v9335_v47  ;;  %v17792_v45 = vld [vmem:[#allocation158_spill] sm:$0xff] }
 0x32e   : > { %12803 = vmatprep.mubr.f32.mxu1 %v17750_v11  ;;  %v6906_v20 = vpop.f32.mrf.mxu0  ;;  %v7413_v9 = vpop.f32.mrf.mxu1  ;;  %v17766_v43 = vld [vmem:[#allocation148_spill] sm:$0xff]  ;;  %v9337_v3 = vsel %vm302_vm2, %v9334_v8, 0  ;;  %p13007_p2 = pneg %p13006_p1 }
 0x32f   : > { %17748 = vst [vmem:[#allocation103_spill] sm:$0xff] %v15981_v40  ;;  %v15988_v61 = vadd.f32 %v7057_v29, %v17752_v53  ;;  %v7075_v14 = vadd.f32 %v12456_v5, %v6913_v13  ;;  %v6907_v41 = vadd.f32 %v6906_v20, %v15894_v33  ;;  %v17767_v35 = vld [vmem:[#allocation164_spill] sm:$0xff]  ;;  %v17768_v13 = vld [vmem:[#allocation153_spill] sm:$0xff]  ;;  %v17769_v20 = vld [vmem:[#allocation167_spill] sm:$0xff]  ;;  %v16030_v60 = vsub.f32 %v9335_v47, %v16016_v39 }
 0x330   : > { %v12461_v0 = vpop.f32.mrf.mxu0  ;;  %12772 = vmatmul.mubr.f32.vlgmr.msra.gmra.mxu0 %v17754_v44  ;;  %v12493_v46 = vpop.f32.mrf.mxu1  ;;  %12804 = vmatmul.mubr.f32.gmra.mxu1 %v17755_v7  ;;  %v17772_v44 = vld [vmem:[#allocation160_spill] sm:$0xff]  ;;  %v17787_v40 = vld [vmem:[#allocation135_spill] sm:$0xff]  ;;  %p13014_p7 = pnand %p13013_p6, %p13007_p2 }
 0x331   : > { %17753 = vst [vmem:[#allocation118_spill] sm:$0xff] %v15988_v61  ;;  %v15995_v57 = vadd.f32 %v7075_v14, %v17756_v48  ;;  %v7069_v21 = vadd.f32 %v7068_v49, %v6907_v41  ;;  %v15997_v55 = vadd.f32 %v12487_v10, %v12461_v0  ;;  %12822 = vmatpush3.msra.mxu0 %v15746_v32  ;;  %v17782_v61 = vld [vmem:[#allocation138_spill] sm:$0xff] }
 0x332   : > { %12774 = vmatprep.mubr.f32.mxu0 %v17758_v56  ;;  %v7175_v5 = vpop.f32.mrf.mxu0  ;;  %v7425_v33 = vpop.f32.mrf.mxu1  ;;  %12806 = vmatprep.mubr.f32.mxu1 %v17759_v25  ;;  %v17774_v56 = vld [vmem:[#allocation11_spill] sm:$0xff] }
 0x333   : > { %17757 = vst [vmem:[#allocation106_spill] sm:$0xff] %v15995_v57  ;;  %12873 = vmatprep.subr.mxu0 %v17760_v63  ;;  %v16006_v31 = vadd.f32 %v7069_v21, %v17761_v38  ;;  %v16008_v49 = vadd.f32 %v7401_v30, %v7175_v5  ;;  %v17773_v21 = vld [vmem:[#allocation172_spill] sm:$0xff]  ;;  %v17089_v5 = vand.u32 4294901760, %v16030_v60 }
 0x334   : > { %v12464_v10 = vpop.f32.mrf.mxu0  ;;  %12775 = vmatmul.mubr.f32.gmra.mxu0 %v17763_v22  ;;  %v12496_v32 = vpop.f32.mrf.mxu1  ;;  %12807 = vmatmul.mubr.f32.gmra.mxu1 %v17764_v19 }
 0x335   : > { %17762 = vst [vmem:[#allocation121_spill] sm:$0xff] %v16006_v31  ;;  %v16012_v36 = vadd.f32 %v12490_v27, %v12464_v10  ;;  %12777 = vmatprep.mubr.f32.mxu0 %v17765_v6  ;;  %12809 = vmatprep.mubr.f32.mxu1 %v17766_v43  ;;  %v16023_v27 = vand.u32 4294901760, %v9337_v3  ;;  %v17775_v10 = vld [vmem:[#allocation173_spill] sm:$0xff] }
 0x336   : > { %v7195_v12 = vpop.f32.mrf.mxu0  ;;  %v7437_v1 = vpop.f32.mrf.mxu1  ;;  %v17776_v6 = vld [vmem:[#allocation177_spill] sm:$0xff] }
 0x337   : > { %v16019_v30 = vadd.f32 %v7413_v9, %v7195_v12  ;;  %v17777_v12 = vld [vmem:[#allocation174_spill] sm:$0xff] }
 0x338   : > { %v12467_v51 = vpop.f32.mrf.mxu0  ;;  %12778 = vmatmul.mubr.f32.gmra.mxu0 %v17767_v35  ;;  %v12499_v29 = vpop.f32.mrf.mxu1  ;;  %12810 = vmatmul.mubr.f32.gmra.mxu1 %v17768_v13 }
 0x339   : > { %v16025_v15 = vadd.f32 %v12493_v46, %v12467_v51  ;;  %12780 = vmatprep.mubr.f32.mxu0 %v17769_v20  ;;  %12812 = vmatprep.mubr.f32.mxu1 %v17770_v42  ;;  %v16037_v46 = vsub.f32 %v9337_v3, %v16023_v27  ;;  %v9551_v51 = vsub.f32 %v16030_v60, %v17089_v5 }
 0x33a   : > { %v7215_v53 = vpop.f32.mrf.mxu0  ;;  %v7449_v9 = vpop.f32.mrf.mxu1 }
 0x33b   : > { %v16032_v14 = vadd.f32 %v7425_v33, %v7215_v53  ;;  %v17090_v3 = vand.u32 4294901760, %v16037_v46 }
 0x33c   : > { %v12470_v41 = vpop.f32.mrf.mxu0  ;;  %12781 = vmatmul.mubr.f32.gmra.mxu0 %v17771_v62  ;;  %v12502_v0 = vpop.f32.mrf.mxu1  ;;  %12813 = vmatmul.mubr.f32.gmra.mxu1 %v17772_v44 }
 0x33d   : > { %v16039_v48 = vadd.f32 %v12496_v32, %v12470_v41  ;;  %12783 = vmatprep.mubr.f32.mxu0 %v17773_v21  ;;  %12815 = vmatprep.mubr.f32.mxu1 %v17774_v56  ;;  %v17778_v41 = vld [vmem:[#allocation175_spill] sm:$0xff] }
 0x33e   : > { %v7235_v47 = vpop.f32.mrf.mxu0  ;;  %v7461_v33 = vpop.f32.mrf.mxu1 }
 0x33f   : > { %v16044_v8 = vadd.f32 %v7437_v1, %v7235_v47  ;;  %v17779_v47 = vld [vmem:[#allocation184_spill] sm:$0xff] }
 0x340   : > { %v12473_v38 = vpop.f32.mrf.mxu0  ;;  %12784 = vmatmul.mubr.f32.gmra.mxu0 %v17775_v10  ;;  %v12505_v22 = vpop.f32.mrf.mxu1  ;;  %12816 = vmatmul.mubr.f32.gmra.mxu1 %v17776_v6  ;;  %v17780_v10 = vld [vmem:[#allocation41_spill] sm:$0xff] }
 0x341   : > { %v16049_v32 = vadd.f32 %v12499_v29, %v12473_v38  ;;  %12786 = vmatprep.mubr.f32.mxu0 %v17777_v12  ;;  %12818 = vmatprep.mubr.f32.mxu1 %v16016_v39  ;;  %v9561_v29 = vsub.f32 %v16037_v46, %v17090_v3  ;;  %v9552_v38 = vand.u32 4294901760, %v9551_v51 }
 0x342   : > { %v7255_v1 = vpop.f32.mrf.mxu0  ;;  %v7473_v35 = vpop.f32.mrf.mxu1 }
 0x343   : > { %v16056_v20 = vadd.f32 %v7449_v9, %v7255_v1  ;;  %v9562_v31 = vand.u32 4294901760, %v9561_v29 }
 0x344   : > { %v12476_v53 = vpop.f32.mrf.mxu0  ;;  %12787 = vmatmul.mubr.f32.gmra.mxu0 %v17778_v41  ;;  %v12508_v62 = vpop.f32.mrf.mxu1  ;;  %12819 = vmatmul.mubr.f32.gmra.mxu1 %v16023_v27  ;;  %v17781_v41 = vld [vmem:[#allocation29_spill] sm:$0xff] }
 0x345   : > { %v16063_v21 = vadd.f32 %v12502_v0, %v12476_v53  ;;  %12789 = vmatprep.mubr.f32.mxu0 %v17779_v47  ;;  %12849 = vmatprep.mubr.f32.mxu1 %v17780_v10  ;;  %v17783_v53 = vld [vmem:[#allocation139_spill] sm:$0xff] }
 0x346   : > { %v7275_v12 = vpop.f32.mrf.mxu0  ;;  %v7485_v9 = vpop.f32.mrf.mxu1 }
 0x347   : > { %v16067_v1 = vadd.f32 %v7461_v33, %v7275_v12  ;;  %v17784_v12 = vld [vmem:[#allocation142_spill] sm:$0xff] }
 0x348   : > { %v12479_v5 = vpop.f32.mrf.mxu0  ;;  %12790 = vmatmul.mubr.f32.gmra.mxu0 %v17781_v41  ;;  %v12539_v57 = vpop.f32.mrf.mxu1  ;;  %12850 = vmatmul.mubr.f32.vlgmr.msra.gmra.mxu1 %v17782_v61  ;;  %v17785_v41 = vld [vmem:[#allocation134_spill] sm:$0xff]  ;;  %v17786_v61 = vld [vmem:[#allocation144_spill] sm:$0xff] }
 0x349   : > { %v16071_v3 = vadd.f32 %v12505_v22, %v12479_v5  ;;  %12792 = vmatprep.mubr.f32.mxu0 %v9552_v38  ;;  %12900 = vmatpush3.msra.mxu1 %v15730_v23 }
 0x34a   : > { %v7295_v0 = vpop.f32.mrf.mxu0  ;;  %v7744_v51 = vpop.f32.mrf.mxu1  ;;  %12852 = vmatprep.mubr.f32.mxu1 %v17783_v53 }
 0x34b   : > { %v16075_v47 = vadd.f32 %v7473_v35, %v7295_v0  ;;  %v17788_v0 = vld [vmem:[#allocation150_spill] sm:$0xff] }
 0x34c   : > { %v12482_v33 = vpop.f32.mrf.mxu0  ;;  %12793 = vmatmul.mubr.f32.gmra.mxu0 %v9562_v31  ;;  %v12542_v10 = vpop.f32.mrf.mxu1  ;;  %12853 = vmatmul.mubr.f32.gmra.mxu1 %v17784_v12  ;;  %v17790_v12 = vld [vmem:[#allocation151_spill] sm:$0xff] }
 0x34d   : > { %v16078_v29 = vadd.f32 %v12508_v62, %v12482_v33  ;;  %12823 = vmatprep.mubr.f32.mxu0 %v17785_v41  ;;  %12855 = vmatprep.mubr.f32.mxu1 %v17786_v61  ;;  %v17789_v62 = vld [vmem:[#allocation136_spill] sm:$0xff] }
 0x34e   : > { %v7315_v5 = vpop.f32.mrf.mxu0  ;;  %v7760_v22 = vpop.f32.mrf.mxu1 }
 0x34f   : > { %v16082_v23 = vadd.f32 %v7485_v9, %v7315_v5  ;;  %v17791_v5 = vld [vmem:[#allocation140_spill] sm:$0xff] }
 0x350   : > { %v12513_v38 = vpop.f32.mrf.mxu0  ;;  %12824 = vmatmul.mubr.f32.vlgmr.msra.gmra.mxu0 %v17787_v40  ;;  %v12545_v35 = vpop.f32.mrf.mxu1  ;;  %12856 = vmatmul.mubr.f32.gmra.mxu1 %v17788_v0 }
 0x351   : > { %v7573_v31 = vadd.f32 %v12513_v38, %v15997_v55  ;;  %12874 = vmatpush3.msra.mxu0 %v17760_v63  ;;  %12826 = vmatprep.mubr.f32.mxu0 %v17789_v62  ;;  %v17793_v63 = vld [vmem:[#allocation53_spill] sm:$0xff] }
 0x352   : > { %v7565_v53 = vpop.f32.mrf.mxu0  ;;  %v7776_v33 = vpop.f32.mrf.mxu1  ;;  %12858 = vmatprep.mubr.f32.mxu1 %v17790_v12  ;;  %v17794_v38 = vld [vmem:[#allocation161_spill] sm:$0xff] }
 0x353   : > { %v16090_v41 = vadd.f32 %v12539_v57, %v7573_v31  ;;  %v7566_v9 = vadd.f32 %v7565_v53, %v16008_v49  ;;  %v17795_v53 = vld [vmem:[#allocation59_spill] sm:$0xff] }
 0x354   : > { %v12516_v61 = vpop.f32.mrf.mxu0  ;;  %12827 = vmatmul.mubr.f32.gmra.mxu0 %v17791_v5  ;;  %v12548_v40 = vpop.f32.mrf.mxu1  ;;  %12859 = vmatmul.mubr.f32.gmra.mxu1 %v17792_v45 }
 0x355   : > { %v16095_v0 = vadd.f32 %v7744_v51, %v7566_v9  ;;  %v7587_v55 = vadd.f32 %v12516_v61, %v16012_v36  ;;  %12829 = vmatprep.mubr.f32.mxu0 %v17793_v63  ;;  %12861 = vmatprep.mubr.f32.mxu1 %v17794_v38  ;;  %v17797_v51 = vld [vmem:[#allocation145_spill] sm:$0xff]  ;;  %v17798_v9 = vld [vmem:[#allocation168_spill] sm:$0xff] }
 0x356   : > { %v7579_v62 = vpop.f32.mrf.mxu0  ;;  %v7792_v12 = vpop.f32.mrf.mxu1  ;;  %v17799_v38 = vld [vmem:[#allocation152_spill] sm:$0xff] }
 0x357   : > { %v16100_v57 = vadd.f32 %v12542_v10, %v7587_v55  ;;  %v7580_v49 = vadd.f32 %v7579_v62, %v16019_v30 }
 0x358   : > { %v12519_v31 = vpop.f32.mrf.mxu0  ;;  %12830 = vmatmul.mubr.f32.gmra.mxu0 %v17795_v53  ;;  %v12551_v5 = vpop.f32.mrf.mxu1  ;;  %12862 = vmatmul.mubr.f32.gmra.mxu1 %v17796_v58  ;;  %v17800_v53 = vld [vmem:[#allocation171_spill] sm:$0xff] }
 0x359   : > { %v16105_v45 = vadd.f32 %v7760_v22, %v7580_v49  ;;  %v7601_v36 = vadd.f32 %v12519_v31, %v16025_v15  ;;  %12832 = vmatprep.mubr.f32.mxu0 %v17797_v51  ;;  %12864 = vmatprep.mubr.f32.mxu1 %v17798_v9  ;;  %v17801_v22 = vld [vmem:[#allocation154_spill] sm:$0xff]  ;;  %v17802_v49 = vld [vmem:[#allocation179_spill] sm:$0xff] }
 0x35a   : > { %v7593_v61 = vpop.f32.mrf.mxu0  ;;  %v7808_v63 = vpop.f32.mrf.mxu1  ;;  %v17803_v9 = vld [vmem:[#allocation159_spill] sm:$0xff] }
 0x35b   : > { %v16110_v10 = vadd.f32 %v12545_v35, %v7601_v36  ;;  %v7594_v30 = vadd.f32 %v7593_v61, %v16032_v14 }
 0x35c   : > { %v12522_v55 = vpop.f32.mrf.mxu0  ;;  %12833 = vmatmul.mubr.f32.gmra.mxu0 %v17799_v38  ;;  %v12554_v62 = vpop.f32.mrf.mxu1  ;;  %12865 = vmatmul.mubr.f32.gmra.mxu1 %v17800_v53  ;;  %v17804_v38 = vld [vmem:[#allocation24_spill] sm:$0xff] }
 0x35d   : > { %v16115_v58 = vadd.f32 %v7776_v33, %v7594_v30  ;;  %v7615_v15 = vadd.f32 %v12522_v55, %v16039_v48  ;;  %12835 = vmatprep.mubr.f32.mxu0 %v17801_v22  ;;  %12867 = vmatprep.mubr.f32.mxu1 %v17802_v49  ;;  %v17805_v30 = vld [vmem:[#allocation162_spill] sm:$0xff]  ;;  %v17806_v55 = vand.u32 4294901760, %v16030_v60 }
 0x35e   : > { %v7607_v31 = vpop.f32.mrf.mxu0  ;;  %v7824_v51 = vpop.f32.mrf.mxu1  ;;  %v17807_v49 = vld [vmem:[#allocation166_spill] sm:$0xff] }
 0x35f   : > { %v16120_v35 = vadd.f32 %v12548_v40, %v7615_v15  ;;  %v7608_v14 = vadd.f32 %v7607_v31, %v16044_v8 }
 0x360   : > { %v12525_v36 = vpop.f32.mrf.mxu0  ;;  %12836 = vmatmul.mubr.f32.gmra.mxu0 %v17803_v9  ;;  %v12557_v61 = vpop.f32.mrf.mxu1  ;;  %12868 = vmatmul.mubr.f32.gmra.mxu1 %v17804_v38 }
 0x361   : > { %v16125_v33 = vadd.f32 %v7792_v12, %v7608_v14  ;;  %v7629_v48 = vadd.f32 %v12525_v36, %v16049_v32  ;;  %12838 = vmatprep.mubr.f32.mxu0 %v17805_v30  ;;  %12870 = vmatprep.mubr.f32.mxu1 %v17806_v55  ;;  %v17808_v12 = vand.u32 4294901760, %v16037_v46  ;;  %v17809_v36 = vld [vmem:[#allocation141_spill] sm:$0xff]  ;;  %v17810_v30 = vld [vmem:[#allocation178_spill] sm:$0xff] }
 0x362   : > { %v7621_v53 = vpop.f32.mrf.mxu0  ;;  %v7840_v40 = vpop.f32.mrf.mxu1 }
 0x363   : > { %v16131_v15 = vadd.f32 %v12551_v5, %v7629_v48  ;;  %v7622_v8 = vadd.f32 %v7621_v53, %v16056_v20 }
 0x364   : > { %v12528_v22 = vpop.f32.mrf.mxu0  ;;  %12839 = vmatmul.mubr.f32.gmra.mxu0 %v17807_v49  ;;  %v12560_v31 = vpop.f32.mrf.mxu1  ;;  %12871 = vmatmul.mubr.f32.gmra.mxu1 %v17808_v12 }
 0x365   : > { %v16137_v14 = vadd.f32 %v7808_v63, %v7622_v8  ;;  %v7643_v32 = vadd.f32 %v12528_v22, %v16063_v21  ;;  %12841 = vmatprep.mubr.f32.mxu0 %v17809_v36  ;;  %12901 = vmatprep.mubr.f32.mxu1 %v17738_v50 }
 0x366   : > { %v7635_v9 = vpop.f32.mrf.mxu0  ;;  %v7856_v5 = vpop.f32.mrf.mxu1 }
 0x367   : > { %v16142_v38 = vadd.f32 %v12554_v62, %v7643_v32  ;;  %v7636_v20 = vadd.f32 %v7635_v9, %v16067_v1 }
 0x368   : > { %v12531_v48 = vpop.f32.mrf.mxu0  ;;  %12842 = vmatmul.mubr.f32.gmra.mxu0 %v17810_v30  ;;  %v12591_v55 = vpop.f32.mrf.mxu1  ;;  %12902 = vmatmul.mubr.f32.vlgmr.msra.gmra.mxu1 %v17740_v28 }
 0x369   : > { %v16147_v63 = vadd.f32 %v7824_v51, %v7636_v20  ;;  %v7657_v21 = vadd.f32 %v12531_v48, %v16071_v3  ;;  %12844 = vmatprep.mubr.f32.mxu0 %v16030_v60  ;;  %12904 = vmatprep.mubr.f32.mxu1 %v17743_v34 }
 0x36a   : > { %v7649_v53 = vpop.f32.mrf.mxu0  ;;  %v8100_v8 = vpop.f32.mrf.mxu1 }
 0x36b   : > { %v16152_v62 = vadd.f32 %v12557_v61, %v7657_v21  ;;  %v7650_v1 = vadd.f32 %v7649_v53, %v16075_v47 }
 0x36c   : > { %v12534_v22 = vpop.f32.mrf.mxu0  ;;  %12845 = vmatmul.mubr.f32.gmra.mxu0 %v16037_v46  ;;  %v12594_v49 = vpop.f32.mrf.mxu1  ;;  %12905 = vmatmul.mubr.f32.gmra.mxu1 %v17746_v16 }
 0x36d   : > { %v16157_v51 = vadd.f32 %v7840_v40, %v7650_v1  ;;  %v7671_v3 = vadd.f32 %v12534_v22, %v16078_v29  ;;  %12875 = vmatprep.mubr.f32.mxu0 %v17738_v50  ;;  %12907 = vmatprep.mubr.f32.mxu1 %v17750_v11 }
 0x36e   : > { %v7663_v60 = vpop.f32.mrf.mxu0  ;;  %v8112_v12 = vpop.f32.mrf.mxu1 }
 0x36f   : > { %v16162_v61 = vadd.f32 %v12560_v31, %v7671_v3  ;;  %v7664_v47 = vadd.f32 %v7663_v60, %v16082_v23 }
 0x370   : > { %v12565_v32 = vpop.f32.mrf.mxu0  ;;  %12876 = vmatmul.mubr.f32.vlgmr.msra.gmra.mxu0 %v17740_v28  ;;  %v12597_v46 = vpop.f32.mrf.mxu1  ;;  %12908 = vmatmul.mubr.f32.gmra.mxu1 %v17755_v7 }
 0x371   : > { %v16167_v40 = vadd.f32 %v7856_v5, %v7664_v47  ;;  %v7945_v29 = vadd.f32 %v12565_v32, %v16090_v41  ;;  %12878 = vmatprep.mubr.f32.mxu0 %v17743_v34  ;;  %12910 = vmatprep.mubr.f32.mxu1 %v17759_v25 }
 0x372   : > { %v7938_v50 = vpop.f32.mrf.mxu0  ;;  %v8124_v36 = vpop.f32.mrf.mxu1 }
 0x373   : > { %v8107_v31 = vadd.f32 %v12591_v55, %v7945_v29  ;;  %v7939_v9 = vadd.f32 %v7938_v50, %v16095_v0 }
 0x374   : > { %v12568_v23 = vpop.f32.mrf.mxu0  ;;  %12879 = vmatmul.mubr.f32.gmra.mxu0 %v17746_v16  ;;  %v12600_v28 = vpop.f32.mrf.mxu1  ;;  %12911 = vmatmul.mubr.f32.gmra.mxu1 %v17764_v19 }
 0x375   : > { %v16176_v5 = vadd.f32 %v8107_v31, %v15905_v37  ;;  %v8101_v20 = vadd.f32 %v8100_v8, %v7939_v9  ;;  %v7957_v41 = vadd.f32 %v12568_v23, %v16100_v57  ;;  %12881 = vmatprep.mubr.f32.mxu0 %v17750_v11  ;;  %12913 = vmatprep.mubr.f32.mxu1 %v17766_v43  ;;  %v17811_v23 = vld [vmem:[#allocation10_spill] sm:$0xff] }
 0x376   : > { %v7950_v34 = vpop.f32.mrf.mxu0  ;;  %v8136_v48 = vpop.f32.mrf.mxu1 }
 0x377   : > { %v16182_v0 = vadd.f32 %v8101_v20, %v15911_v26  ;;  %v8119_v30 = vadd.f32 %v12594_v49, %v7957_v41  ;;  %v7951_v16 = vadd.f32 %v7950_v34, %v16105_v45  ;;  %v17812_v41 = vld [vmem:[#allocation114_spill] sm:$0xff] }
 0x378   : > { %v12571_v55 = vpop.f32.mrf.mxu0  ;;  %12882 = vmatmul.mubr.f32.gmra.mxu0 %v17755_v7  ;;  %v12603_v37 = vpop.f32.mrf.mxu1  ;;  %12914 = vmatmul.mubr.f32.gmra.mxu1 %v17768_v13 }
 0x379   : > { %v16188_v57 = vadd.f32 %v8119_v30, %v15917_v17  ;;  %v8113_v11 = vadd.f32 %v8112_v12, %v7951_v16  ;;  %v7969_v21 = vadd.f32 %v12571_v55, %v16110_v10  ;;  %12884 = vmatprep.mubr.f32.mxu0 %v17759_v25  ;;  %12916 = vmatprep.mubr.f32.mxu1 %v17770_v42  ;;  %v17813_v30 = vld [vmem:[#allocation103_spill] sm:$0xff] }
 0x37a   : > { %v7962_v26 = vpop.f32.mrf.mxu0  ;;  %v8148_v53 = vpop.f32.mrf.mxu1 }
 0x37b   : > { %v16194_v45 = vadd.f32 %v8113_v11, %v15923_v54  ;;  %v8131_v8 = vadd.f32 %v12597_v46, %v7969_v21  ;;  %v7963_v7 = vadd.f32 %v7962_v26, %v16115_v58  ;;  %v17814_v11 = vld [vmem:[#allocation118_spill] sm:$0xff] }
 0x37c   : > { %v12574_v1 = vpop.f32.mrf.mxu0  ;;  %12885 = vmatmul.mubr.f32.gmra.mxu0 %v17764_v19  ;;  %v12606_v17 = vpop.f32.mrf.mxu1  ;;  %12917 = vmatmul.mubr.f32.gmra.mxu1 %v17772_v44 }
 0x37d   : > { %v16200_v10 = vadd.f32 %v8131_v8, %v15929_v2  ;;  %v8125_v25 = vadd.f32 %v8124_v36, %v7963_v7  ;;  %v7981_v22 = vadd.f32 %v12574_v1, %v16120_v35  ;;  %12887 = vmatprep.mubr.f32.mxu0 %v17766_v43  ;;  %12919 = vmatprep.mubr.f32.mxu1 %v17774_v56  ;;  %v17815_v7 = vld [vmem:[#allocation106_spill] sm:$0xff] }
 0x37e   : > { %v7974_v54 = vpop.f32.mrf.mxu0  ;;  %v8160_v49 = vpop.f32.mrf.mxu1 }
 0x37f   : > { %v16206_v58 = vadd.f32 %v8125_v25, %v15935_v24  ;;  %v8143_v3 = vadd.f32 %v12600_v28, %v7981_v22  ;;  %v7975_v19 = vadd.f32 %v7974_v54, %v16125_v33  ;;  %v17816_v54 = vld [vmem:[#allocation121_spill] sm:$0xff] }
 0x380   : > { %v12577_v60 = vpop.f32.mrf.mxu0  ;;  %12888 = vmatmul.mubr.f32.gmra.mxu0 %v17768_v13  ;;  %v12609_v2 = vpop.f32.mrf.mxu1  ;;  %12920 = vmatmul.mubr.f32.gmra.mxu1 %v17776_v6 }
 0x381   : > { %v16212_v35 = vadd.f32 %v8143_v3, %v15941_v59  ;;  %v8137_v43 = vadd.f32 %v8136_v48, %v7975_v19  ;;  %v7993_v12 = vadd.f32 %v12577_v60, %v16131_v15  ;;  %12890 = vmatprep.mubr.f32.mxu0 %v17770_v42  ;;  %12922 = vmatprep.mubr.f32.mxu1 %v16016_v39 }
 0x382   : > { %v7986_v24 = vpop.f32.mrf.mxu0  ;;  %v8172_v47 = vpop.f32.mrf.mxu1 }
 0x383   : > { %v16218_v33 = vadd.f32 %v8137_v43, %v15947_v4  ;;  %v8155_v32 = vadd.f32 %v12603_v37, %v7993_v12  ;;  %v7987_v13 = vadd.f32 %v7986_v24, %v16137_v14 }
 0x384   : > { %v12580_v46 = vpop.f32.mrf.mxu0  ;;  %12891 = vmatmul.mubr.f32.gmra.mxu0 %v17772_v44  ;;  %v12612_v59 = vpop.f32.mrf.mxu1  ;;  %12923 = vmatmul.mubr.f32.gmra.mxu1 %v16023_v27 }
 0x385   : > { %v16224_v15 = vadd.f32 %v8155_v32, %v15953_v18  ;;  %v8149_v42 = vadd.f32 %v8148_v53, %v7987_v13  ;;  %v8005_v29 = vadd.f32 %v12580_v46, %v16142_v38  ;;  %12893 = vmatprep.mubr.f32.mxu0 %v17774_v56 }
 0x386   : > { %v7998_v50 = vpop.f32.mrf.mxu0  ;;  %v8184_v4 = vpop.f32.mrf.mxu1 }
 0x387   : > { %v16229_v36 = vadd.f32 %v8149_v42, %v15959_v52  ;;  %v8167_v14 = vadd.f32 %v12606_v17, %v8005_v29  ;;  %v7999_v31 = vadd.f32 %v7998_v50, %v16147_v63 }
 0x388   : > { %v12583_v44 = vpop.f32.mrf.mxu0  ;;  %12894 = vmatmul.mubr.f32.gmra.mxu0 %v17776_v6  ;;  %v12643_v9 = vpop.f32.mrf.mxu1 }
 0x389   : > { %v16234_v18 = vadd.f32 %v8167_v14, %v17811_v23  ;;  %v8161_v28 = vadd.f32 %v8160_v49, %v7999_v31  ;;  %v8017_v38 = vadd.f32 %v12583_v44, %v16152_v62  ;;  %12896 = vmatprep.mubr.f32.mxu0 %v16016_v39 }
 0x38a   : > { %v8010_v56 = vpop.f32.mrf.mxu0  ;;  %v8521_v20 = vpop.f32.mrf.mxu1 }
 0x38b   : > { %v16239_v52 = vadd.f32 %v8161_v28, %v17812_v41  ;;  %v8179_v34 = vadd.f32 %v12609_v2, %v8017_v38  ;;  %v8011_v63 = vadd.f32 %v8010_v56, %v16157_v51 }
 0x38c   : > { %v12586_v48 = vpop.f32.mrf.mxu0  ;;  %12897 = vmatmul.mubr.f32.gmra.mxu0 %v16023_v27  ;;  %v12646_v6 = vpop.f32.mrf.mxu1 }
 0x38d   : > { %v16244_v16 = vadd.f32 %v8179_v34, %v17813_v30  ;;  %v8173_v55 = vadd.f32 %v8172_v47, %v8011_v63  ;;  %v8029_v62 = vadd.f32 %v12586_v48, %v16162_v61 }
 0x38e   : > { %v8022_v37 = vpop.f32.mrf.mxu0  ;;  %v8533_v39 = vpop.f32.mrf.mxu1 }
 0x38f   : > { %v16248_v21 = vadd.f32 %v8173_v55, %v17814_v11  ;;  %v8191_v26 = vadd.f32 %v12612_v59, %v8029_v62  ;;  %v8023_v53 = vadd.f32 %v8022_v37, %v16167_v40 }
 0x390   : > { %v12617_v8 = vpop.f32.mrf.mxu0  ;;  %v12649_v51 = vpop.f32.mrf.mxu1 }
 0x391   : > { %v16252_v1 = vadd.f32 %v8191_v26, %v17815_v7  ;;  %v8185_v27 = vadd.f32 %v8184_v4, %v8023_v53  ;;  %v8528_v17 = vadd.f32 %v12643_v9, %v12617_v8 }
 0x392   : > { %v8295_v25 = vpop.f32.mrf.mxu0  ;;  %v8545_v22 = vpop.f32.mrf.mxu1 }
 0x393   : > { %v16255_v49 = vadd.f32 %v8185_v27, %v17816_v54  ;;  %v8522_v61 = vadd.f32 %v8521_v20, %v8295_v25 }
 0x394   : > { %v12620_v3 = vpop.f32.mrf.mxu0  ;;  %v12652_v19 = vpop.f32.mrf.mxu1 }
 0x395   : > { %v8540_v60 = vadd.f32 %v12646_v6, %v12620_v3 }
 0x396   : > { %v8315_v2 = vpop.f32.mrf.mxu0  ;;  %v8557_v43 = vpop.f32.mrf.mxu1 }
 0x397   : > { %v8534_v12 = vadd.f32 %v8533_v39, %v8315_v2 }
 0x398   : > { %v12623_v40 = vpop.f32.mrf.mxu0  ;;  %v12655_v24 = vpop.f32.mrf.mxu1 }
 0x399   : > { %v8552_v47 = vadd.f32 %v12649_v51, %v12623_v40 }
 0x39a   : > { %v8335_v32 = vpop.f32.mrf.mxu0  ;;  %v8569_v13 = vpop.f32.mrf.mxu1 }
 0x39b   : > { %v8546_v46 = vadd.f32 %v8545_v22, %v8335_v32 }
 0x39c   : > { %v12626_v59 = vpop.f32.mrf.mxu0  ;;  %v12658_v42 = vpop.f32.mrf.mxu1 }
 0x39d   : > { %v8564_v29 = vadd.f32 %v12652_v19, %v12626_v59 }
 0x39e   : > { %v8355_v50 = vpop.f32.mrf.mxu0  ;;  %v8581_v4 = vpop.f32.mrf.mxu1 }
 0x39f   : > { %v8558_v14 = vadd.f32 %v8557_v43, %v8355_v50 }
 0x3a0   : > { %v12629_v31 = vpop.f32.mrf.mxu0  ;;  %v12661_v44 = vpop.f32.mrf.mxu1 }
 0x3a1   : > { %v8576_v9 = vadd.f32 %v12655_v24, %v12629_v31 }
 0x3a2   : > { %v8375_v23 = vpop.f32.mrf.mxu0  ;;  %v8593_v28 = vpop.f32.mrf.mxu1 }
 0x3a3   : > { %v8570_v38 = vadd.f32 %v8569_v13, %v8375_v23 }
 0x3a4   : > { %v12632_v56 = vpop.f32.mrf.mxu0  ;;  %v12664_v20 = vpop.f32.mrf.mxu1 }
 0x3a5   : > { %v8588_v41 = vadd.f32 %v12658_v42, %v12632_v56 }
 0x3a6   : > { %v8395_v34 = vpop.f32.mrf.mxu0  ;;  %v8605_v63 = vpop.f32.mrf.mxu1 }
 0x3a7   : > { %v8582_v48 = vadd.f32 %v8581_v4, %v8395_v34 }
 0x3a8   : > { %v12635_v6 = vpop.f32.mrf.mxu0  ;;  %v12695_v30 = vpop.f32.mrf.mxu1 }
 0x3a9   : > { %v8600_v55 = vadd.f32 %v12661_v44, %v12635_v6 }
 0x3aa   : > { %v8415_v62 = vpop.f32.mrf.mxu0  ;;  %v8864_v37 = vpop.f32.mrf.mxu1 }
 0x3ab   : > { %v8594_v39 = vadd.f32 %v8593_v28, %v8415_v62 }
 0x3ac   : > { %v12638_v11 = vpop.f32.mrf.mxu0  ;;  %v12698_v26 = vpop.f32.mrf.mxu1 }
 0x3ad   : > { %v8612_v53 = vadd.f32 %v12664_v20, %v12638_v11 }
 0x3ae   : > { %v8435_v8 = vpop.f32.mrf.mxu0  ;;  %v8880_v51 = vpop.f32.mrf.mxu1 }
 0x3af   : > { %v16257_v7 = vadd.f32 %v8605_v63, %v8435_v8 }
 0x3b0   : > { %v12669_v27 = vpop.f32.mrf.mxu0  ;;  %v12701_v25 = vpop.f32.mrf.mxu1 }
 0x3b1   : > { %v8693_v22 = vadd.f32 %v12669_v27, %v8528_v17 }
 0x3b2   : > { %v8685_v54 = vpop.f32.mrf.mxu0  ;;  %v8896_v3 = vpop.f32.mrf.mxu1 }
 0x3b3   : > { %v8873_v19 = vadd.f32 %v12695_v30, %v8693_v22  ;;  %v8686_v2 = vadd.f32 %v8685_v54, %v8522_v61 }
 0x3b4   : > { %v12672_v43 = vpop.f32.mrf.mxu0  ;;  %v12704_v40 = vpop.f32.mrf.mxu1 }
 0x3b5   : > { %v8865_v24 = vadd.f32 %v8864_v37, %v8686_v2  ;;  %v8707_v32 = vadd.f32 %v12672_v43, %v8540_v60 }
 0x3b6   : > { %v8699_v13 = vpop.f32.mrf.mxu0  ;;  %v8912_v59 = vpop.f32.mrf.mxu1 }
 0x3b7   : > { %v8889_v42 = vadd.f32 %v12698_v26, %v8707_v32  ;;  %v8700_v50 = vadd.f32 %v8699_v13, %v8534_v12 }
 0x3b8   : > { %v12675_v4 = vpop.f32.mrf.mxu0  ;;  %v12707_v31 = vpop.f32.mrf.mxu1 }
 0x3b9   : > { %v16259_v44 = vadd.f32 %v8880_v51, %v8700_v50  ;;  %v8721_v23 = vadd.f32 %v12675_v4, %v8552_v47 }
 0x3ba   : > { %v8713_v28 = vpop.f32.mrf.mxu0  ;;  %v8928_v56 = vpop.f32.mrf.mxu1 }
 0x3bb   : > { %v16261_v17 = vadd.f32 %v12701_v25, %v8721_v23  ;;  %v8714_v20 = vadd.f32 %v8713_v28, %v8546_v46 }
 0x3bc   : > { %v12678_v34 = vpop.f32.mrf.mxu0  ;;  %v12710_v61 = vpop.f32.mrf.mxu1 }
 0x3bd   : > { %v16263_v63 = vadd.f32 %v8896_v3, %v8714_v20  ;;  %v8735_v6 = vadd.f32 %v12678_v34, %v8564_v29 }
 0x3be   : > { %v8727_v60 = vpop.f32.mrf.mxu0  ;;  %v8944_v30 = vpop.f32.mrf.mxu1 }
 0x3bf   : > { %v16265_v62 = vadd.f32 %v12704_v40, %v8735_v6  ;;  %v8728_v12 = vadd.f32 %v8727_v60, %v8558_v14 }
 0x3c0   : > { %v12681_v37 = vpop.f32.mrf.mxu0  ;;  %v12713_v11 = vpop.f32.mrf.mxu1 }
 0x3c1   : > { %v16267_v26 = vadd.f32 %v8912_v59, %v8728_v12  ;;  %v8749_v47 = vadd.f32 %v12681_v37, %v8576_v9 }
 0x3c2   : > { %v8741_v8 = vpop.f32.mrf.mxu0  ;;  %v8960_v51 = vpop.f32.mrf.mxu1 }
 0x3c3   : > { %v16269_v27 = vadd.f32 %v12707_v31, %v8749_v47  ;;  %v8742_v46 = vadd.f32 %v8741_v8, %v8570_v38 }
 0x3c4   : > { %v12684_v25 = vpop.f32.mrf.mxu0  ;;  %v12716_v22 = vpop.f32.mrf.mxu1 }
 0x3c5   : > { %v16271_v54 = vadd.f32 %v8928_v56, %v8742_v46  ;;  %v8763_v29 = vadd.f32 %v12684_v25, %v8588_v41 }
 0x3c6   : > { %v8755_v3 = vpop.f32.mrf.mxu0  ;;  %v8976_v2 = vpop.f32.mrf.mxu1 }
 0x3c7   : > { %v16273_v43 = vadd.f32 %v12710_v61, %v8763_v29  ;;  %v8756_v14 = vadd.f32 %v8755_v3, %v8582_v48 }
 0x3c8   : > { %v12687_v40 = vpop.f32.mrf.mxu0  ;;  %v12747_v32 = vpop.f32.mrf.mxu1 }
 0x3c9   : > { %v16275_v13 = vadd.f32 %v8944_v30, %v8756_v14  ;;  %v8777_v9 = vadd.f32 %v12687_v40, %v8600_v55 }
 0x3ca   : > { %v8769_v59 = vpop.f32.mrf.mxu0  ;;  %v9220_v50 = vpop.f32.mrf.mxu1 }
 0x3cb   : > { %v16277_v4 = vadd.f32 %v12713_v11, %v8777_v9  ;;  %v8770_v38 = vadd.f32 %v8769_v59, %v8594_v39 }
 0x3cc   : > { %v12690_v31 = vpop.f32.mrf.mxu0  ;;  %v12750_v23 = vpop.f32.mrf.mxu1 }
 0x3cd   : > { %v16279_v28 = vadd.f32 %v8960_v51, %v8770_v38  ;;  %v8791_v41 = vadd.f32 %v12690_v31, %v8612_v53 }
 0x3ce   : > { %v8783_v56 = vpop.f32.mrf.mxu0  ;;  %v9232_v20 = vpop.f32.mrf.mxu1 }
 0x3cf   : > { %v16281_v34 = vadd.f32 %v12716_v22, %v8791_v41  ;;  %v8784_v48 = vadd.f32 %v8783_v56, %v16257_v7 }
 0x3d0   : > { %v12721_v61 = vpop.f32.mrf.mxu0  ;;  %v12753_v6 = vpop.f32.mrf.mxu1 }
 0x3d1   : > { %v16284_v60 = vadd.f32 %v8976_v2, %v8784_v48  ;;  %v9065_v55 = vadd.f32 %v12721_v61, %v8873_v19 }
 0x3d2   : > { %v9058_v30 = vpop.f32.mrf.mxu0  ;;  %v9244_v12 = vpop.f32.mrf.mxu1 }
 0x3d3   : > { %v9227_v37 = vadd.f32 %v12747_v32, %v9065_v55  ;;  %v9059_v39 = vadd.f32 %v9058_v30, %v8865_v24 }
 0x3d4   : > { %v12724_v11 = vpop.f32.mrf.mxu0  ;;  %v12756_v47 = vpop.f32.mrf.mxu1 }
 0x3d5   : > { %v16287_v8 = vadd.f32 %v9227_v37, %v16176_v5  ;;  %v9221_v53 = vadd.f32 %v9220_v50, %v9059_v39  ;;  %v9077_v51 = vadd.f32 %v12724_v11, %v8889_v42 }
 0x3d6   : > { %v9070_v46 = vpop.f32.mrf.mxu0  ;;  %v9256_v25 = vpop.f32.mrf.mxu1 }
 0x3d7   : > { %v16290_v7 = vadd.f32 %v9221_v53, %v16182_v0  ;;  %v9239_v22 = vadd.f32 %v12750_v23, %v9077_v51  ;;  %v9071_v29 = vadd.f32 %v9070_v46, %v16259_v44 }
 0x3d8   : > { %v12727_v19 = vpop.f32.mrf.mxu0  ;;  %v12759_v3 = vpop.f32.mrf.mxu1 }
 0x3d9   : > { %v16294_v2 = vadd.f32 %v9239_v22, %v16188_v57  ;;  %v9233_v24 = vadd.f32 %v9232_v20, %v9071_v29  ;;  %v9089_v14 = vadd.f32 %v12727_v19, %v16261_v17 }
 0x3da   : > { %v9082_v5 = vpop.f32.mrf.mxu0  ;;  %v9268_v40 = vpop.f32.mrf.mxu1 }
 0x3db   : > { %v16298_v42 = vadd.f32 %v9233_v24, %v16194_v45  ;;  %v9251_v32 = vadd.f32 %v12753_v6, %v9089_v14  ;;  %v9083_v0 = vadd.f32 %v9082_v5, %v16263_v63 }
 0x3dc   : > { %v12730_v9 = vpop.f32.mrf.mxu0  ;;  %v12762_v59 = vpop.f32.mrf.mxu1 }
 0x3dd   : > { %v16302_v44 = vadd.f32 %v9251_v32, %v16200_v10  ;;  %v9245_v50 = vadd.f32 %v9244_v12, %v9083_v0  ;;  %v9101_v57 = vadd.f32 %v12730_v9, %v16265_v62 }
 0x3de   : > { %v9094_v38 = vpop.f32.mrf.mxu0  ;;  %v9280_v31 = vpop.f32.mrf.mxu1 }
 0x3df   : > { %v16306_v17 = vadd.f32 %v9245_v50, %v16206_v58  ;;  %v9263_v23 = vadd.f32 %v12756_v47, %v9101_v57  ;;  %v9095_v45 = vadd.f32 %v9094_v38, %v16267_v26 }
 0x3e0   : > { %v12733_v41 = vpop.f32.mrf.mxu0  ;;  %v12765_v56 = vpop.f32.mrf.mxu1 }
 0x3e1   : > { %v16310_v63 = vadd.f32 %v9263_v23, %v16212_v35  ;;  %v9257_v20 = vadd.f32 %v9256_v25, %v9095_v45  ;;  %v9113_v10 = vadd.f32 %v12733_v41, %v16269_v27 }
 0x3e2   : > { %v9106_v48 = vpop.f32.mrf.mxu0  ;;  %v9292_v61 = vpop.f32.mrf.mxu1 }
 0x3e3   : > { %17817 = vst [vmem:[#allocation110_spill] sm:$0xff] %v16310_v63  ;;  %v16314_v62 = vadd.f32 %v9257_v20, %v16218_v33  ;;  %v9275_v6 = vadd.f32 %v12759_v3, %v9113_v10  ;;  %v9107_v58 = vadd.f32 %v9106_v48, %v16271_v54 }
 0x3e4   : > { %v12736_v55 = vpop.f32.mrf.mxu0  ;;  %v12768_v30 = vpop.f32.mrf.mxu1 }
 0x3e5   : > { %17818 = vst [vmem:[#allocation124_spill] sm:$0xff] %v16314_v62  ;;  %v16318_v26 = vadd.f32 %v9275_v6, %v16224_v15  ;;  %v9269_v12 = vadd.f32 %v9268_v40, %v9107_v58  ;;  %v9125_v35 = vadd.f32 %v12736_v55, %v16273_v43 }
 0x3e6   : > { %v9118_v37 = vpop.f32.mrf.mxu0  ;;  %v9304_v39 = vpop.f32.mrf.mxu1 }
 0x3e7   : > { %17819 = vst [vmem:[#allocation113_spill] sm:$0xff] %v16318_v26  ;;  %v16322_v27 = vadd.f32 %v9269_v12, %v16229_v36  ;;  %v9287_v11 = vadd.f32 %v12762_v59, %v9125_v35  ;;  %v9119_v33 = vadd.f32 %v9118_v37, %v16275_v13 }
 0x3e8   : > { %v12739_v47 = vpop.f32.mrf.mxu0  ;;  %v16325_v53 = vpop.f32.mrf.mxu1 }
 0x3e9   : > { %17820 = vst [vmem:[#allocation127_spill] sm:$0xff] %v16322_v27  ;;  %v16328_v54 = vadd.f32 %v9287_v11, %v16234_v18  ;;  %v9281_v51 = vadd.f32 %v9280_v31, %v9119_v33  ;;  %v9137_v15 = vadd.f32 %v12739_v47, %v16277_v4 }
 0x3ea   : > { %v9130_v46 = vpop.f32.mrf.mxu0  ;;  %v16331_v25 = vpop.f32.mrf.mxu1 }
 0x3eb   : > { %17821 = vst [vmem:[#allocation117_spill] sm:$0xff] %v16328_v54  ;;  %v16334_v43 = vadd.f32 %v9281_v51, %v16239_v52  ;;  %v9299_v36 = vadd.f32 %v12765_v56, %v9137_v15  ;;  %v9131_v22 = vadd.f32 %v9130_v46, %v16279_v28 }
 0x3ec   : > { %v12742_v29 = vpop.f32.mrf.mxu0  ;;  %v16337_v13 = vpop.f32.mrf.mxu1 }
 0x3ed   : > { %17822 = vst [vmem:[#allocation129_spill] sm:$0xff] %v16334_v43  ;;  %v16340_v19 = vadd.f32 %v9299_v36, %v16244_v16  ;;  %v9293_v18 = vadd.f32 %v9292_v61, %v9131_v22  ;;  %v9149_v3 = vadd.f32 %v12742_v29, %v16281_v34 }
 0x3ee   : > { %v9142_v24 = vpop.f32.mrf.mxu0  ;;  %v16343_v4 = vpop.f32.mrf.mxu1 }
 0x3ef   : > { %17823 = vst [vmem:[#allocation5_spill] sm:$0xff] %v16340_v19  ;;  %v16346_v14 = vadd.f32 %v9293_v18, %v16248_v21  ;;  %v9311_v52 = vadd.f32 %v12768_v30, %v9149_v3  ;;  %v9143_v5 = vadd.f32 %v9142_v24, %v16284_v60 }
 0x3f0   : > { %v12773_v40 = vpop.f32.mrf.mxu0  ;;  %v16349_v28 = vpop.f32.mrf.mxu1 }
 0x3f1   : > { %17824 = vst [vmem:[#allocation130_spill] sm:$0xff] %v16346_v14  ;;  %v16352_v32 = vadd.f32 %v9311_v52, %v16252_v1  ;;  %v9305_v16 = vadd.f32 %v9304_v39, %v9143_v5 }
 0x3f2   : > { %v9414_v0 = vpop.f32.mrf.mxu0  ;;  %v16354_v9 = vpop.f32.mrf.mxu1 }
 0x3f3   : > { %17825 = vst [vmem:[#allocation163_spill] sm:$0xff] %v16352_v32  ;;  %v16357_v34 = vadd.f32 %v9305_v16, %v16255_v49 }
 0x3f4   : > { %v12776_v59 = vpop.f32.mrf.mxu0  ;;  %v16359_v50 = vpop.f32.mrf.mxu1 }
 0x3f5   : > { %17826 = vst [vmem:[#allocation131_spill] sm:$0xff] %v16357_v34 }
 0x3f6   : > { %v16361_v21 = vpop.f32.mrf.mxu0  ;;  %v16363_v57 = vpop.f32.mrf.mxu1 }
 0x3f8   : > { %v16365_v60 = vpop.f32.mrf.mxu0  ;;  %v16367_v38 = vpop.f32.mrf.mxu1 }
 0x3fa   : > { %v16369_v1 = vpop.f32.mrf.mxu0  ;;  %v16371_v31 = vpop.f32.mrf.mxu1 }
 0x3fc   : > { %v16373_v23 = vpop.f32.mrf.mxu0  ;;  %v16375_v45 = vpop.f32.mrf.mxu1 }
 0x3fe   : > { %v16377_v49 = vpop.f32.mrf.mxu0  ;;  %v16379_v41 = vpop.f32.mrf.mxu1 }
 0x400   : > { %v16381_v56 = vpop.f32.mrf.mxu0  ;;  %v16383_v20 = vpop.f32.mrf.mxu1 }
 0x401   : > { %17827 = vst [vmem:[#allocation132_spill] sm:$0xff] %v16383_v20 }
 0x402   : > { %v16385_v10 = vpop.f32.mrf.mxu0  ;;  %v16387_v48 = vpop.f32.mrf.mxu1 }
 0x403   : > { %17828 = vst [vmem:[#allocation176_spill] sm:$0xff] %v16387_v48 }
 0x404   : > { %v16389_v61 = vpop.f32.mrf.mxu0  ;;  %v16391_v6 = vpop.f32.mrf.mxu1 }
 0x405   : > { %17829 = vst [vmem:[#allocation91_spill] sm:$0xff] %v16391_v6 }
 0x406   : > { %v16393_v58 = vpop.f32.mrf.mxu0  ;;  %v16395_v55 = vpop.f32.mrf.mxu1 }
 0x407   : > { %17830 = vst [vmem:[#allocation9_spill] sm:$0xff] %v16395_v55 }
 0x408   : > { %v16397_v30 = vpop.f32.mrf.mxu0  ;;  %v12851_v12 = vpop.f32.mrf.mxu1 }
 0x40a   : > { %v16399_v35 = vpop.f32.mrf.mxu0  ;;  %v9983_v37 = vpop.f32.mrf.mxu1 }
 0x40b   : > { %17831 = vst [vmem:[#allocation92_spill] sm:$0xff] %v16399_v35  ;;  %v9641_v35 = vadd.f32 %v16331_v25, %v9414_v0 }
 0x40c   : > { %v16401_v39 = vpop.f32.mrf.mxu0  ;;  %v12854_v11 = vpop.f32.mrf.mxu1 }
 0x40d   : > { %17832 = vst [vmem:[#allocation93_spill] sm:$0xff] %v16401_v39 }
 0x40e   : > { %v16403_v33 = vpop.f32.mrf.mxu0  ;;  %v9999_v47 = vpop.f32.mrf.mxu1 }
 0x40f   : > { %17833 = vst [vmem:[#allocation99_spill] sm:$0xff] %v16403_v33 }
 0x410   : > { %v12825_v51 = vpop.f32.mrf.mxu0  ;;  %v16405_v15 = vpop.f32.mrf.mxu1 }
 0x412   : > { %v9804_v46 = vpop.f32.mrf.mxu0  ;;  %v16407_v36 = vpop.f32.mrf.mxu1 }
 0x414   : > { %v12828_v22 = vpop.f32.mrf.mxu0  ;;  %v16409_v29 = vpop.f32.mrf.mxu1 }
 0x416   : > { %v9818_v18 = vpop.f32.mrf.mxu0  ;;  %v16411_v3 = vpop.f32.mrf.mxu1 }
 0x418   : > { %v12831_v24 = vpop.f32.mrf.mxu0  ;;  %v16413_v52 = vpop.f32.mrf.mxu1 }
 0x41a   : > { %v9832_v5 = vpop.f32.mrf.mxu0  ;;  %v16415_v16 = vpop.f32.mrf.mxu1 }
 0x41b   : > { %17834 = vst [vmem:[#allocation85_spill] sm:$0xff] %v16415_v16 }
 0x41c   : > { %v12834_v34 = vpop.f32.mrf.mxu0  ;;  %v16417_v32 = vpop.f32.mrf.mxu1 }
 0x41d   : > { %17835 = vst [vmem:[#allocation101_spill] sm:$0xff] %v16417_v32 }
 0x41e   : > { %v9846_v14 = vpop.f32.mrf.mxu0  ;;  %v16419_v19 = vpop.f32.mrf.mxu1 }
 0x41f   : > { %17836 = vst [vmem:[#allocation86_spill] sm:$0xff] %v16419_v19  ;;  %v9647_v19 = vadd.f32 %v16325_v53, %v12773_v40  ;;  %v9653_v53 = vadd.f32 %v16343_v4, %v16361_v21 }
 0x420   : > { %v16421_v43 = vpop.f32.mrf.mxu0  ;;  %v16423_v54 = vpop.f32.mrf.mxu1 }
 0x421   : > { %17837 = vst [vmem:[#allocation108_spill] sm:$0xff] %v16423_v54 }
 0x422   : > { %v16425_v27 = vpop.f32.mrf.mxu0  ;;  %v16427_v55 = vpop.f32.mrf.mxu1 }
 0x423   : > { %17838 = vst [vmem:[#allocation87_spill] sm:$0xff] %v16427_v55  ;;  %v9812_v55 = vadd.f32 %v12825_v51, %v9647_v19  ;;  %v9819_v51 = vadd.f32 %v9818_v18, %v9653_v53 }
 0x424   : > { %v16429_v33 = vpop.f32.mrf.mxu0  ;;  %v16431_v26 = vpop.f32.mrf.mxu1 }
 0x425   : > { %17839 = vst [vmem:[#allocation111_spill] sm:$0xff] %v16431_v26  ;;  %v9659_v26 = vadd.f32 %v16337_v13, %v12776_v59  ;;  %v9992_v40 = vadd.f32 %v12851_v12, %v9812_v55  ;;  %v9665_v13 = vadd.f32 %v16354_v9, %v16369_v1  ;;  %v10000_v9 = vadd.f32 %v9999_v47, %v9819_v51 }
 0x426   : > { %v16433_v6 = vpop.f32.mrf.mxu0  ;;  %v16435_v39 = vpop.f32.mrf.mxu1  ;;  %v9695_v47 = vadd.f32 %v16367_v38, %v16381_v56  ;;  %v9689_v38 = vadd.f32 %v16371_v31, %v16385_v10 }
 0x427   : > { %17840 = vst [vmem:[#allocation94_spill] sm:$0xff] %v16433_v6  ;;  %17841 = vst [vmem:[#allocation115_spill] sm:$0xff] %v16435_v39  ;;  %v9805_v6 = vadd.f32 %v9804_v46, %v9641_v35  ;;  %v9833_v21 = vadd.f32 %v9832_v5, %v9665_v13 }
 0x428   : > { %v16437_v62 = vpop.f32.mrf.mxu0  ;;  %v12903_v32 = vpop.f32.mrf.mxu1  ;;  %v9861_v31 = vadd.f32 %v16425_v27, %v9689_v38  ;;  %v17859_v38 = vld [vmem:[#allocation113_spill] sm:$0xff] }
 0x429   : > { %17842 = vst [vmem:[#allocation95_spill] sm:$0xff] %v16437_v62  ;;  %v9826_v62 = vadd.f32 %v12828_v22, %v9659_v26  ;;  %v9984_v0 = vadd.f32 %v9983_v37, %v9805_v6 }
 0x42a   : > { %v16440_v48 = vpop.f32.mrf.mxu0  ;;  %v10339_v54 = vpop.f32.mrf.mxu1 }
 0x42b   : > { %17843 = vst [vmem:[#allocation119_spill] sm:$0xff] %v16440_v48  ;;  %v9671_v48 = vadd.f32 %v16349_v28, %v16365_v60  ;;  %v9683_v28 = vadd.f32 %v16359_v50, %v16373_v23  ;;  %v16462_v60 = vld [vmem:[%s16617_s2] ss:$0 sm:$0xff] }
 0x42c   : > { %v16443_v63 = vpop.f32.mrf.mxu0  ;;  %v12906_v16 = vpop.f32.mrf.mxu1 }
 0x42d   : > { %17844 = vst [vmem:[#allocation102_spill] sm:$0xff] %v16443_v63  ;;  %v9840_v59 = vadd.f32 %v12831_v24, %v9671_v48  ;;  %v9854_v12 = vadd.f32 %v12834_v34, %v9683_v28  ;;  %v17849_v28 = vld [vmem:[#allocation110_spill] sm:$0xff] }
 0x42e   : > { %v16446_v20 = vpop.f32.mrf.mxu0  ;;  %v10351_v39 = vpop.f32.mrf.mxu1 }
 0x42f   : > { %17845 = vst [vmem:[#allocation122_spill] sm:$0xff] %v16446_v20  ;;  %v10008_v20 = vadd.f32 %v12854_v11, %v9826_v62  ;;  %v10040_v56 = vadd.f32 %v16409_v29, %v9854_v12 }
 0x430   : > { %v12877_v25 = vpop.f32.mrf.mxu0  ;;  %v12909_v19 = vpop.f32.mrf.mxu1 }
 0x431   : > { %v10184_v63 = vadd.f32 %v12877_v25, %v9992_v40 }
 0x432   : > { %v10177_v35 = vpop.f32.mrf.mxu0  ;;  %v10363_v46 = vpop.f32.mrf.mxu1 }
 0x433   : > { %v10346_v4 = vadd.f32 %v12903_v32, %v10184_v63  ;;  %v10178_v26 = vadd.f32 %v10177_v35, %v9984_v0  ;;  %v9677_v63 = vadd.f32 %v16363_v57, %v16377_v49  ;;  %v10024_v32 = vadd.f32 %v16405_v15, %v9840_v59 }
 0x434   : > { %v12880_v6 = vpop.f32.mrf.mxu0  ;;  %v12912_v55 = vpop.f32.mrf.mxu1 }
 0x435   : > { %v10434_v1 = vadd.f32 %v10346_v4, %v16287_v8  ;;  %v10340_v48 = vadd.f32 %v10339_v54, %v10178_v26  ;;  %v10196_v62 = vadd.f32 %v12880_v6, %v10008_v20  ;;  %v10016_v8 = vadd.f32 %v16407_v36, %v9833_v21  ;;  %v17848_v26 = vld [vmem:[#allocation94_spill] sm:$0xff] }
 0x436   : > { %v10189_v50 = vpop.f32.mrf.mxu0  ;;  %v10375_v23 = vpop.f32.mrf.mxu1  ;;  %v9847_v54 = vadd.f32 %v9846_v14, %v9677_v63  ;;  %v9868_v14 = vadd.f32 %v16421_v43, %v9695_v47 }
 0x437   : > { %v10457_v37 = vadd.f32 %v16462_v60, %v10434_v1  ;;  %v10433_v11 = vadd.f32 %v10340_v48, %v16290_v7  ;;  %v10358_v22 = vadd.f32 %v12906_v16, %v10196_v62  ;;  %v10190_v18 = vadd.f32 %v10189_v50, %v10000_v9  ;;  %v17851_v9 = vld [vmem:[#allocation176_spill] sm:$0xff]  ;;  %v17852_v48 = vld [vmem:[#allocation101_spill] sm:$0xff] }
 0x438   : > { %v12883_v20 = vpop.f32.mrf.mxu0  ;;  %v12915_v24 = vpop.f32.mrf.mxu1  ;;  %v10032_v40 = vadd.f32 %v16411_v3, %v9847_v54  ;;  %v10056_v51 = vadd.f32 %v16413_v52, %v9868_v14  ;;  %v17854_v50 = vld [vmem:[#allocation124_spill] sm:$0xff] }
 0x439   : > { %10473 = vst [vmem:[%s16473_s7 + $0x8] sm:$0xff] %v10457_v37  ;;  %v10456_v34 = vadd.f32 %v16462_v60, %v10433_v11  ;;  %v10436_v57 = vadd.f32 %v10358_v22, %v16294_v2  ;;  %v10352_v7 = vadd.f32 %v10351_v39, %v10190_v18  ;;  %v10208_v49 = vadd.f32 %v12883_v20, %v10024_v32  ;;  %v17855_v18 = vld [vmem:[#allocation93_spill] sm:$0xff]  ;;  %v17858_v20 = vld [vmem:[#allocation119_spill] sm:$0xff] }
 0x43a   : > { %v10201_v15 = vpop.f32.mrf.mxu0  ;;  %v10387_v36 = vpop.f32.mrf.mxu1  ;;  %v9707_v39 = vadd.f32 %v16375_v45, %v16389_v61 }
 0x43b   : > { %10472 = vst [vmem:[%s16473_s7] sm:$0xff] %v10456_v34  ;;  %v10459_v5 = vadd.f32 %v16462_v60, %v10436_v57  ;;  %v10435_v16 = vadd.f32 %v10352_v7, %v16298_v42  ;;  %v10370_v53 = vadd.f32 %v12909_v19, %v10208_v49  ;;  %v10202_v2 = vadd.f32 %v10201_v15, %v10016_v8  ;;  %v17857_v8 = vld [vmem:[#allocation86_spill] sm:$0xff] }
 0x43c   : > { %v12886_v10 = vpop.f32.mrf.mxu0  ;;  %v12918_v29 = vpop.f32.mrf.mxu1  ;;  %v9701_v19 = vadd.f32 %v16379_v41, %v16393_v58  ;;  %v9882_v45 = vadd.f32 %v16429_v33, %v9707_v39  ;;  %v17863_v39 = vld [vmem:[#allocation102_spill] sm:$0xff] }
 0x43d   : > { %10475 = vst [vmem:[%s16473_s7 + $0x18] sm:$0xff] %v10459_v5  ;;  %v10458_v43 = vadd.f32 %v16462_v60, %v10435_v16  ;;  %v10438_v25 = vadd.f32 %v10370_v53, %v16302_v44  ;;  %v10364_v0 = vadd.f32 %v10363_v46, %v10202_v2  ;;  %v10220_v42 = vadd.f32 %v12886_v10, %v10040_v56  ;;  %v17846_v44 = vld [vmem:[#allocation132_spill] sm:$0xff]  ;;  %v17847_v46 = vld [vmem:[#allocation85_spill] sm:$0xff] }
 0x43e   : > { %v10213_v61 = vpop.f32.mrf.mxu0  ;;  %v9719_v35 = vadd.f32 %v17846_v44, %v16397_v30  ;;  %v10048_v4 = vadd.f32 %v17847_v46, %v9861_v31  ;;  %v9875_v41 = vadd.f32 %v17848_v26, %v9701_v19  ;;  %v10399_v52 = vpop.f32.mrf.mxu1  ;;  %v10072_v62 = vadd.f32 %v17852_v48, %v9882_v45  ;;  %v17853_v30 = vld [vmem:[#allocation95_spill] sm:$0xff]  ;;  %v17861_v5 = vld [vmem:[#allocation9_spill] sm:$0xff]  ;;  %v17862_v53 = vld [vmem:[#allocation108_spill] sm:$0xff] }
 0x43f   : > { %10474 = vst [vmem:[%s16473_s7 + $0x10] sm:$0xff] %v10458_v43  ;;  %v10461_v27 = vadd.f32 %v16462_v60, %v10438_v25  ;;  %v10437_v3 = vadd.f32 %v10364_v0, %v16306_v17  ;;  %v10382_v13 = vadd.f32 %v12912_v55, %v10220_v42  ;;  %v10214_v59 = vadd.f32 %v10213_v61, %v10032_v40  ;;  %v17850_v55 = vld [vmem:[#allocation92_spill] sm:$0xff]  ;;  %v17864_v43 = vld [vmem:[#allocation127_spill] sm:$0xff] }
 0x440   : > { %v12889_v58 = vpop.f32.mrf.mxu0  ;;  %v9713_v1 = vadd.f32 %v17851_v9, %v17850_v55  ;;  %v9896_v63 = vadd.f32 %v17853_v30, %v9719_v35  ;;  %v10064_v54 = vadd.f32 %v17857_v8, %v9875_v41  ;;  %v12921_v7 = vpop.f32.mrf.mxu1  ;;  %v17865_v19 = vld [vmem:[#allocation87_spill] sm:$0xff]  ;;  %v17869_v41 = vld [vmem:[#allocation129_spill] sm:$0xff] }
 0x441   : > { %10477 = vst [vmem:[%s16473_s7 + $0x28] sm:$0xff] %v10461_v27  ;;  %v10460_v33 = vadd.f32 %v16462_v60, %v10437_v3  ;;  %v10440_v21 = vadd.f32 %v10382_v13, %v17849_v28  ;;  %v10376_v6 = vadd.f32 %v10375_v23, %v10214_v59  ;;  %v10232_v17 = vadd.f32 %v12889_v58, %v10056_v51  ;;  %v17856_v23 = vld [vmem:[#allocation91_spill] sm:$0xff]  ;;  %v17867_v13 = vld [vmem:[#allocation117_spill] sm:$0xff] }
 0x442   : > { %v10225_v32 = vpop.f32.mrf.mxu0  ;;  %v9731_v47 = vadd.f32 %v17856_v23, %v17855_v18  ;;  %v9889_v34 = vadd.f32 %v17858_v20, %v9713_v1  ;;  %v10088_v2 = vadd.f32 %v17862_v53, %v9896_v63  ;;  %v10411_v27 = vpop.f32.mrf.mxu1  ;;  %v17868_v46 = vld [vmem:[#allocation111_spill] sm:$0xff]  ;;  %v17871_v9 = vld [vmem:[#allocation5_spill] sm:$0xff] }
 0x443   : > { %10476 = vst [vmem:[%s16473_s7 + $0x20] sm:$0xff] %v10460_v33  ;;  %v10463_v12 = vadd.f32 %v16462_v60, %v10440_v21  ;;  %v10439_v37 = vadd.f32 %v10376_v6, %v17854_v50  ;;  %v10394_v11 = vadd.f32 %v12915_v24, %v10232_v17  ;;  %v10226_v22 = vadd.f32 %v10225_v32, %v10048_v4  ;;  %v17860_v24 = vld [vmem:[#allocation99_spill] sm:$0xff]  ;;  %v17872_v32 = vld [vmem:[#allocation130_spill] sm:$0xff] }
 0x444   : > { %v12892_v57 = vpop.f32.mrf.mxu0  ;;  %v9725_v16 = vadd.f32 %v17861_v5, %v17860_v24  ;;  %v9910_v40 = vadd.f32 %v17863_v39, %v9731_v47  ;;  %v10080_v51 = vadd.f32 %v17865_v19, %v9889_v34  ;;  %v17870_v21 = vld [vmem:[#allocation115_spill] sm:$0xff]  ;;  %v12924_v55 = vpop.f32.mrf.mxu1 }
 0x445   : > { %10479 = vst [vmem:[%s16473_s7 + $0x38] sm:$0xff] %v10463_v12  ;;  %v10462_v49 = vadd.f32 %v16462_v60, %v10439_v37  ;;  %v10442_v56 = vadd.f32 %v10394_v11, %v17859_v38  ;;  %v10388_v14 = vadd.f32 %v10387_v36, %v10226_v22  ;;  %v10244_v15 = vadd.f32 %v12892_v57, %v10072_v62  ;;  %v17866_v36 = vld [vmem:[#allocation122_spill] sm:$0xff]  ;;  %v17873_v18 = vld [vmem:[#allocation163_spill] sm:$0xff] }
 0x446   : > { %v10237_v31 = vpop.f32.mrf.mxu0  ;;  %v9903_v45 = vadd.f32 %v17866_v36, %v9725_v16  ;;  %v10104_v4 = vadd.f32 %v17868_v46, %v9910_v40  ;;  %v10423_v11 = vpop.f32.mrf.mxu1 }
 0x447   : > { %10478 = vst [vmem:[%s16473_s7 + $0x30] sm:$0xff] %v10462_v49  ;;  %v10465_v10 = vadd.f32 %v16462_v60, %v10442_v56  ;;  %v10441_v25 = vadd.f32 %v10388_v14, %v17864_v43  ;;  %v10406_v0 = vadd.f32 %v12918_v29, %v10244_v15  ;;  %v10238_v42 = vadd.f32 %v10237_v31, %v10064_v54  ;;  %v17874_v54 = vld [vmem:[#allocation131_spill] sm:$0xff] }
 0x448   : > { %v12895_v61 = vpop.f32.mrf.mxu0  ;;  %v10096_v6 = vadd.f32 %v17870_v21, %v9903_v45 }
 0x449   : > { %10481 = vst [vmem:[%s16473_s7 + $0x48] sm:$0xff] %v10465_v10  ;;  %v10464_v3 = vadd.f32 %v16462_v60, %v10441_v25  ;;  %v10444_v59 = vadd.f32 %v10406_v0, %v17867_v13  ;;  %v10400_v44 = vadd.f32 %v10399_v52, %v10238_v42  ;;  %v10256_v35 = vadd.f32 %v12895_v61, %v10088_v2 }
 0x44a   : > { %v10249_v29 = vpop.f32.mrf.mxu0 }
 0x44b   : > { %10480 = vst [vmem:[%s16473_s7 + $0x40] sm:$0xff] %v10464_v3  ;;  %v10467_v26 = vadd.f32 %v16462_v60, %v10444_v59  ;;  %v10443_v58 = vadd.f32 %v10400_v44, %v17869_v41  ;;  %v10418_v33 = vadd.f32 %v12921_v7, %v10256_v35  ;;  %v10250_v28 = vadd.f32 %v10249_v29, %v10080_v51 }
 0x44c   : > { %v12898_v17 = vpop.f32.mrf.mxu0 }
 0x44d   : > { %10483 = vst [vmem:[%s16473_s7 + $0x58] sm:$0xff] %v10467_v26  ;;  %v10466_v52 = vadd.f32 %v16462_v60, %v10443_v58  ;;  %v10446_v1 = vadd.f32 %v10418_v33, %v17871_v9  ;;  %v10412_v48 = vadd.f32 %v10411_v27, %v10250_v28  ;;  %v10268_v62 = vadd.f32 %v12898_v17, %v10104_v4 }
 0x44e   : > { %v10261_v30 = vpop.f32.mrf.mxu0 }
 0x44f   : > { %10482 = vst [vmem:[%s16473_s7 + $0x50] sm:$0xff] %v10466_v52  ;;  %v10469_v63 = vadd.f32 %v16462_v60, %v10446_v1  ;;  %v10445_v12 = vadd.f32 %v10412_v48, %v17872_v32  ;;  %v10430_v50 = vadd.f32 %v12924_v55, %v10268_v62  ;;  %v10262_v37 = vadd.f32 %v10261_v30, %v10096_v6 }
 0x451   : > { %10485 = vst [vmem:[%s16473_s7 + $0x68] sm:$0xff] %v10469_v63  ;;  %v10468_v22 = vadd.f32 %v16462_v60, %v10445_v12  ;;  %v10448_v23 = vadd.f32 %v10430_v50, %v17873_v18  ;;  %v10424_v47 = vadd.f32 %v10423_v11, %v10262_v37 }
 0x453   : > { %10484 = vst [vmem:[%s16473_s7 + $0x60] sm:$0xff] %v10468_v22  ;;  %v10471_v8 = vadd.f32 %v16462_v60, %v10448_v23  ;;  %v10447_v20 = vadd.f32 %v10424_v47, %v17874_v54 }
 0x455   : > { %10487 = vst [vmem:[%s16473_s7 + $0x78] sm:$0xff] %v10471_v8  ;;  %v10470_v34 = vadd.f32 %v16462_v60, %v10447_v20 }
 0x457   : > { %10486 = vst [vmem:[%s16473_s7 + $0x70] sm:$0xff] %v10470_v34 }
 0x458   : > { %13017 = shalt.err (!%p13014_p7)
}
 0x459   : > { %s13018_s28 = scalar_lea.hbm %s16555_s21, 2048  ;;  %s13022_s8 = scalar_lea.hbm %s16618_s3, 8192 }
 0x45a   : > { %p13019_p9 = scmp.ne.s32.totalorder %s16555_s21, %s13018_s28  ;;  %p13023_p12 = scmp.lt.s32.totalorder %s16555_s21, %s16618_s3 }
 0x45b   : > { %p13024_p13 = scmp.lt.s32.totalorder %s13022_s8, %s13018_s28 }
 0x45c   : > { %p13020_p10 = pnand %p13019_p9, %p13172_p3 }
 0x45d   : > { %p13025_p0 = por %p13024_p13, %p13023_p12 }
 0x45e   : > { %p13021_p11 = pneg %p13020_p10 }
 0x460   : > { %p13026_p1 = pnand %p13025_p0, %p13021_p11 }
 0x462   : > { %13029 = shalt.err (!%p13026_p1)
}
 0x463   : > { %s13099_s15 = smov 128   ;;  %s13100_s11 = smov 8  }
 0x464   : > { %12927 = dma.vmem_to_hbm [thread:$0]  (%p13172_p3), %s16557_s16, 2048, %s16555_s21, %s16564_s24, %s13099_s15, %s13099_s15, %s13100_s11  }
 0x465 PF: > { %p12933_p2 = scmp.ge.s32.totalorder %s13096_s19, 2  ;;  %s10519_s20 = sand.u32 1, %s13068_s12  }
 0x466   : > { %s10520_s27 = scalar_lea.sflag [#allocation3], %s10519_s20 }
 0x467   : > { %p12930_p4 = pnand %p12933_p2, %p13181_p8 }
 0x469   : > { %p12931_p5 = pneg %p12930_p4 }
 0x46b   : > { %13063 = dma.done.wait (%p12931_p5), %s10520_s27, 2048  }
 0x46c   : > { %13065 = vsyncadd (%p12931_p5), %s10520_s27, 4294965248  ;;  %s16_s19 = sadd.s32 1, %s13096_s19   ;;  %s17875_s12 = smov %s13072_s13 }
 0x46d   : > { %p13_p6 = scmp.ge.s32.totalorder %s16_s19, 6   ;;  %s17876_s13 = smov %s13076_s14 }
 0x46e   : > { %s17877_s14 = smov %s13190_s30  ;;  %s17878_s15 = smov %s13088_s17 }
 0x46f   : > { %s17879_s16 = smov %s13092_s18  ;;  %s17880_s17 = smov %s17883_s22 }
 0x470   : > { %s17881_s18 = smov %s17887_s23  ;;  %15 = sbr.rel (!%p13_p6) target bundleno = 5 (0x5), region = 67 }
 0x475   :  { %10525 = vsyncpa [#allocation3], 1 }
 0x476   :  { %10527 = vsyncpa [#allocation3 + $0x1], 1 }

</bundles_post_ra>
